<compile_context>
chip_gen: v7x
topology: tpu7x:2x2x1
jax: 0.10.0
libtpu: 0.0.40
codegen_flags: <defaults>
</compile_context>

<pallas_src>
import functools
import math

import jax
import jax.numpy as jnp
from jax.experimental import pallas as pl
from jax.experimental.pallas import tpu as pltpu


def _num_batch_blocks(B):
    # v7x has 2 TensorCores: split the batch into two "parallel" grid blocks when
    # there are enough samples. Below 4 samples a single fatter block (full-sublane
    # matmuls, one grid step) wins on v5e/v6e.
    return 2 if (B % 2 == 0 and B >= 4) else 1


# ----------------------------------------------------------------------------
# Fused kernel: one grid step = BB batch samples; runs all GRU layers and the
# graph-topology max-pool head without touching HBM in between.
#
# ref layout (per layer l):
#   wih : (Fin_l, 6H)  columns = [fwd r | fwd z | fwd n | bwd r | bwd z | bwd n]
#   bgi : (1, 6H)      b_ih (+ b_hh folded in for the r/z gates)
#   whh : (2, H, 3H)   [fwd, bwd], columns = [r | z | n]
#   bhn : (2, 1, 3H)   b_hh in the n columns only (r/z columns are zero)
# ----------------------------------------------------------------------------
def fused_gru_pool_kernel(x_ref, a_ref, *rest, T, E, BB, Hd, L):
    layer_refs = rest[:4 * L]
    wblk_ref, bpool_ref, wl_ref = rest[4 * L:4 * L + 3]
    out_ref = rest[4 * L + 3]
    gi_scr, seq_scr = rest[4 * L + 4:]

    BBE = BB * E
    H, H2, H3, H6 = Hd, 2 * Hd, 3 * Hd, 6 * Hd

    def gate_step(gi, off, gh, h):
        # PyTorch GRU gate math (gate order r, z, n).
        #   gi carries b_ih (+ folded b_hh for r/z); gh carries b_hn in its n cols.
        r = jax.nn.sigmoid(gi[:, off:off + H] + gh[:, 0:H])
        z = jax.nn.sigmoid(gi[:, off + H:off + H2] + gh[:, H:H2])
        n = jnp.tanh(gi[:, off + H2:off + H3] + r * gh[:, H2:H3])
        return (1.0 - z) * n + z * h

    hf = hb = None
    for l in range(L):
        wih_ref, bgi_ref, whh_ref, bhn_ref = layer_refs[4 * l:4 * (l + 1)]
        last = l == L - 1

        # Hoisted input->hidden projection: ONE matmul over all T timesteps and all
        # 6 (direction, gate) blocks packed along the lane dim.
        X = x_ref[0] if l == 0 else seq_scr[...]
        gi_scr[...] = (jnp.dot(X, wih_ref[...], preferred_element_type=jnp.float32)
                       + bgi_ref[...])

        whh_f = whh_ref[0]
        whh_b = whh_ref[1]
        bhn_f = bhn_ref[0]
        bhn_b = bhn_ref[1]
        hf = jnp.zeros((BBE, H), jnp.float32)
        hb = jnp.zeros((BBE, H), jnp.float32)

        # Fully unrolled recurrence (T static & small): two MXU pushes per step.
        for t in range(T):
            tb = T - 1 - t
            gi_f = gi_scr[t * BBE:(t + 1) * BBE, :]
            gh_f = jnp.dot(hf, whh_f, preferred_element_type=jnp.float32) + bhn_f
            hf = gate_step(gi_f, 0, gh_f, hf)

            gi_b = gi_scr[tb * BBE:(tb + 1) * BBE, :]
            gh_b = jnp.dot(hb, whh_b, preferred_element_type=jnp.float32) + bhn_b
            hb = gate_step(gi_b, H3, gh_b, hb)

            if not last:
                # Next layer's input sequence: fwd in lanes [0:H], bwd in [H:2H].
                seq_scr[t * BBE:(t + 1) * BBE, 0:H] = hf
                seq_scr[tb * BBE:(tb + 1) * BBE, H:H2] = hb

    # ---- graph-topology max-pool head (node embeddings never round-trip HBM) ----
    w_top = wblk_ref[0]                      # W[:H, :]  (H, 2H)
    w_bot = wblk_ref[1]                      # W[H:, :]  (H, 2H)
    bpool = bpool_ref[...]                   # (E, 1)
    wl_f = wl_ref[0]                         # (H, 1)
    wl_b = wl_ref[1]                         # (H, 1)

    logits = []
    for bb in range(BB):
        hf_s = hf[bb * E:(bb + 1) * E, :]    # (E, H)
        hb_s = hb[bb * E:(bb + 1) * E, :]    # (E, H)
        A_s = a_ref[0, bb]                   # (E, E)
        AHf = jnp.dot(A_s, hf_s, preferred_element_type=jnp.float32)
        AHb = jnp.dot(A_s, hb_s, preferred_element_type=jnp.float32)
        S = jnp.maximum(
            jnp.dot(AHf, w_top, preferred_element_type=jnp.float32)
            + jnp.dot(AHb, w_bot, preferred_element_type=jnp.float32)
            + bpool, 0.0)                    # (E, 2H)

        # first-occurrence argmax over nodes + select-reduce
        # (matches torch.argmax + scatter + mul + sum)
        row_ids = jax.lax.broadcasted_iota(jnp.int32, S.shape, 0)
        mx = jnp.max(S, axis=0, keepdims=True)
        first = jnp.min(jnp.where(S == mx, row_ids, E), axis=0, keepdims=True)
        mask = row_ids == first              # (E, 2H)
        v_f = jnp.sum(jnp.where(mask[:, 0:H], hf_s, 0.0), axis=0, keepdims=True)
        v_b = jnp.sum(jnp.where(mask[:, H:H2], hb_s, 0.0), axis=0, keepdims=True)
        logits.append(jnp.dot(v_f, wl_f, preferred_element_type=jnp.float32)
                      + jnp.dot(v_b, wl_b, preferred_element_type=jnp.float32))

    out_ref[0] = logits[0] if BB == 1 else jnp.concatenate(logits, axis=-1)


# ----------------------------------------------------------------------------
# Parameter packing: (6, Fin, Hd)-style per-gate params -> lane-packed layout.
# ----------------------------------------------------------------------------
def _pack_layer(lp, Hd):
    fin = lp["wih"].shape[1]
    wih = jnp.transpose(lp["wih"], (1, 0, 2)).reshape(fin, 6 * Hd)
    rz_mask = jnp.array([1., 1., 0., 1., 1., 0.], jnp.float32).reshape(6, 1, 1)
    n_mask = 1.0 - rz_mask
    bgi = jnp.transpose(lp["bih"] + rz_mask * lp["bhh"], (1, 0, 2)).reshape(1, 6 * Hd)
    whh = jnp.transpose(lp["whh"].reshape(2, 3, Hd, Hd),
                        (0, 2, 1, 3)).reshape(2, Hd, 3 * Hd)
    bhn = jnp.transpose((n_mask * lp["bhh"]).reshape(2, 3, 1, Hd),
                        (0, 2, 1, 3)).reshape(2, 1, 3 * Hd)
    return wih, bgi, whh, bhn


# ----------------------------------------------------------------------------
# Model glue
# ----------------------------------------------------------------------------
def init_params(key, E, F, Hd, num_layers):
    params = {"hidden_dim": Hd, "num_layers": num_layers, "gru": []}
    bound = 1.0 / math.sqrt(Hd)
    k = key
    for l in range(num_layers):
        fin = F if l == 0 else 2 * Hd
        k, k1, k2, k3, k4 = jax.random.split(k, 5)
        params["gru"].append({
            # leading axis = [fwd r, fwd z, fwd n, bwd r, bwd z, bwd n]
            "wih": jax.random.uniform(k1, (6, fin, Hd), jnp.float32, -bound, bound),
            "whh": jax.random.uniform(k2, (6, Hd, Hd), jnp.float32, -bound, bound),
            "bih": jax.random.uniform(k3, (6, 1, Hd), jnp.float32, -bound, bound),
            "bhh": jax.random.uniform(k4, (6, 1, Hd), jnp.float32, -bound, bound),
        })
    k, kW, kb, kl = jax.random.split(k, 4)
    params["W"] = jax.random.normal(kW, (2 * Hd, 2 * Hd), jnp.float32)
    params["b"] = jax.random.normal(kb, (E, 1), jnp.float32)
    params["W_logit"] = jax.random.normal(kl, (2 * Hd,), jnp.float32)
    return params


@functools.partial(jax.jit, static_argnames=("T", "E", "Hd", "num_layers"))
def _forward_impl(gru_params, W, b, wl, x_batch, adj_batch, *, T, E, Hd, num_layers):
    B, F = x_batch.shape[0], x_batch.shape[-1]
    G = _num_batch_blocks(B)
    BB = B // G
    BBE = BB * E

    # Row order within a block is (t, sample, node) so the recurrence slices BBE
    # contiguous rows per timestep.
    x = jnp.transpose(x_batch.astype(jnp.float32), (2, 0, 1, 3))        # (T,B,E,F)
    x = x.reshape(T, G, BB, E, F).transpose(1, 0, 2, 3, 4).reshape(G, T * BBE, F)
    A = adj_batch.astype(jnp.float32).reshape(G, BB, E, E)

    packed = []
    in_specs = [
        pl.BlockSpec((1, T * BBE, F), lambda g: (g, 0, 0)),
        pl.BlockSpec((1, BB, E, E), lambda g: (g, 0, 0, 0)),
    ]
    for l in range(num_layers):
        fin = F if l == 0 else 2 * Hd
        wih, bgi, whh, bhn = _pack_layer(gru_params[l], Hd)
        packed += [wih, bgi, whh, bhn]
        in_specs += [
            pl.BlockSpec((fin, 6 * Hd), lambda g: (0, 0)),
            pl.BlockSpec((1, 6 * Hd), lambda g: (0, 0)),
            pl.BlockSpec((2, Hd, 3 * Hd), lambda g: (0, 0, 0)),
            pl.BlockSpec((2, 1, 3 * Hd), lambda g: (0, 0, 0)),
        ]
    W_blocks = W.reshape(2, Hd, 2 * Hd)          # [W[:H,:], W[H:,:]]
    wl2 = wl.reshape(2, Hd, 1)                   # [W_logit[:H], W_logit[H:]]
    in_specs += [
        pl.BlockSpec((2, Hd, 2 * Hd), lambda g: (0, 0, 0)),
        pl.BlockSpec((E, 1), lambda g: (0, 0)),
        pl.BlockSpec((2, Hd, 1), lambda g: (0, 0, 0)),
    ]

    kernel = functools.partial(fused_gru_pool_kernel, T=T, E=E, BB=BB, Hd=Hd,
                               L=num_layers)
    out = pl.pallas_call(
        kernel,
        out_shape=jax.ShapeDtypeStruct((G, 1, BB), jnp.float32),
        grid=(G,),
        in_specs=in_specs,
        out_specs=pl.BlockSpec((1, 1, BB), lambda g: (g, 0, 0)),
        scratch_shapes=[pltpu.VMEM((T * BBE, 6 * Hd), jnp.float32),   # gi projections
                        pltpu.VMEM((T * BBE, 2 * Hd), jnp.float32)],  # layer sequence
        compiler_params=pltpu.CompilerParams(dimension_semantics=("parallel",)),
    )(x, A, *packed, W_blocks, b, wl2)
    return out.reshape(B)


def main_model_forward(params, input_seq_batch, adjacency_matrix_batch):
    B, E, T, F = input_seq_batch.shape
    return _forward_impl(params["gru"], params["W"], params["b"], params["W_logit"],
                         input_seq_batch, adjacency_matrix_batch,
                         T=T, E=E, Hd=params["hidden_dim"],
                         num_layers=params["num_layers"])


# ----------------------------------------------------------------------------
# Pure-JAX reference (same math, no Pallas) used to validate the kernel.
# ----------------------------------------------------------------------------
def _ref_gru_dir(x_tm, wih, whh, bih, bhh):
    E = x_tm.shape[1]
    Hd = whh.shape[-1]

    def step(h, x_t):
        r = jax.nn.sigmoid(x_t @ wih[0] + bih[0] + h @ whh[0] + bhh[0])
        z = jax.nn.sigmoid(x_t @ wih[1] + bih[1] + h @ whh[1] + bhh[1])
        n = jnp.tanh(x_t @ wih[2] + bih[2] + r * (h @ whh[2] + bhh[2]))
        h_new = (1.0 - z) * n + z * h
        return h_new, h_new

    _, outs = jax.lax.scan(step, jnp.zeros((E, Hd), jnp.float32), x_tm)
    return outs


def _ref_forward(params, x_batch, adj_batch):
    L = params["num_layers"]
    logits = []
    for i in range(x_batch.shape[0]):
        inp = jnp.transpose(x_batch[i], (1, 0, 2)).astype(jnp.float32)   # (T, E, F)
        h_final = None
        for l in range(L):
            p = params["gru"][l]
            out_f = _ref_gru_dir(inp, p["wih"][0:3], p["whh"][0:3],
                                 p["bih"][0:3], p["bhh"][0:3])
            out_b_rev = _ref_gru_dir(jnp.flip(inp, 0), p["wih"][3:6], p["whh"][3:6],
                                     p["bih"][3:6], p["bhh"][3:6])
            inp = jnp.concatenate([out_f, jnp.flip(out_b_rev, 0)], axis=-1)
            h_final = jnp.concatenate([out_f[-1], out_b_rev[-1]], axis=-1)   # (E, 2H)
        A = adj_batch[i].astype(jnp.float32)
        S = jax.nn.relu(A @ h_final @ params["W"] + params["b"])
        idx = jnp.argmax(S, axis=0)
        mask = jax.nn.one_hot(idx, A.shape[0], axis=0, dtype=jnp.float32)
        v = jnp.sum(mask * h_final, axis=0)
        logits.append(v @ params["W_logit"])
    return jnp.stack(logits, 0)


if __name__ == "__main__":
    # small shapes consistent with the module's forward
    B, E, F, Hd, T, num_layers = 2, 8, 4, 16, 8, 2

    key = jax.random.PRNGKey(0)
    k_params, k_x, k_a = jax.random.split(key, 3)
    params = init_params(k_params, E, F, Hd, num_layers)

    input_seq_batch = jax.random.normal(k_x, (B, E, T, F), jnp.float32)
    adjacency_matrix_batch = (jax.random.uniform(k_a, (B, E, E)) > 0.5).astype(jnp.float32)

    logits = jax.block_until_ready(
        main_model_forward(params, input_seq_batch, adjacency_matrix_batch))
    ref = jax.block_until_ready(
        _ref_forward(params, input_seq_batch, adjacency_matrix_batch))

    assert logits.shape == (B,)
    assert jnp.allclose(logits, ref, rtol=2e-3, atol=2e-3), (logits, ref)

    print("KERNEL_OK")
</pallas_src>

<mosaic_0001>
module attributes {stable_mosaic.version = 11 : i64} {
  func.func @fused_gru_pool_kernel(%arg0: i32, %arg1: memref<1x128x4xf32, #tpu.memory_space<vmem>>, %arg2: memref<1x2x8x8xf32, #tpu.memory_space<vmem>>, %arg3: memref<4x96xf32, #tpu.memory_space<vmem>>, %arg4: memref<1x96xf32, #tpu.memory_space<vmem>>, %arg5: memref<2x16x48xf32, #tpu.memory_space<vmem>>, %arg6: memref<2x1x48xf32, #tpu.memory_space<vmem>>, %arg7: memref<32x96xf32, #tpu.memory_space<vmem>>, %arg8: memref<1x96xf32, #tpu.memory_space<vmem>>, %arg9: memref<2x16x48xf32, #tpu.memory_space<vmem>>, %arg10: memref<2x1x48xf32, #tpu.memory_space<vmem>>, %arg11: memref<2x16x32xf32, #tpu.memory_space<vmem>>, %arg12: memref<8x1xf32, #tpu.memory_space<vmem>>, %arg13: memref<2x16x1xf32, #tpu.memory_space<vmem>>, %arg14: memref<1x1x2xf32, #tpu.memory_space<vmem>>, %arg15: memref<128x96xf32, #tpu.memory_space<vmem>>, %arg16: memref<128x32xf32, #tpu.memory_space<vmem>>) attributes {dimension_semantics = [#tpu.dimension_semantics<parallel>], iteration_bounds = array<i64: 1>, scalar_prefetch = 0 : i64, scratch_operands = 2 : i64, tpu.core_type = #tpu.core_type<tc>, window_params = [{transform_indices = @transform_0, window_bounds = array<i64: 1, 128, 4>}, {transform_indices = @transform_1, window_bounds = array<i64: 1, 2, 8, 8>}, {pipeline_mode = #tpu.pipeline_mode<synchronous>, transform_indices = @transform_2, window_bounds = array<i64: 4, 96>}, {pipeline_mode = #tpu.pipeline_mode<synchronous>, transform_indices = @transform_3, window_bounds = array<i64: 1, 96>}, {pipeline_mode = #tpu.pipeline_mode<synchronous>, transform_indices = @transform_4, window_bounds = array<i64: 2, 16, 48>}, {pipeline_mode = #tpu.pipeline_mode<synchronous>, transform_indices = @transform_5, window_bounds = array<i64: 2, 1, 48>}, {pipeline_mode = #tpu.pipeline_mode<synchronous>, transform_indices = @transform_6, window_bounds = array<i64: 32, 96>}, {pipeline_mode = #tpu.pipeline_mode<synchronous>, transform_indices = @transform_7, window_bounds = array<i64: 1, 96>}, {pipeline_mode = #tpu.pipeline_mode<synchronous>, transform_indices = @transform_8, window_bounds = array<i64: 2, 16, 48>}, {pipeline_mode = #tpu.pipeline_mode<synchronous>, transform_indices = @transform_9, window_bounds = array<i64: 2, 1, 48>}, {pipeline_mode = #tpu.pipeline_mode<synchronous>, transform_indices = @transform_10, window_bounds = array<i64: 2, 16, 32>}, {pipeline_mode = #tpu.pipeline_mode<synchronous>, transform_indices = @transform_11, window_bounds = array<i64: 8, 1>}, {pipeline_mode = #tpu.pipeline_mode<synchronous>, transform_indices = @transform_12, window_bounds = array<i64: 2, 16, 1>}, {transform_indices = @transform_13, window_bounds = array<i64: 1, 1, 2>}]} {
    %c0 = arith.constant 0 : index
    %c0_0 = arith.constant 0 : index
    %c0_1 = arith.constant 0 : index
    %0 = vector.load %arg1[%c0, %c0_0, %c0_1] : memref<1x128x4xf32, #tpu.memory_space<vmem>>, vector<1x128x4xf32>
    %1 = vector.shape_cast %0 : vector<1x128x4xf32> to vector<128x4xf32>
    %c0_2 = arith.constant 0 : index
    %c0_3 = arith.constant 0 : index
    %2 = vector.load %arg3[%c0_2, %c0_3] : memref<4x96xf32, #tpu.memory_space<vmem>>, vector<4x96xf32>
    %cst = arith.constant dense<0.000000e+00> : vector<128x96xf32>
    %3 = tpu.matmul %1, %2, %cst {dimension_numbers = #tpu.dot_dimension_numbers<[1], [0], [0], [1], [0, 0, 1, 1], [], []>} : vector<128x4xf32>, vector<4x96xf32>, vector<128x96xf32> -> vector<128x96xf32>
    %c0_4 = arith.constant 0 : index
    %c0_5 = arith.constant 0 : index
    %4 = vector.load %arg4[%c0_4, %c0_5] : memref<1x96xf32, #tpu.memory_space<vmem>>, vector<1x96xf32>
    %5 = vector.broadcast %4 : vector<1x96xf32> to vector<128x96xf32>
    %6 = arith.addf %3, %5 : vector<128x96xf32>
    %c0_6 = arith.constant 0 : index
    %c0_7 = arith.constant 0 : index
    %7 = vector.load %arg15[%c0_6, %c0_7] : memref<128x96xf32, #tpu.memory_space<vmem>>, vector<128x96xf32>
    tpu.vector_store %arg15[%c0_6, %c0_7], %6 {strides = array<i32>} : memref<128x96xf32, #tpu.memory_space<vmem>>, vector<128x96xf32>,
    %c0_8 = arith.constant 0 : index
    %c0_9 = arith.constant 0 : index
    %c0_10 = arith.constant 0 : index
    %8 = vector.load %arg5[%c0_8, %c0_9, %c0_10] : memref<2x16x48xf32, #tpu.memory_space<vmem>>, vector<1x16x48xf32>
    %9 = vector.shape_cast %8 : vector<1x16x48xf32> to vector<16x48xf32>
    %c1 = arith.constant 1 : index
    %c0_11 = arith.constant 0 : index
    %c0_12 = arith.constant 0 : index
    %10 = vector.load %arg5[%c1, %c0_11, %c0_12] : memref<2x16x48xf32, #tpu.memory_space<vmem>>, vector<1x16x48xf32>
    %11 = vector.shape_cast %10 : vector<1x16x48xf32> to vector<16x48xf32>
    %c0_13 = arith.constant 0 : index
    %c0_14 = arith.constant 0 : index
    %c0_15 = arith.constant 0 : index
    %12 = vector.load %arg6[%c0_13, %c0_14, %c0_15] : memref<2x1x48xf32, #tpu.memory_space<vmem>>, vector<1x1x48xf32>
    %13 = vector.shape_cast %12 : vector<1x1x48xf32> to vector<1x48xf32>
    %c1_16 = arith.constant 1 : index
    %c0_17 = arith.constant 0 : index
    %c0_18 = arith.constant 0 : index
    %14 = vector.load %arg6[%c1_16, %c0_17, %c0_18] : memref<2x1x48xf32, #tpu.memory_space<vmem>>, vector<1x1x48xf32>
    %15 = vector.shape_cast %14 : vector<1x1x48xf32> to vector<1x48xf32>
    %cst_19 = arith.constant 0.000000e+00 : f32
    %16 = vector.broadcast %cst_19 : f32 to vector<16x16xf32>
    %cst_20 = arith.constant 0.000000e+00 : f32
    %17 = vector.broadcast %cst_20 : f32 to vector<16x16xf32>
    %c0_21 = arith.constant 0 : index
    %c0_22 = arith.constant 0 : index
    %18 = vector.load %arg15[%c0_21, %c0_22] : memref<128x96xf32, #tpu.memory_space<vmem>>, vector<16x96xf32>
    %cst_23 = arith.constant dense<0.000000e+00> : vector<16x48xf32>
    %19 = tpu.matmul %16, %9, %cst_23 {dimension_numbers = #tpu.dot_dimension_numbers<[1], [0], [0], [1], [0, 0, 1, 1], [], []>} : vector<16x16xf32>, vector<16x48xf32>, vector<16x48xf32> -> vector<16x48xf32>
    %20 = vector.broadcast %13 : vector<1x48xf32> to vector<16x48xf32>
    %21 = arith.addf %19, %20 : vector<16x48xf32>
    %22 = vector.extract_strided_slice %18 {offsets = [0, 0], sizes = [16, 16], strides = [1, 1]} : vector<16x96xf32> to vector<16x16xf32>
    %23 = vector.extract_strided_slice %21 {offsets = [0, 0], sizes = [16, 16], strides = [1, 1]} : vector<16x48xf32> to vector<16x16xf32>
    %24 = arith.addf %22, %23 : vector<16x16xf32>
    %25 = arith.negf %24 : vector<16x16xf32>
    %26 = math.exp %25 : vector<16x16xf32>
    %cst_24 = arith.constant 1.000000e+00 : f32
    %27 = vector.broadcast %cst_24 : f32 to vector<16x16xf32>
    %28 = arith.addf %27, %26 : vector<16x16xf32>
    %29 = arith.divf %27, %28 : vector<16x16xf32>
    %30 = vector.extract_strided_slice %18 {offsets = [0, 16], sizes = [16, 16], strides = [1, 1]} : vector<16x96xf32> to vector<16x16xf32>
    %31 = vector.extract_strided_slice %21 {offsets = [0, 16], sizes = [16, 16], strides = [1, 1]} : vector<16x48xf32> to vector<16x16xf32>
    %32 = arith.addf %30, %31 : vector<16x16xf32>
    %33 = arith.negf %32 : vector<16x16xf32>
    %34 = math.exp %33 : vector<16x16xf32>
    %cst_25 = arith.constant 1.000000e+00 : f32
    %35 = vector.broadcast %cst_25 : f32 to vector<16x16xf32>
    %36 = arith.addf %35, %34 : vector<16x16xf32>
    %37 = arith.divf %35, %36 : vector<16x16xf32>
    %38 = vector.extract_strided_slice %18 {offsets = [0, 32], sizes = [16, 16], strides = [1, 1]} : vector<16x96xf32> to vector<16x16xf32>
    %39 = vector.extract_strided_slice %21 {offsets = [0, 32], sizes = [16, 16], strides = [1, 1]} : vector<16x48xf32> to vector<16x16xf32>
    %40 = arith.mulf %29, %39 : vector<16x16xf32>
    %41 = arith.addf %38, %40 : vector<16x16xf32>
    %42 = math.tanh %41 : vector<16x16xf32>
    %cst_26 = arith.constant 1.000000e+00 : f32
    %43 = vector.broadcast %cst_26 : f32 to vector<16x16xf32>
    %44 = arith.subf %43, %37 : vector<16x16xf32>
    %45 = arith.mulf %44, %42 : vector<16x16xf32>
    %46 = arith.mulf %37, %16 : vector<16x16xf32>
    %47 = arith.addf %45, %46 : vector<16x16xf32>
    %c112 = arith.constant 112 : index
    %c0_27 = arith.constant 0 : index
    %48 = vector.load %arg15[%c112, %c0_27] : memref<128x96xf32, #tpu.memory_space<vmem>>, vector<16x96xf32>
    %cst_28 = arith.constant dense<0.000000e+00> : vector<16x48xf32>
    %49 = tpu.matmul %17, %11, %cst_28 {dimension_numbers = #tpu.dot_dimension_numbers<[1], [0], [0], [1], [0, 0, 1, 1], [], []>} : vector<16x16xf32>, vector<16x48xf32>, vector<16x48xf32> -> vector<16x48xf32>
    %50 = vector.broadcast %15 : vector<1x48xf32> to vector<16x48xf32>
    %51 = arith.addf %49, %50 : vector<16x48xf32>
    %52 = vector.extract_strided_slice %48 {offsets = [0, 48], sizes = [16, 16], strides = [1, 1]} : vector<16x96xf32> to vector<16x16xf32>
    %53 = vector.extract_strided_slice %51 {offsets = [0, 0], sizes = [16, 16], strides = [1, 1]} : vector<16x48xf32> to vector<16x16xf32>
    %54 = arith.addf %52, %53 : vector<16x16xf32>
    %55 = arith.negf %54 : vector<16x16xf32>
    %56 = math.exp %55 : vector<16x16xf32>
    %cst_29 = arith.constant 1.000000e+00 : f32
    %57 = vector.broadcast %cst_29 : f32 to vector<16x16xf32>
    %58 = arith.addf %57, %56 : vector<16x16xf32>
    %59 = arith.divf %57, %58 : vector<16x16xf32>
    %60 = vector.extract_strided_slice %48 {offsets = [0, 64], sizes = [16, 16], strides = [1, 1]} : vector<16x96xf32> to vector<16x16xf32>
    %61 = vector.extract_strided_slice %51 {offsets = [0, 16], sizes = [16, 16], strides = [1, 1]} : vector<16x48xf32> to vector<16x16xf32>
    %62 = arith.addf %60, %61 : vector<16x16xf32>
    %63 = arith.negf %62 : vector<16x16xf32>
    %64 = math.exp %63 : vector<16x16xf32>
    %cst_30 = arith.constant 1.000000e+00 : f32
    %65 = vector.broadcast %cst_30 : f32 to vector<16x16xf32>
    %66 = arith.addf %65, %64 : vector<16x16xf32>
    %67 = arith.divf %65, %66 : vector<16x16xf32>
    %68 = vector.extract_strided_slice %48 {offsets = [0, 80], sizes = [16, 16], strides = [1, 1]} : vector<16x96xf32> to vector<16x16xf32>
    %69 = vector.extract_strided_slice %51 {offsets = [0, 32], sizes = [16, 16], strides = [1, 1]} : vector<16x48xf32> to vector<16x16xf32>
    %70 = arith.mulf %59, %69 : vector<16x16xf32>
    %71 = arith.addf %68, %70 : vector<16x16xf32>
    %72 = math.tanh %71 : vector<16x16xf32>
    %cst_31 = arith.constant 1.000000e+00 : f32
    %73 = vector.broadcast %cst_31 : f32 to vector<16x16xf32>
    %74 = arith.subf %73, %67 : vector<16x16xf32>
    %75 = arith.mulf %74, %72 : vector<16x16xf32>
    %76 = arith.mulf %67, %17 : vector<16x16xf32>
    %77 = arith.addf %75, %76 : vector<16x16xf32>
    %c0_32 = arith.constant 0 : index
    %c0_33 = arith.constant 0 : index
    %78 = vector.load %arg16[%c0_32, %c0_33] : memref<128x32xf32, #tpu.memory_space<vmem>>, vector<16x16xf32>
    tpu.vector_store %arg16[%c0_32, %c0_33], %47 {strides = array<i32>} : memref<128x32xf32, #tpu.memory_space<vmem>>, vector<16x16xf32>,
    %c112_34 = arith.constant 112 : index
    %c16 = arith.constant 16 : index
    %79 = vector.load %arg16[%c112_34, %c16] : memref<128x32xf32, #tpu.memory_space<vmem>>, vector<16x16xf32>
    tpu.vector_store %arg16[%c112_34, %c16], %77 {strides = array<i32>} : memref<128x32xf32, #tpu.memory_space<vmem>>, vector<16x16xf32>,
    %c16_35 = arith.constant 16 : index
    %c0_36 = arith.constant 0 : index
    %80 = vector.load %arg15[%c16_35, %c0_36] : memref<128x96xf32, #tpu.memory_space<vmem>>, vector<16x96xf32>
    %cst_37 = arith.constant dense<0.000000e+00> : vector<16x48xf32>
    %81 = tpu.matmul %47, %9, %cst_37 {dimension_numbers = #tpu.dot_dimension_numbers<[1], [0], [0], [1], [0, 0, 1, 1], [], []>} : vector<16x16xf32>, vector<16x48xf32>, vector<16x48xf32> -> vector<16x48xf32>
    %82 = vector.broadcast %13 : vector<1x48xf32> to vector<16x48xf32>
    %83 = arith.addf %81, %82 : vector<16x48xf32>
    %84 = vector.extract_strided_slice %80 {offsets = [0, 0], sizes = [16, 16], strides = [1, 1]} : vector<16x96xf32> to vector<16x16xf32>
    %85 = vector.extract_strided_slice %83 {offsets = [0, 0], sizes = [16, 16], strides = [1, 1]} : vector<16x48xf32> to vector<16x16xf32>
    %86 = arith.addf %84, %85 : vector<16x16xf32>
    %87 = arith.negf %86 : vector<16x16xf32>
    %88 = math.exp %87 : vector<16x16xf32>
    %cst_38 = arith.constant 1.000000e+00 : f32
    %89 = vector.broadcast %cst_38 : f32 to vector<16x16xf32>
    %90 = arith.addf %89, %88 : vector<16x16xf32>
    %91 = arith.divf %89, %90 : vector<16x16xf32>
    %92 = vector.extract_strided_slice %80 {offsets = [0, 16], sizes = [16, 16], strides = [1, 1]} : vector<16x96xf32> to vector<16x16xf32>
    %93 = vector.extract_strided_slice %83 {offsets = [0, 16], sizes = [16, 16], strides = [1, 1]} : vector<16x48xf32> to vector<16x16xf32>
    %94 = arith.addf %92, %93 : vector<16x16xf32>
    %95 = arith.negf %94 : vector<16x16xf32>
    %96 = math.exp %95 : vector<16x16xf32>
    %cst_39 = arith.constant 1.000000e+00 : f32
    %97 = vector.broadcast %cst_39 : f32 to vector<16x16xf32>
    %98 = arith.addf %97, %96 : vector<16x16xf32>
    %99 = arith.divf %97, %98 : vector<16x16xf32>
    %100 = vector.extract_strided_slice %80 {offsets = [0, 32], sizes = [16, 16], strides = [1, 1]} : vector<16x96xf32> to vector<16x16xf32>
    %101 = vector.extract_strided_slice %83 {offsets = [0, 32], sizes = [16, 16], strides = [1, 1]} : vector<16x48xf32> to vector<16x16xf32>
    %102 = arith.mulf %91, %101 : vector<16x16xf32>
    %103 = arith.addf %100, %102 : vector<16x16xf32>
    %104 = math.tanh %103 : vector<16x16xf32>
    %cst_40 = arith.constant 1.000000e+00 : f32
    %105 = vector.broadcast %cst_40 : f32 to vector<16x16xf32>
    %106 = arith.subf %105, %99 : vector<16x16xf32>
    %107 = arith.mulf %106, %104 : vector<16x16xf32>
    %108 = arith.mulf %99, %47 : vector<16x16xf32>
    %109 = arith.addf %107, %108 : vector<16x16xf32>
    %c96 = arith.constant 96 : index
    %c0_41 = arith.constant 0 : index
    %110 = vector.load %arg15[%c96, %c0_41] : memref<128x96xf32, #tpu.memory_space<vmem>>, vector<16x96xf32>
    %cst_42 = arith.constant dense<0.000000e+00> : vector<16x48xf32>
    %111 = tpu.matmul %77, %11, %cst_42 {dimension_numbers = #tpu.dot_dimension_numbers<[1], [0], [0], [1], [0, 0, 1, 1], [], []>} : vector<16x16xf32>, vector<16x48xf32>, vector<16x48xf32> -> vector<16x48xf32>
    %112 = vector.broadcast %15 : vector<1x48xf32> to vector<16x48xf32>
    %113 = arith.addf %111, %112 : vector<16x48xf32>
    %114 = vector.extract_strided_slice %110 {offsets = [0, 48], sizes = [16, 16], strides = [1, 1]} : vector<16x96xf32> to vector<16x16xf32>
    %115 = vector.extract_strided_slice %113 {offsets = [0, 0], sizes = [16, 16], strides = [1, 1]} : vector<16x48xf32> to vector<16x16xf32>
    %116 = arith.addf %114, %115 : vector<16x16xf32>
    %117 = arith.negf %116 : vector<16x16xf32>
    %118 = math.exp %117 : vector<16x16xf32>
    %cst_43 = arith.constant 1.000000e+00 : f32
    %119 = vector.broadcast %cst_43 : f32 to vector<16x16xf32>
    %120 = arith.addf %119, %118 : vector<16x16xf32>
    %121 = arith.divf %119, %120 : vector<16x16xf32>
    %122 = vector.extract_strided_slice %110 {offsets = [0, 64], sizes = [16, 16], strides = [1, 1]} : vector<16x96xf32> to vector<16x16xf32>
    %123 = vector.extract_strided_slice %113 {offsets = [0, 16], sizes = [16, 16], strides = [1, 1]} : vector<16x48xf32> to vector<16x16xf32>
    %124 = arith.addf %122, %123 : vector<16x16xf32>
    %125 = arith.negf %124 : vector<16x16xf32>
    %126 = math.exp %125 : vector<16x16xf32>
    %cst_44 = arith.constant 1.000000e+00 : f32
    %127 = vector.broadcast %cst_44 : f32 to vector<16x16xf32>
    %128 = arith.addf %127, %126 : vector<16x16xf32>
    %129 = arith.divf %127, %128 : vector<16x16xf32>
    %130 = vector.extract_strided_slice %110 {offsets = [0, 80], sizes = [16, 16], strides = [1, 1]} : vector<16x96xf32> to vector<16x16xf32>
    %131 = vector.extract_strided_slice %113 {offsets = [0, 32], sizes = [16, 16], strides = [1, 1]} : vector<16x48xf32> to vector<16x16xf32>
    %132 = arith.mulf %121, %131 : vector<16x16xf32>
    %133 = arith.addf %130, %132 : vector<16x16xf32>
    %134 = math.tanh %133 : vector<16x16xf32>
    %cst_45 = arith.constant 1.000000e+00 : f32
    %135 = vector.broadcast %cst_45 : f32 to vector<16x16xf32>
    %136 = arith.subf %135, %129 : vector<16x16xf32>
    %137 = arith.mulf %136, %134 : vector<16x16xf32>
    %138 = arith.mulf %129, %77 : vector<16x16xf32>
    %139 = arith.addf %137, %138 : vector<16x16xf32>
    %c16_46 = arith.constant 16 : index
    %c0_47 = arith.constant 0 : index
    %140 = vector.load %arg16[%c16_46, %c0_47] : memref<128x32xf32, #tpu.memory_space<vmem>>, vector<16x16xf32>
    tpu.vector_store %arg16[%c16_46, %c0_47], %109 {strides = array<i32>} : memref<128x32xf32, #tpu.memory_space<vmem>>, vector<16x16xf32>,
    %c96_48 = arith.constant 96 : index
    %c16_49 = arith.constant 16 : index
    %141 = vector.load %arg16[%c96_48, %c16_49] : memref<128x32xf32, #tpu.memory_space<vmem>>, vector<16x16xf32>
    tpu.vector_store %arg16[%c96_48, %c16_49], %139 {strides = array<i32>} : memref<128x32xf32, #tpu.memory_space<vmem>>, vector<16x16xf32>,
    %c32 = arith.constant 32 : index
    %c0_50 = arith.constant 0 : index
    %142 = vector.load %arg15[%c32, %c0_50] : memref<128x96xf32, #tpu.memory_space<vmem>>, vector<16x96xf32>
    %cst_51 = arith.constant dense<0.000000e+00> : vector<16x48xf32>
    %143 = tpu.matmul %109, %9, %cst_51 {dimension_numbers = #tpu.dot_dimension_numbers<[1], [0], [0], [1], [0, 0, 1, 1], [], []>} : vector<16x16xf32>, vector<16x48xf32>, vector<16x48xf32> -> vector<16x48xf32>
    %144 = vector.broadcast %13 : vector<1x48xf32> to vector<16x48xf32>
    %145 = arith.addf %143, %144 : vector<16x48xf32>
    %146 = vector.extract_strided_slice %142 {offsets = [0, 0], sizes = [16, 16], strides = [1, 1]} : vector<16x96xf32> to vector<16x16xf32>
    %147 = vector.extract_strided_slice %145 {offsets = [0, 0], sizes = [16, 16], strides = [1, 1]} : vector<16x48xf32> to vector<16x16xf32>
    %148 = arith.addf %146, %147 : vector<16x16xf32>
    %149 = arith.negf %148 : vector<16x16xf32>
    %150 = math.exp %149 : vector<16x16xf32>
    %cst_52 = arith.constant 1.000000e+00 : f32
    %151 = vector.broadcast %cst_52 : f32 to vector<16x16xf32>
    %152 = arith.addf %151, %150 : vector<16x16xf32>
    %153 = arith.divf %151, %152 : vector<16x16xf32>
    %154 = vector.extract_strided_slice %142 {offsets = [0, 16], sizes = [16, 16], strides = [1, 1]} : vector<16x96xf32> to vector<16x16xf32>
    %155 = vector.extract_strided_slice %145 {offsets = [0, 16], sizes = [16, 16], strides = [1, 1]} : vector<16x48xf32> to vector<16x16xf32>
    %156 = arith.addf %154, %155 : vector<16x16xf32>
    %157 = arith.negf %156 : vector<16x16xf32>
    %158 = math.exp %157 : vector<16x16xf32>
    %cst_53 = arith.constant 1.000000e+00 : f32
    %159 = vector.broadcast %cst_53 : f32 to vector<16x16xf32>
    %160 = arith.addf %159, %158 : vector<16x16xf32>
    %161 = arith.divf %159, %160 : vector<16x16xf32>
    %162 = vector.extract_strided_slice %142 {offsets = [0, 32], sizes = [16, 16], strides = [1, 1]} : vector<16x96xf32> to vector<16x16xf32>
    %163 = vector.extract_strided_slice %145 {offsets = [0, 32], sizes = [16, 16], strides = [1, 1]} : vector<16x48xf32> to vector<16x16xf32>
    %164 = arith.mulf %153, %163 : vector<16x16xf32>
    %165 = arith.addf %162, %164 : vector<16x16xf32>
    %166 = math.tanh %165 : vector<16x16xf32>
    %cst_54 = arith.constant 1.000000e+00 : f32
    %167 = vector.broadcast %cst_54 : f32 to vector<16x16xf32>
    %168 = arith.subf %167, %161 : vector<16x16xf32>
    %169 = arith.mulf %168, %166 : vector<16x16xf32>
    %170 = arith.mulf %161, %109 : vector<16x16xf32>
    %171 = arith.addf %169, %170 : vector<16x16xf32>
    %c80 = arith.constant 80 : index
    %c0_55 = arith.constant 0 : index
    %172 = vector.load %arg15[%c80, %c0_55] : memref<128x96xf32, #tpu.memory_space<vmem>>, vector<16x96xf32>
    %cst_56 = arith.constant dense<0.000000e+00> : vector<16x48xf32>
    %173 = tpu.matmul %139, %11, %cst_56 {dimension_numbers = #tpu.dot_dimension_numbers<[1], [0], [0], [1], [0, 0, 1, 1], [], []>} : vector<16x16xf32>, vector<16x48xf32>, vector<16x48xf32> -> vector<16x48xf32>
    %174 = vector.broadcast %15 : vector<1x48xf32> to vector<16x48xf32>
    %175 = arith.addf %173, %174 : vector<16x48xf32>
    %176 = vector.extract_strided_slice %172 {offsets = [0, 48], sizes = [16, 16], strides = [1, 1]} : vector<16x96xf32> to vector<16x16xf32>
    %177 = vector.extract_strided_slice %175 {offsets = [0, 0], sizes = [16, 16], strides = [1, 1]} : vector<16x48xf32> to vector<16x16xf32>
    %178 = arith.addf %176, %177 : vector<16x16xf32>
    %179 = arith.negf %178 : vector<16x16xf32>
    %180 = math.exp %179 : vector<16x16xf32>
    %cst_57 = arith.constant 1.000000e+00 : f32
    %181 = vector.broadcast %cst_57 : f32 to vector<16x16xf32>
    %182 = arith.addf %181, %180 : vector<16x16xf32>
    %183 = arith.divf %181, %182 : vector<16x16xf32>
    %184 = vector.extract_strided_slice %172 {offsets = [0, 64], sizes = [16, 16], strides = [1, 1]} : vector<16x96xf32> to vector<16x16xf32>
    %185 = vector.extract_strided_slice %175 {offsets = [0, 16], sizes = [16, 16], strides = [1, 1]} : vector<16x48xf32> to vector<16x16xf32>
    %186 = arith.addf %184, %185 : vector<16x16xf32>
    %187 = arith.negf %186 : vector<16x16xf32>
    %188 = math.exp %187 : vector<16x16xf32>
    %cst_58 = arith.constant 1.000000e+00 : f32
    %189 = vector.broadcast %cst_58 : f32 to vector<16x16xf32>
    %190 = arith.addf %189, %188 : vector<16x16xf32>
    %191 = arith.divf %189, %190 : vector<16x16xf32>
    %192 = vector.extract_strided_slice %172 {offsets = [0, 80], sizes = [16, 16], strides = [1, 1]} : vector<16x96xf32> to vector<16x16xf32>
    %193 = vector.extract_strided_slice %175 {offsets = [0, 32], sizes = [16, 16], strides = [1, 1]} : vector<16x48xf32> to vector<16x16xf32>
    %194 = arith.mulf %183, %193 : vector<16x16xf32>
    %195 = arith.addf %192, %194 : vector<16x16xf32>
    %196 = math.tanh %195 : vector<16x16xf32>
    %cst_59 = arith.constant 1.000000e+00 : f32
    %197 = vector.broadcast %cst_59 : f32 to vector<16x16xf32>
    %198 = arith.subf %197, %191 : vector<16x16xf32>
    %199 = arith.mulf %198, %196 : vector<16x16xf32>
    %200 = arith.mulf %191, %139 : vector<16x16xf32>
    %201 = arith.addf %199, %200 : vector<16x16xf32>
    %c32_60 = arith.constant 32 : index
    %c0_61 = arith.constant 0 : index
    %202 = vector.load %arg16[%c32_60, %c0_61] : memref<128x32xf32, #tpu.memory_space<vmem>>, vector<16x16xf32>
    tpu.vector_store %arg16[%c32_60, %c0_61], %171 {strides = array<i32>} : memref<128x32xf32, #tpu.memory_space<vmem>>, vector<16x16xf32>,
    %c80_62 = arith.constant 80 : index
    %c16_63 = arith.constant 16 : index
    %203 = vector.load %arg16[%c80_62, %c16_63] : memref<128x32xf32, #tpu.memory_space<vmem>>, vector<16x16xf32>
    tpu.vector_store %arg16[%c80_62, %c16_63], %201 {strides = array<i32>} : memref<128x32xf32, #tpu.memory_space<vmem>>, vector<16x16xf32>,
    %c48 = arith.constant 48 : index
    %c0_64 = arith.constant 0 : index
    %204 = vector.load %arg15[%c48, %c0_64] : memref<128x96xf32, #tpu.memory_space<vmem>>, vector<16x96xf32>
    %cst_65 = arith.constant dense<0.000000e+00> : vector<16x48xf32>
    %205 = tpu.matmul %171, %9, %cst_65 {dimension_numbers = #tpu.dot_dimension_numbers<[1], [0], [0], [1], [0, 0, 1, 1], [], []>} : vector<16x16xf32>, vector<16x48xf32>, vector<16x48xf32> -> vector<16x48xf32>
    %206 = vector.broadcast %13 : vector<1x48xf32> to vector<16x48xf32>
    %207 = arith.addf %205, %206 : vector<16x48xf32>
    %208 = vector.extract_strided_slice %204 {offsets = [0, 0], sizes = [16, 16], strides = [1, 1]} : vector<16x96xf32> to vector<16x16xf32>
    %209 = vector.extract_strided_slice %207 {offsets = [0, 0], sizes = [16, 16], strides = [1, 1]} : vector<16x48xf32> to vector<16x16xf32>
    %210 = arith.addf %208, %209 : vector<16x16xf32>
    %211 = arith.negf %210 : vector<16x16xf32>
    %212 = math.exp %211 : vector<16x16xf32>
    %cst_66 = arith.constant 1.000000e+00 : f32
    %213 = vector.broadcast %cst_66 : f32 to vector<16x16xf32>
    %214 = arith.addf %213, %212 : vector<16x16xf32>
    %215 = arith.divf %213, %214 : vector<16x16xf32>
    %216 = vector.extract_strided_slice %204 {offsets = [0, 16], sizes = [16, 16], strides = [1, 1]} : vector<16x96xf32> to vector<16x16xf32>
    %217 = vector.extract_strided_slice %207 {offsets = [0, 16], sizes = [16, 16], strides = [1, 1]} : vector<16x48xf32> to vector<16x16xf32>
    %218 = arith.addf %216, %217 : vector<16x16xf32>
    %219 = arith.negf %218 : vector<16x16xf32>
    %220 = math.exp %219 : vector<16x16xf32>
    %cst_67 = arith.constant 1.000000e+00 : f32
    %221 = vector.broadcast %cst_67 : f32 to vector<16x16xf32>
    %222 = arith.addf %221, %220 : vector<16x16xf32>
    %223 = arith.divf %221, %222 : vector<16x16xf32>
    %224 = vector.extract_strided_slice %204 {offsets = [0, 32], sizes = [16, 16], strides = [1, 1]} : vector<16x96xf32> to vector<16x16xf32>
    %225 = vector.extract_strided_slice %207 {offsets = [0, 32], sizes = [16, 16], strides = [1, 1]} : vector<16x48xf32> to vector<16x16xf32>
    %226 = arith.mulf %215, %225 : vector<16x16xf32>
    %227 = arith.addf %224, %226 : vector<16x16xf32>
    %228 = math.tanh %227 : vector<16x16xf32>
    %cst_68 = arith.constant 1.000000e+00 : f32
    %229 = vector.broadcast %cst_68 : f32 to vector<16x16xf32>
    %230 = arith.subf %229, %223 : vector<16x16xf32>
    %231 = arith.mulf %230, %228 : vector<16x16xf32>
    %232 = arith.mulf %223, %171 : vector<16x16xf32>
    %233 = arith.addf %231, %232 : vector<16x16xf32>
    %c64 = arith.constant 64 : index
    %c0_69 = arith.constant 0 : index
    %234 = vector.load %arg15[%c64, %c0_69] : memref<128x96xf32, #tpu.memory_space<vmem>>, vector<16x96xf32>
    %cst_70 = arith.constant dense<0.000000e+00> : vector<16x48xf32>
    %235 = tpu.matmul %201, %11, %cst_70 {dimension_numbers = #tpu.dot_dimension_numbers<[1], [0], [0], [1], [0, 0, 1, 1], [], []>} : vector<16x16xf32>, vector<16x48xf32>, vector<16x48xf32> -> vector<16x48xf32>
    %236 = vector.broadcast %15 : vector<1x48xf32> to vector<16x48xf32>
    %237 = arith.addf %235, %236 : vector<16x48xf32>
    %238 = vector.extract_strided_slice %234 {offsets = [0, 48], sizes = [16, 16], strides = [1, 1]} : vector<16x96xf32> to vector<16x16xf32>
    %239 = vector.extract_strided_slice %237 {offsets = [0, 0], sizes = [16, 16], strides = [1, 1]} : vector<16x48xf32> to vector<16x16xf32>
    %240 = arith.addf %238, %239 : vector<16x16xf32>
    %241 = arith.negf %240 : vector<16x16xf32>
    %242 = math.exp %241 : vector<16x16xf32>
    %cst_71 = arith.constant 1.000000e+00 : f32
    %243 = vector.broadcast %cst_71 : f32 to vector<16x16xf32>
    %244 = arith.addf %243, %242 : vector<16x16xf32>
    %245 = arith.divf %243, %244 : vector<16x16xf32>
    %246 = vector.extract_strided_slice %234 {offsets = [0, 64], sizes = [16, 16], strides = [1, 1]} : vector<16x96xf32> to vector<16x16xf32>
    %247 = vector.extract_strided_slice %237 {offsets = [0, 16], sizes = [16, 16], strides = [1, 1]} : vector<16x48xf32> to vector<16x16xf32>
    %248 = arith.addf %246, %247 : vector<16x16xf32>
    %249 = arith.negf %248 : vector<16x16xf32>
    %250 = math.exp %249 : vector<16x16xf32>
    %cst_72 = arith.constant 1.000000e+00 : f32
    %251 = vector.broadcast %cst_72 : f32 to vector<16x16xf32>
    %252 = arith.addf %251, %250 : vector<16x16xf32>
    %253 = arith.divf %251, %252 : vector<16x16xf32>
    %254 = vector.extract_strided_slice %234 {offsets = [0, 80], sizes = [16, 16], strides = [1, 1]} : vector<16x96xf32> to vector<16x16xf32>
    %255 = vector.extract_strided_slice %237 {offsets = [0, 32], sizes = [16, 16], strides = [1, 1]} : vector<16x48xf32> to vector<16x16xf32>
    %256 = arith.mulf %245, %255 : vector<16x16xf32>
    %257 = arith.addf %254, %256 : vector<16x16xf32>
    %258 = math.tanh %257 : vector<16x16xf32>
    %cst_73 = arith.constant 1.000000e+00 : f32
    %259 = vector.broadcast %cst_73 : f32 to vector<16x16xf32>
    %260 = arith.subf %259, %253 : vector<16x16xf32>
    %261 = arith.mulf %260, %258 : vector<16x16xf32>
    %262 = arith.mulf %253, %201 : vector<16x16xf32>
    %263 = arith.addf %261, %262 : vector<16x16xf32>
    %c48_74 = arith.constant 48 : index
    %c0_75 = arith.constant 0 : index
    %264 = vector.load %arg16[%c48_74, %c0_75] : memref<128x32xf32, #tpu.memory_space<vmem>>, vector<16x16xf32>
    tpu.vector_store %arg16[%c48_74, %c0_75], %233 {strides = array<i32>} : memref<128x32xf32, #tpu.memory_space<vmem>>, vector<16x16xf32>,
    %c64_76 = arith.constant 64 : index
    %c16_77 = arith.constant 16 : index
    %265 = vector.load %arg16[%c64_76, %c16_77] : memref<128x32xf32, #tpu.memory_space<vmem>>, vector<16x16xf32>
    tpu.vector_store %arg16[%c64_76, %c16_77], %263 {strides = array<i32>} : memref<128x32xf32, #tpu.memory_space<vmem>>, vector<16x16xf32>,
    %c64_78 = arith.constant 64 : index
    %c0_79 = arith.constant 0 : index
    %266 = vector.load %arg15[%c64_78, %c0_79] : memref<128x96xf32, #tpu.memory_space<vmem>>, vector<16x96xf32>
    %cst_80 = arith.constant dense<0.000000e+00> : vector<16x48xf32>
    %267 = tpu.matmul %233, %9, %cst_80 {dimension_numbers = #tpu.dot_dimension_numbers<[1], [0], [0], [1], [0, 0, 1, 1], [], []>} : vector<16x16xf32>, vector<16x48xf32>, vector<16x48xf32> -> vector<16x48xf32>
    %268 = vector.broadcast %13 : vector<1x48xf32> to vector<16x48xf32>
    %269 = arith.addf %267, %268 : vector<16x48xf32>
    %270 = vector.extract_strided_slice %266 {offsets = [0, 0], sizes = [16, 16], strides = [1, 1]} : vector<16x96xf32> to vector<16x16xf32>
    %271 = vector.extract_strided_slice %269 {offsets = [0, 0], sizes = [16, 16], strides = [1, 1]} : vector<16x48xf32> to vector<16x16xf32>
    %272 = arith.addf %270, %271 : vector<16x16xf32>
    %273 = arith.negf %272 : vector<16x16xf32>
    %274 = math.exp %273 : vector<16x16xf32>
    %cst_81 = arith.constant 1.000000e+00 : f32
    %275 = vector.broadcast %cst_81 : f32 to vector<16x16xf32>
    %276 = arith.addf %275, %274 : vector<16x16xf32>
    %277 = arith.divf %275, %276 : vector<16x16xf32>
    %278 = vector.extract_strided_slice %266 {offsets = [0, 16], sizes = [16, 16], strides = [1, 1]} : vector<16x96xf32> to vector<16x16xf32>
    %279 = vector.extract_strided_slice %269 {offsets = [0, 16], sizes = [16, 16], strides = [1, 1]} : vector<16x48xf32> to vector<16x16xf32>
    %280 = arith.addf %278, %279 : vector<16x16xf32>
    %281 = arith.negf %280 : vector<16x16xf32>
    %282 = math.exp %281 : vector<16x16xf32>
    %cst_82 = arith.constant 1.000000e+00 : f32
    %283 = vector.broadcast %cst_82 : f32 to vector<16x16xf32>
    %284 = arith.addf %283, %282 : vector<16x16xf32>
    %285 = arith.divf %283, %284 : vector<16x16xf32>
    %286 = vector.extract_strided_slice %266 {offsets = [0, 32], sizes = [16, 16], strides = [1, 1]} : vector<16x96xf32> to vector<16x16xf32>
    %287 = vector.extract_strided_slice %269 {offsets = [0, 32], sizes = [16, 16], strides = [1, 1]} : vector<16x48xf32> to vector<16x16xf32>
    %288 = arith.mulf %277, %287 : vector<16x16xf32>
    %289 = arith.addf %286, %288 : vector<16x16xf32>
    %290 = math.tanh %289 : vector<16x16xf32>
    %cst_83 = arith.constant 1.000000e+00 : f32
    %291 = vector.broadcast %cst_83 : f32 to vector<16x16xf32>
    %292 = arith.subf %291, %285 : vector<16x16xf32>
    %293 = arith.mulf %292, %290 : vector<16x16xf32>
    %294 = arith.mulf %285, %233 : vector<16x16xf32>
    %295 = arith.addf %293, %294 : vector<16x16xf32>
    %c48_84 = arith.constant 48 : index
    %c0_85 = arith.constant 0 : index
    %296 = vector.load %arg15[%c48_84, %c0_85] : memref<128x96xf32, #tpu.memory_space<vmem>>, vector<16x96xf32>
    %cst_86 = arith.constant dense<0.000000e+00> : vector<16x48xf32>
    %297 = tpu.matmul %263, %11, %cst_86 {dimension_numbers = #tpu.dot_dimension_numbers<[1], [0], [0], [1], [0, 0, 1, 1], [], []>} : vector<16x16xf32>, vector<16x48xf32>, vector<16x48xf32> -> vector<16x48xf32>
    %298 = vector.broadcast %15 : vector<1x48xf32> to vector<16x48xf32>
    %299 = arith.addf %297, %298 : vector<16x48xf32>
    %300 = vector.extract_strided_slice %296 {offsets = [0, 48], sizes = [16, 16], strides = [1, 1]} : vector<16x96xf32> to vector<16x16xf32>
    %301 = vector.extract_strided_slice %299 {offsets = [0, 0], sizes = [16, 16], strides = [1, 1]} : vector<16x48xf32> to vector<16x16xf32>
    %302 = arith.addf %300, %301 : vector<16x16xf32>
    %303 = arith.negf %302 : vector<16x16xf32>
    %304 = math.exp %303 : vector<16x16xf32>
    %cst_87 = arith.constant 1.000000e+00 : f32
    %305 = vector.broadcast %cst_87 : f32 to vector<16x16xf32>
    %306 = arith.addf %305, %304 : vector<16x16xf32>
    %307 = arith.divf %305, %306 : vector<16x16xf32>
    %308 = vector.extract_strided_slice %296 {offsets = [0, 64], sizes = [16, 16], strides = [1, 1]} : vector<16x96xf32> to vector<16x16xf32>
    %309 = vector.extract_strided_slice %299 {offsets = [0, 16], sizes = [16, 16], strides = [1, 1]} : vector<16x48xf32> to vector<16x16xf32>
    %310 = arith.addf %308, %309 : vector<16x16xf32>
    %311 = arith.negf %310 : vector<16x16xf32>
    %312 = math.exp %311 : vector<16x16xf32>
    %cst_88 = arith.constant 1.000000e+00 : f32
    %313 = vector.broadcast %cst_88 : f32 to vector<16x16xf32>
    %314 = arith.addf %313, %312 : vector<16x16xf32>
    %315 = arith.divf %313, %314 : vector<16x16xf32>
    %316 = vector.extract_strided_slice %296 {offsets = [0, 80], sizes = [16, 16], strides = [1, 1]} : vector<16x96xf32> to vector<16x16xf32>
    %317 = vector.extract_strided_slice %299 {offsets = [0, 32], sizes = [16, 16], strides = [1, 1]} : vector<16x48xf32> to vector<16x16xf32>
    %318 = arith.mulf %307, %317 : vector<16x16xf32>
    %319 = arith.addf %316, %318 : vector<16x16xf32>
    %320 = math.tanh %319 : vector<16x16xf32>
    %cst_89 = arith.constant 1.000000e+00 : f32
    %321 = vector.broadcast %cst_89 : f32 to vector<16x16xf32>
    %322 = arith.subf %321, %315 : vector<16x16xf32>
    %323 = arith.mulf %322, %320 : vector<16x16xf32>
    %324 = arith.mulf %315, %263 : vector<16x16xf32>
    %325 = arith.addf %323, %324 : vector<16x16xf32>
    %c64_90 = arith.constant 64 : index
    %c0_91 = arith.constant 0 : index
    %326 = vector.load %arg16[%c64_90, %c0_91] : memref<128x32xf32, #tpu.memory_space<vmem>>, vector<16x16xf32>
    tpu.vector_store %arg16[%c64_90, %c0_91], %295 {strides = array<i32>} : memref<128x32xf32, #tpu.memory_space<vmem>>, vector<16x16xf32>,
    %c48_92 = arith.constant 48 : index
    %c16_93 = arith.constant 16 : index
    %327 = vector.load %arg16[%c48_92, %c16_93] : memref<128x32xf32, #tpu.memory_space<vmem>>, vector<16x16xf32>
    tpu.vector_store %arg16[%c48_92, %c16_93], %325 {strides = array<i32>} : memref<128x32xf32, #tpu.memory_space<vmem>>, vector<16x16xf32>,
    %c80_94 = arith.constant 80 : index
    %c0_95 = arith.constant 0 : index
    %328 = vector.load %arg15[%c80_94, %c0_95] : memref<128x96xf32, #tpu.memory_space<vmem>>, vector<16x96xf32>
    %cst_96 = arith.constant dense<0.000000e+00> : vector<16x48xf32>
    %329 = tpu.matmul %295, %9, %cst_96 {dimension_numbers = #tpu.dot_dimension_numbers<[1], [0], [0], [1], [0, 0, 1, 1], [], []>} : vector<16x16xf32>, vector<16x48xf32>, vector<16x48xf32> -> vector<16x48xf32>
    %330 = vector.broadcast %13 : vector<1x48xf32> to vector<16x48xf32>
    %331 = arith.addf %329, %330 : vector<16x48xf32>
    %332 = vector.extract_strided_slice %328 {offsets = [0, 0], sizes = [16, 16], strides = [1, 1]} : vector<16x96xf32> to vector<16x16xf32>
    %333 = vector.extract_strided_slice %331 {offsets = [0, 0], sizes = [16, 16], strides = [1, 1]} : vector<16x48xf32> to vector<16x16xf32>
    %334 = arith.addf %332, %333 : vector<16x16xf32>
    %335 = arith.negf %334 : vector<16x16xf32>
    %336 = math.exp %335 : vector<16x16xf32>
    %cst_97 = arith.constant 1.000000e+00 : f32
    %337 = vector.broadcast %cst_97 : f32 to vector<16x16xf32>
    %338 = arith.addf %337, %336 : vector<16x16xf32>
    %339 = arith.divf %337, %338 : vector<16x16xf32>
    %340 = vector.extract_strided_slice %328 {offsets = [0, 16], sizes = [16, 16], strides = [1, 1]} : vector<16x96xf32> to vector<16x16xf32>
    %341 = vector.extract_strided_slice %331 {offsets = [0, 16], sizes = [16, 16], strides = [1, 1]} : vector<16x48xf32> to vector<16x16xf32>
    %342 = arith.addf %340, %341 : vector<16x16xf32>
    %343 = arith.negf %342 : vector<16x16xf32>
    %344 = math.exp %343 : vector<16x16xf32>
    %cst_98 = arith.constant 1.000000e+00 : f32
    %345 = vector.broadcast %cst_98 : f32 to vector<16x16xf32>
    %346 = arith.addf %345, %344 : vector<16x16xf32>
    %347 = arith.divf %345, %346 : vector<16x16xf32>
    %348 = vector.extract_strided_slice %328 {offsets = [0, 32], sizes = [16, 16], strides = [1, 1]} : vector<16x96xf32> to vector<16x16xf32>
    %349 = vector.extract_strided_slice %331 {offsets = [0, 32], sizes = [16, 16], strides = [1, 1]} : vector<16x48xf32> to vector<16x16xf32>
    %350 = arith.mulf %339, %349 : vector<16x16xf32>
    %351 = arith.addf %348, %350 : vector<16x16xf32>
    %352 = math.tanh %351 : vector<16x16xf32>
    %cst_99 = arith.constant 1.000000e+00 : f32
    %353 = vector.broadcast %cst_99 : f32 to vector<16x16xf32>
    %354 = arith.subf %353, %347 : vector<16x16xf32>
    %355 = arith.mulf %354, %352 : vector<16x16xf32>
    %356 = arith.mulf %347, %295 : vector<16x16xf32>
    %357 = arith.addf %355, %356 : vector<16x16xf32>
    %c32_100 = arith.constant 32 : index
    %c0_101 = arith.constant 0 : index
    %358 = vector.load %arg15[%c32_100, %c0_101] : memref<128x96xf32, #tpu.memory_space<vmem>>, vector<16x96xf32>
    %cst_102 = arith.constant dense<0.000000e+00> : vector<16x48xf32>
    %359 = tpu.matmul %325, %11, %cst_102 {dimension_numbers = #tpu.dot_dimension_numbers<[1], [0], [0], [1], [0, 0, 1, 1], [], []>} : vector<16x16xf32>, vector<16x48xf32>, vector<16x48xf32> -> vector<16x48xf32>
    %360 = vector.broadcast %15 : vector<1x48xf32> to vector<16x48xf32>
    %361 = arith.addf %359, %360 : vector<16x48xf32>
    %362 = vector.extract_strided_slice %358 {offsets = [0, 48], sizes = [16, 16], strides = [1, 1]} : vector<16x96xf32> to vector<16x16xf32>
    %363 = vector.extract_strided_slice %361 {offsets = [0, 0], sizes = [16, 16], strides = [1, 1]} : vector<16x48xf32> to vector<16x16xf32>
    %364 = arith.addf %362, %363 : vector<16x16xf32>
    %365 = arith.negf %364 : vector<16x16xf32>
    %366 = math.exp %365 : vector<16x16xf32>
    %cst_103 = arith.constant 1.000000e+00 : f32
    %367 = vector.broadcast %cst_103 : f32 to vector<16x16xf32>
    %368 = arith.addf %367, %366 : vector<16x16xf32>
    %369 = arith.divf %367, %368 : vector<16x16xf32>
    %370 = vector.extract_strided_slice %358 {offsets = [0, 64], sizes = [16, 16], strides = [1, 1]} : vector<16x96xf32> to vector<16x16xf32>
    %371 = vector.extract_strided_slice %361 {offsets = [0, 16], sizes = [16, 16], strides = [1, 1]} : vector<16x48xf32> to vector<16x16xf32>
    %372 = arith.addf %370, %371 : vector<16x16xf32>
    %373 = arith.negf %372 : vector<16x16xf32>
    %374 = math.exp %373 : vector<16x16xf32>
    %cst_104 = arith.constant 1.000000e+00 : f32
    %375 = vector.broadcast %cst_104 : f32 to vector<16x16xf32>
    %376 = arith.addf %375, %374 : vector<16x16xf32>
    %377 = arith.divf %375, %376 : vector<16x16xf32>
    %378 = vector.extract_strided_slice %358 {offsets = [0, 80], sizes = [16, 16], strides = [1, 1]} : vector<16x96xf32> to vector<16x16xf32>
    %379 = vector.extract_strided_slice %361 {offsets = [0, 32], sizes = [16, 16], strides = [1, 1]} : vector<16x48xf32> to vector<16x16xf32>
    %380 = arith.mulf %369, %379 : vector<16x16xf32>
    %381 = arith.addf %378, %380 : vector<16x16xf32>
    %382 = math.tanh %381 : vector<16x16xf32>
    %cst_105 = arith.constant 1.000000e+00 : f32
    %383 = vector.broadcast %cst_105 : f32 to vector<16x16xf32>
    %384 = arith.subf %383, %377 : vector<16x16xf32>
    %385 = arith.mulf %384, %382 : vector<16x16xf32>
    %386 = arith.mulf %377, %325 : vector<16x16xf32>
    %387 = arith.addf %385, %386 : vector<16x16xf32>
    %c80_106 = arith.constant 80 : index
    %c0_107 = arith.constant 0 : index
    %388 = vector.load %arg16[%c80_106, %c0_107] : memref<128x32xf32, #tpu.memory_space<vmem>>, vector<16x16xf32>
    tpu.vector_store %arg16[%c80_106, %c0_107], %357 {strides = array<i32>} : memref<128x32xf32, #tpu.memory_space<vmem>>, vector<16x16xf32>,
    %c32_108 = arith.constant 32 : index
    %c16_109 = arith.constant 16 : index
    %389 = vector.load %arg16[%c32_108, %c16_109] : memref<128x32xf32, #tpu.memory_space<vmem>>, vector<16x16xf32>
    tpu.vector_store %arg16[%c32_108, %c16_109], %387 {strides = array<i32>} : memref<128x32xf32, #tpu.memory_space<vmem>>, vector<16x16xf32>,
    %c96_110 = arith.constant 96 : index
    %c0_111 = arith.constant 0 : index
    %390 = vector.load %arg15[%c96_110, %c0_111] : memref<128x96xf32, #tpu.memory_space<vmem>>, vector<16x96xf32>
    %cst_112 = arith.constant dense<0.000000e+00> : vector<16x48xf32>
    %391 = tpu.matmul %357, %9, %cst_112 {dimension_numbers = #tpu.dot_dimension_numbers<[1], [0], [0], [1], [0, 0, 1, 1], [], []>} : vector<16x16xf32>, vector<16x48xf32>, vector<16x48xf32> -> vector<16x48xf32>
    %392 = vector.broadcast %13 : vector<1x48xf32> to vector<16x48xf32>
    %393 = arith.addf %391, %392 : vector<16x48xf32>
    %394 = vector.extract_strided_slice %390 {offsets = [0, 0], sizes = [16, 16], strides = [1, 1]} : vector<16x96xf32> to vector<16x16xf32>
    %395 = vector.extract_strided_slice %393 {offsets = [0, 0], sizes = [16, 16], strides = [1, 1]} : vector<16x48xf32> to vector<16x16xf32>
    %396 = arith.addf %394, %395 : vector<16x16xf32>
    %397 = arith.negf %396 : vector<16x16xf32>
    %398 = math.exp %397 : vector<16x16xf32>
    %cst_113 = arith.constant 1.000000e+00 : f32
    %399 = vector.broadcast %cst_113 : f32 to vector<16x16xf32>
    %400 = arith.addf %399, %398 : vector<16x16xf32>
    %401 = arith.divf %399, %400 : vector<16x16xf32>
    %402 = vector.extract_strided_slice %390 {offsets = [0, 16], sizes = [16, 16], strides = [1, 1]} : vector<16x96xf32> to vector<16x16xf32>
    %403 = vector.extract_strided_slice %393 {offsets = [0, 16], sizes = [16, 16], strides = [1, 1]} : vector<16x48xf32> to vector<16x16xf32>
    %404 = arith.addf %402, %403 : vector<16x16xf32>
    %405 = arith.negf %404 : vector<16x16xf32>
    %406 = math.exp %405 : vector<16x16xf32>
    %cst_114 = arith.constant 1.000000e+00 : f32
    %407 = vector.broadcast %cst_114 : f32 to vector<16x16xf32>
    %408 = arith.addf %407, %406 : vector<16x16xf32>
    %409 = arith.divf %407, %408 : vector<16x16xf32>
    %410 = vector.extract_strided_slice %390 {offsets = [0, 32], sizes = [16, 16], strides = [1, 1]} : vector<16x96xf32> to vector<16x16xf32>
    %411 = vector.extract_strided_slice %393 {offsets = [0, 32], sizes = [16, 16], strides = [1, 1]} : vector<16x48xf32> to vector<16x16xf32>
    %412 = arith.mulf %401, %411 : vector<16x16xf32>
    %413 = arith.addf %410, %412 : vector<16x16xf32>
    %414 = math.tanh %413 : vector<16x16xf32>
    %cst_115 = arith.constant 1.000000e+00 : f32
    %415 = vector.broadcast %cst_115 : f32 to vector<16x16xf32>
    %416 = arith.subf %415, %409 : vector<16x16xf32>
    %417 = arith.mulf %416, %414 : vector<16x16xf32>
    %418 = arith.mulf %409, %357 : vector<16x16xf32>
    %419 = arith.addf %417, %418 : vector<16x16xf32>
    %c16_116 = arith.constant 16 : index
    %c0_117 = arith.constant 0 : index
    %420 = vector.load %arg15[%c16_116, %c0_117] : memref<128x96xf32, #tpu.memory_space<vmem>>, vector<16x96xf32>
    %cst_118 = arith.constant dense<0.000000e+00> : vector<16x48xf32>
    %421 = tpu.matmul %387, %11, %cst_118 {dimension_numbers = #tpu.dot_dimension_numbers<[1], [0], [0], [1], [0, 0, 1, 1], [], []>} : vector<16x16xf32>, vector<16x48xf32>, vector<16x48xf32> -> vector<16x48xf32>
    %422 = vector.broadcast %15 : vector<1x48xf32> to vector<16x48xf32>
    %423 = arith.addf %421, %422 : vector<16x48xf32>
    %424 = vector.extract_strided_slice %420 {offsets = [0, 48], sizes = [16, 16], strides = [1, 1]} : vector<16x96xf32> to vector<16x16xf32>
    %425 = vector.extract_strided_slice %423 {offsets = [0, 0], sizes = [16, 16], strides = [1, 1]} : vector<16x48xf32> to vector<16x16xf32>
    %426 = arith.addf %424, %425 : vector<16x16xf32>
    %427 = arith.negf %426 : vector<16x16xf32>
    %428 = math.exp %427 : vector<16x16xf32>
    %cst_119 = arith.constant 1.000000e+00 : f32
    %429 = vector.broadcast %cst_119 : f32 to vector<16x16xf32>
    %430 = arith.addf %429, %428 : vector<16x16xf32>
    %431 = arith.divf %429, %430 : vector<16x16xf32>
    %432 = vector.extract_strided_slice %420 {offsets = [0, 64], sizes = [16, 16], strides = [1, 1]} : vector<16x96xf32> to vector<16x16xf32>
    %433 = vector.extract_strided_slice %423 {offsets = [0, 16], sizes = [16, 16], strides = [1, 1]} : vector<16x48xf32> to vector<16x16xf32>
    %434 = arith.addf %432, %433 : vector<16x16xf32>
    %435 = arith.negf %434 : vector<16x16xf32>
    %436 = math.exp %435 : vector<16x16xf32>
    %cst_120 = arith.constant 1.000000e+00 : f32
    %437 = vector.broadcast %cst_120 : f32 to vector<16x16xf32>
    %438 = arith.addf %437, %436 : vector<16x16xf32>
    %439 = arith.divf %437, %438 : vector<16x16xf32>
    %440 = vector.extract_strided_slice %420 {offsets = [0, 80], sizes = [16, 16], strides = [1, 1]} : vector<16x96xf32> to vector<16x16xf32>
    %441 = vector.extract_strided_slice %423 {offsets = [0, 32], sizes = [16, 16], strides = [1, 1]} : vector<16x48xf32> to vector<16x16xf32>
    %442 = arith.mulf %431, %441 : vector<16x16xf32>
    %443 = arith.addf %440, %442 : vector<16x16xf32>
    %444 = math.tanh %443 : vector<16x16xf32>
    %cst_121 = arith.constant 1.000000e+00 : f32
    %445 = vector.broadcast %cst_121 : f32 to vector<16x16xf32>
    %446 = arith.subf %445, %439 : vector<16x16xf32>
    %447 = arith.mulf %446, %444 : vector<16x16xf32>
    %448 = arith.mulf %439, %387 : vector<16x16xf32>
    %449 = arith.addf %447, %448 : vector<16x16xf32>
    %c96_122 = arith.constant 96 : index
    %c0_123 = arith.constant 0 : index
    %450 = vector.load %arg16[%c96_122, %c0_123] : memref<128x32xf32, #tpu.memory_space<vmem>>, vector<16x16xf32>
    tpu.vector_store %arg16[%c96_122, %c0_123], %419 {strides = array<i32>} : memref<128x32xf32, #tpu.memory_space<vmem>>, vector<16x16xf32>,
    %c16_124 = arith.constant 16 : index
    %c16_125 = arith.constant 16 : index
    %451 = vector.load %arg16[%c16_124, %c16_125] : memref<128x32xf32, #tpu.memory_space<vmem>>, vector<16x16xf32>
    tpu.vector_store %arg16[%c16_124, %c16_125], %449 {strides = array<i32>} : memref<128x32xf32, #tpu.memory_space<vmem>>, vector<16x16xf32>,
    %c112_126 = arith.constant 112 : index
    %c0_127 = arith.constant 0 : index
    %452 = vector.load %arg15[%c112_126, %c0_127] : memref<128x96xf32, #tpu.memory_space<vmem>>, vector<16x96xf32>
    %cst_128 = arith.constant dense<0.000000e+00> : vector<16x48xf32>
    %453 = tpu.matmul %419, %9, %cst_128 {dimension_numbers = #tpu.dot_dimension_numbers<[1], [0], [0], [1], [0, 0, 1, 1], [], []>} : vector<16x16xf32>, vector<16x48xf32>, vector<16x48xf32> -> vector<16x48xf32>
    %454 = vector.broadcast %13 : vector<1x48xf32> to vector<16x48xf32>
    %455 = arith.addf %453, %454 : vector<16x48xf32>
    %456 = vector.extract_strided_slice %452 {offsets = [0, 0], sizes = [16, 16], strides = [1, 1]} : vector<16x96xf32> to vector<16x16xf32>
    %457 = vector.extract_strided_slice %455 {offsets = [0, 0], sizes = [16, 16], strides = [1, 1]} : vector<16x48xf32> to vector<16x16xf32>
    %458 = arith.addf %456, %457 : vector<16x16xf32>
    %459 = arith.negf %458 : vector<16x16xf32>
    %460 = math.exp %459 : vector<16x16xf32>
    %cst_129 = arith.constant 1.000000e+00 : f32
    %461 = vector.broadcast %cst_129 : f32 to vector<16x16xf32>
    %462 = arith.addf %461, %460 : vector<16x16xf32>
    %463 = arith.divf %461, %462 : vector<16x16xf32>
    %464 = vector.extract_strided_slice %452 {offsets = [0, 16], sizes = [16, 16], strides = [1, 1]} : vector<16x96xf32> to vector<16x16xf32>
    %465 = vector.extract_strided_slice %455 {offsets = [0, 16], sizes = [16, 16], strides = [1, 1]} : vector<16x48xf32> to vector<16x16xf32>
    %466 = arith.addf %464, %465 : vector<16x16xf32>
    %467 = arith.negf %466 : vector<16x16xf32>
    %468 = math.exp %467 : vector<16x16xf32>
    %cst_130 = arith.constant 1.000000e+00 : f32
    %469 = vector.broadcast %cst_130 : f32 to vector<16x16xf32>
    %470 = arith.addf %469, %468 : vector<16x16xf32>
    %471 = arith.divf %469, %470 : vector<16x16xf32>
    %472 = vector.extract_strided_slice %452 {offsets = [0, 32], sizes = [16, 16], strides = [1, 1]} : vector<16x96xf32> to vector<16x16xf32>
    %473 = vector.extract_strided_slice %455 {offsets = [0, 32], sizes = [16, 16], strides = [1, 1]} : vector<16x48xf32> to vector<16x16xf32>
    %474 = arith.mulf %463, %473 : vector<16x16xf32>
    %475 = arith.addf %472, %474 : vector<16x16xf32>
    %476 = math.tanh %475 : vector<16x16xf32>
    %cst_131 = arith.constant 1.000000e+00 : f32
    %477 = vector.broadcast %cst_131 : f32 to vector<16x16xf32>
    %478 = arith.subf %477, %471 : vector<16x16xf32>
    %479 = arith.mulf %478, %476 : vector<16x16xf32>
    %480 = arith.mulf %471, %419 : vector<16x16xf32>
    %481 = arith.addf %479, %480 : vector<16x16xf32>
    %c0_132 = arith.constant 0 : index
    %c0_133 = arith.constant 0 : index
    %482 = vector.load %arg15[%c0_132, %c0_133] : memref<128x96xf32, #tpu.memory_space<vmem>>, vector<16x96xf32>
    %cst_134 = arith.constant dense<0.000000e+00> : vector<16x48xf32>
    %483 = tpu.matmul %449, %11, %cst_134 {dimension_numbers = #tpu.dot_dimension_numbers<[1], [0], [0], [1], [0, 0, 1, 1], [], []>} : vector<16x16xf32>, vector<16x48xf32>, vector<16x48xf32> -> vector<16x48xf32>
    %484 = vector.broadcast %15 : vector<1x48xf32> to vector<16x48xf32>
    %485 = arith.addf %483, %484 : vector<16x48xf32>
    %486 = vector.extract_strided_slice %482 {offsets = [0, 48], sizes = [16, 16], strides = [1, 1]} : vector<16x96xf32> to vector<16x16xf32>
    %487 = vector.extract_strided_slice %485 {offsets = [0, 0], sizes = [16, 16], strides = [1, 1]} : vector<16x48xf32> to vector<16x16xf32>
    %488 = arith.addf %486, %487 : vector<16x16xf32>
    %489 = arith.negf %488 : vector<16x16xf32>
    %490 = math.exp %489 : vector<16x16xf32>
    %cst_135 = arith.constant 1.000000e+00 : f32
    %491 = vector.broadcast %cst_135 : f32 to vector<16x16xf32>
    %492 = arith.addf %491, %490 : vector<16x16xf32>
    %493 = arith.divf %491, %492 : vector<16x16xf32>
    %494 = vector.extract_strided_slice %482 {offsets = [0, 64], sizes = [16, 16], strides = [1, 1]} : vector<16x96xf32> to vector<16x16xf32>
    %495 = vector.extract_strided_slice %485 {offsets = [0, 16], sizes = [16, 16], strides = [1, 1]} : vector<16x48xf32> to vector<16x16xf32>
    %496 = arith.addf %494, %495 : vector<16x16xf32>
    %497 = arith.negf %496 : vector<16x16xf32>
    %498 = math.exp %497 : vector<16x16xf32>
    %cst_136 = arith.constant 1.000000e+00 : f32
    %499 = vector.broadcast %cst_136 : f32 to vector<16x16xf32>
    %500 = arith.addf %499, %498 : vector<16x16xf32>
    %501 = arith.divf %499, %500 : vector<16x16xf32>
    %502 = vector.extract_strided_slice %482 {offsets = [0, 80], sizes = [16, 16], strides = [1, 1]} : vector<16x96xf32> to vector<16x16xf32>
    %503 = vector.extract_strided_slice %485 {offsets = [0, 32], sizes = [16, 16], strides = [1, 1]} : vector<16x48xf32> to vector<16x16xf32>
    %504 = arith.mulf %493, %503 : vector<16x16xf32>
    %505 = arith.addf %502, %504 : vector<16x16xf32>
    %506 = math.tanh %505 : vector<16x16xf32>
    %cst_137 = arith.constant 1.000000e+00 : f32
    %507 = vector.broadcast %cst_137 : f32 to vector<16x16xf32>
    %508 = arith.subf %507, %501 : vector<16x16xf32>
    %509 = arith.mulf %508, %506 : vector<16x16xf32>
    %510 = arith.mulf %501, %449 : vector<16x16xf32>
    %511 = arith.addf %509, %510 : vector<16x16xf32>
    %c112_138 = arith.constant 112 : index
    %c0_139 = arith.constant 0 : index
    %512 = vector.load %arg16[%c112_138, %c0_139] : memref<128x32xf32, #tpu.memory_space<vmem>>, vector<16x16xf32>
    tpu.vector_store %arg16[%c112_138, %c0_139], %481 {strides = array<i32>} : memref<128x32xf32, #tpu.memory_space<vmem>>, vector<16x16xf32>,
    %c0_140 = arith.constant 0 : index
    %c16_141 = arith.constant 16 : index
    %513 = vector.load %arg16[%c0_140, %c16_141] : memref<128x32xf32, #tpu.memory_space<vmem>>, vector<16x16xf32>
    tpu.vector_store %arg16[%c0_140, %c16_141], %511 {strides = array<i32>} : memref<128x32xf32, #tpu.memory_space<vmem>>, vector<16x16xf32>,
    %c0_142 = arith.constant 0 : index
    %c0_143 = arith.constant 0 : index
    %514 = vector.load %arg16[%c0_142, %c0_143] : memref<128x32xf32, #tpu.memory_space<vmem>>, vector<128x32xf32>
    %c0_144 = arith.constant 0 : index
    %c0_145 = arith.constant 0 : index
    %515 = vector.load %arg7[%c0_144, %c0_145] : memref<32x96xf32, #tpu.memory_space<vmem>>, vector<32x96xf32>
    %cst_146 = arith.constant dense<0.000000e+00> : vector<128x96xf32>
    %516 = tpu.matmul %514, %515, %cst_146 {dimension_numbers = #tpu.dot_dimension_numbers<[1], [0], [0], [1], [0, 0, 1, 1], [], []>} : vector<128x32xf32>, vector<32x96xf32>, vector<128x96xf32> -> vector<128x96xf32>
    %c0_147 = arith.constant 0 : index
    %c0_148 = arith.constant 0 : index
    %517 = vector.load %arg8[%c0_147, %c0_148] : memref<1x96xf32, #tpu.memory_space<vmem>>, vector<1x96xf32>
    %518 = vector.broadcast %517 : vector<1x96xf32> to vector<128x96xf32>
    %519 = arith.addf %516, %518 : vector<128x96xf32>
    %c0_149 = arith.constant 0 : index
    %c0_150 = arith.constant 0 : index
    %520 = vector.load %arg15[%c0_149, %c0_150] : memref<128x96xf32, #tpu.memory_space<vmem>>, vector<128x96xf32>
    tpu.vector_store %arg15[%c0_149, %c0_150], %519 {strides = array<i32>} : memref<128x96xf32, #tpu.memory_space<vmem>>, vector<128x96xf32>,
    %c0_151 = arith.constant 0 : index
    %c0_152 = arith.constant 0 : index
    %c0_153 = arith.constant 0 : index
    %521 = vector.load %arg9[%c0_151, %c0_152, %c0_153] : memref<2x16x48xf32, #tpu.memory_space<vmem>>, vector<1x16x48xf32>
    %522 = vector.shape_cast %521 : vector<1x16x48xf32> to vector<16x48xf32>
    %c1_154 = arith.constant 1 : index
    %c0_155 = arith.constant 0 : index
    %c0_156 = arith.constant 0 : index
    %523 = vector.load %arg9[%c1_154, %c0_155, %c0_156] : memref<2x16x48xf32, #tpu.memory_space<vmem>>, vector<1x16x48xf32>
    %524 = vector.shape_cast %523 : vector<1x16x48xf32> to vector<16x48xf32>
    %c0_157 = arith.constant 0 : index
    %c0_158 = arith.constant 0 : index
    %c0_159 = arith.constant 0 : index
    %525 = vector.load %arg10[%c0_157, %c0_158, %c0_159] : memref<2x1x48xf32, #tpu.memory_space<vmem>>, vector<1x1x48xf32>
    %526 = vector.shape_cast %525 : vector<1x1x48xf32> to vector<1x48xf32>
    %c1_160 = arith.constant 1 : index
    %c0_161 = arith.constant 0 : index
    %c0_162 = arith.constant 0 : index
    %527 = vector.load %arg10[%c1_160, %c0_161, %c0_162] : memref<2x1x48xf32, #tpu.memory_space<vmem>>, vector<1x1x48xf32>
    %528 = vector.shape_cast %527 : vector<1x1x48xf32> to vector<1x48xf32>
    %cst_163 = arith.constant 0.000000e+00 : f32
    %529 = vector.broadcast %cst_163 : f32 to vector<16x16xf32>
    %cst_164 = arith.constant 0.000000e+00 : f32
    %530 = vector.broadcast %cst_164 : f32 to vector<16x16xf32>
    %c0_165 = arith.constant 0 : index
    %c0_166 = arith.constant 0 : index
    %531 = vector.load %arg15[%c0_165, %c0_166] : memref<128x96xf32, #tpu.memory_space<vmem>>, vector<16x96xf32>
    %cst_167 = arith.constant dense<0.000000e+00> : vector<16x48xf32>
    %532 = tpu.matmul %529, %522, %cst_167 {dimension_numbers = #tpu.dot_dimension_numbers<[1], [0], [0], [1], [0, 0, 1, 1], [], []>} : vector<16x16xf32>, vector<16x48xf32>, vector<16x48xf32> -> vector<16x48xf32>
    %533 = vector.broadcast %526 : vector<1x48xf32> to vector<16x48xf32>
    %534 = arith.addf %532, %533 : vector<16x48xf32>
    %535 = vector.extract_strided_slice %531 {offsets = [0, 0], sizes = [16, 16], strides = [1, 1]} : vector<16x96xf32> to vector<16x16xf32>
    %536 = vector.extract_strided_slice %534 {offsets = [0, 0], sizes = [16, 16], strides = [1, 1]} : vector<16x48xf32> to vector<16x16xf32>
    %537 = arith.addf %535, %536 : vector<16x16xf32>
    %538 = arith.negf %537 : vector<16x16xf32>
    %539 = math.exp %538 : vector<16x16xf32>
    %cst_168 = arith.constant 1.000000e+00 : f32
    %540 = vector.broadcast %cst_168 : f32 to vector<16x16xf32>
    %541 = arith.addf %540, %539 : vector<16x16xf32>
    %542 = arith.divf %540, %541 : vector<16x16xf32>
    %543 = vector.extract_strided_slice %531 {offsets = [0, 16], sizes = [16, 16], strides = [1, 1]} : vector<16x96xf32> to vector<16x16xf32>
    %544 = vector.extract_strided_slice %534 {offsets = [0, 16], sizes = [16, 16], strides = [1, 1]} : vector<16x48xf32> to vector<16x16xf32>
    %545 = arith.addf %543, %544 : vector<16x16xf32>
    %546 = arith.negf %545 : vector<16x16xf32>
    %547 = math.exp %546 : vector<16x16xf32>
    %cst_169 = arith.constant 1.000000e+00 : f32
    %548 = vector.broadcast %cst_169 : f32 to vector<16x16xf32>
    %549 = arith.addf %548, %547 : vector<16x16xf32>
    %550 = arith.divf %548, %549 : vector<16x16xf32>
    %551 = vector.extract_strided_slice %531 {offsets = [0, 32], sizes = [16, 16], strides = [1, 1]} : vector<16x96xf32> to vector<16x16xf32>
    %552 = vector.extract_strided_slice %534 {offsets = [0, 32], sizes = [16, 16], strides = [1, 1]} : vector<16x48xf32> to vector<16x16xf32>
    %553 = arith.mulf %542, %552 : vector<16x16xf32>
    %554 = arith.addf %551, %553 : vector<16x16xf32>
    %555 = math.tanh %554 : vector<16x16xf32>
    %cst_170 = arith.constant 1.000000e+00 : f32
    %556 = vector.broadcast %cst_170 : f32 to vector<16x16xf32>
    %557 = arith.subf %556, %550 : vector<16x16xf32>
    %558 = arith.mulf %557, %555 : vector<16x16xf32>
    %559 = arith.mulf %550, %529 : vector<16x16xf32>
    %560 = arith.addf %558, %559 : vector<16x16xf32>
    %c112_171 = arith.constant 112 : index
    %c0_172 = arith.constant 0 : index
    %561 = vector.load %arg15[%c112_171, %c0_172] : memref<128x96xf32, #tpu.memory_space<vmem>>, vector<16x96xf32>
    %cst_173 = arith.constant dense<0.000000e+00> : vector<16x48xf32>
    %562 = tpu.matmul %530, %524, %cst_173 {dimension_numbers = #tpu.dot_dimension_numbers<[1], [0], [0], [1], [0, 0, 1, 1], [], []>} : vector<16x16xf32>, vector<16x48xf32>, vector<16x48xf32> -> vector<16x48xf32>
    %563 = vector.broadcast %528 : vector<1x48xf32> to vector<16x48xf32>
    %564 = arith.addf %562, %563 : vector<16x48xf32>
    %565 = vector.extract_strided_slice %561 {offsets = [0, 48], sizes = [16, 16], strides = [1, 1]} : vector<16x96xf32> to vector<16x16xf32>
    %566 = vector.extract_strided_slice %564 {offsets = [0, 0], sizes = [16, 16], strides = [1, 1]} : vector<16x48xf32> to vector<16x16xf32>
    %567 = arith.addf %565, %566 : vector<16x16xf32>
    %568 = arith.negf %567 : vector<16x16xf32>
    %569 = math.exp %568 : vector<16x16xf32>
    %cst_174 = arith.constant 1.000000e+00 : f32
    %570 = vector.broadcast %cst_174 : f32 to vector<16x16xf32>
    %571 = arith.addf %570, %569 : vector<16x16xf32>
    %572 = arith.divf %570, %571 : vector<16x16xf32>
    %573 = vector.extract_strided_slice %561 {offsets = [0, 64], sizes = [16, 16], strides = [1, 1]} : vector<16x96xf32> to vector<16x16xf32>
    %574 = vector.extract_strided_slice %564 {offsets = [0, 16], sizes = [16, 16], strides = [1, 1]} : vector<16x48xf32> to vector<16x16xf32>
    %575 = arith.addf %573, %574 : vector<16x16xf32>
    %576 = arith.negf %575 : vector<16x16xf32>
    %577 = math.exp %576 : vector<16x16xf32>
    %cst_175 = arith.constant 1.000000e+00 : f32
    %578 = vector.broadcast %cst_175 : f32 to vector<16x16xf32>
    %579 = arith.addf %578, %577 : vector<16x16xf32>
    %580 = arith.divf %578, %579 : vector<16x16xf32>
    %581 = vector.extract_strided_slice %561 {offsets = [0, 80], sizes = [16, 16], strides = [1, 1]} : vector<16x96xf32> to vector<16x16xf32>
    %582 = vector.extract_strided_slice %564 {offsets = [0, 32], sizes = [16, 16], strides = [1, 1]} : vector<16x48xf32> to vector<16x16xf32>
    %583 = arith.mulf %572, %582 : vector<16x16xf32>
    %584 = arith.addf %581, %583 : vector<16x16xf32>
    %585 = math.tanh %584 : vector<16x16xf32>
    %cst_176 = arith.constant 1.000000e+00 : f32
    %586 = vector.broadcast %cst_176 : f32 to vector<16x16xf32>
    %587 = arith.subf %586, %580 : vector<16x16xf32>
    %588 = arith.mulf %587, %585 : vector<16x16xf32>
    %589 = arith.mulf %580, %530 : vector<16x16xf32>
    %590 = arith.addf %588, %589 : vector<16x16xf32>
    %c16_177 = arith.constant 16 : index
    %c0_178 = arith.constant 0 : index
    %591 = vector.load %arg15[%c16_177, %c0_178] : memref<128x96xf32, #tpu.memory_space<vmem>>, vector<16x96xf32>
    %cst_179 = arith.constant dense<0.000000e+00> : vector<16x48xf32>
    %592 = tpu.matmul %560, %522, %cst_179 {dimension_numbers = #tpu.dot_dimension_numbers<[1], [0], [0], [1], [0, 0, 1, 1], [], []>} : vector<16x16xf32>, vector<16x48xf32>, vector<16x48xf32> -> vector<16x48xf32>
    %593 = vector.broadcast %526 : vector<1x48xf32> to vector<16x48xf32>
    %594 = arith.addf %592, %593 : vector<16x48xf32>
    %595 = vector.extract_strided_slice %591 {offsets = [0, 0], sizes = [16, 16], strides = [1, 1]} : vector<16x96xf32> to vector<16x16xf32>
    %596 = vector.extract_strided_slice %594 {offsets = [0, 0], sizes = [16, 16], strides = [1, 1]} : vector<16x48xf32> to vector<16x16xf32>
    %597 = arith.addf %595, %596 : vector<16x16xf32>
    %598 = arith.negf %597 : vector<16x16xf32>
    %599 = math.exp %598 : vector<16x16xf32>
    %cst_180 = arith.constant 1.000000e+00 : f32
    %600 = vector.broadcast %cst_180 : f32 to vector<16x16xf32>
    %601 = arith.addf %600, %599 : vector<16x16xf32>
    %602 = arith.divf %600, %601 : vector<16x16xf32>
    %603 = vector.extract_strided_slice %591 {offsets = [0, 16], sizes = [16, 16], strides = [1, 1]} : vector<16x96xf32> to vector<16x16xf32>
    %604 = vector.extract_strided_slice %594 {offsets = [0, 16], sizes = [16, 16], strides = [1, 1]} : vector<16x48xf32> to vector<16x16xf32>
    %605 = arith.addf %603, %604 : vector<16x16xf32>
    %606 = arith.negf %605 : vector<16x16xf32>
    %607 = math.exp %606 : vector<16x16xf32>
    %cst_181 = arith.constant 1.000000e+00 : f32
    %608 = vector.broadcast %cst_181 : f32 to vector<16x16xf32>
    %609 = arith.addf %608, %607 : vector<16x16xf32>
    %610 = arith.divf %608, %609 : vector<16x16xf32>
    %611 = vector.extract_strided_slice %591 {offsets = [0, 32], sizes = [16, 16], strides = [1, 1]} : vector<16x96xf32> to vector<16x16xf32>
    %612 = vector.extract_strided_slice %594 {offsets = [0, 32], sizes = [16, 16], strides = [1, 1]} : vector<16x48xf32> to vector<16x16xf32>
    %613 = arith.mulf %602, %612 : vector<16x16xf32>
    %614 = arith.addf %611, %613 : vector<16x16xf32>
    %615 = math.tanh %614 : vector<16x16xf32>
    %cst_182 = arith.constant 1.000000e+00 : f32
    %616 = vector.broadcast %cst_182 : f32 to vector<16x16xf32>
    %617 = arith.subf %616, %610 : vector<16x16xf32>
    %618 = arith.mulf %617, %615 : vector<16x16xf32>
    %619 = arith.mulf %610, %560 : vector<16x16xf32>
    %620 = arith.addf %618, %619 : vector<16x16xf32>
    %c96_183 = arith.constant 96 : index
    %c0_184 = arith.constant 0 : index
    %621 = vector.load %arg15[%c96_183, %c0_184] : memref<128x96xf32, #tpu.memory_space<vmem>>, vector<16x96xf32>
    %cst_185 = arith.constant dense<0.000000e+00> : vector<16x48xf32>
    %622 = tpu.matmul %590, %524, %cst_185 {dimension_numbers = #tpu.dot_dimension_numbers<[1], [0], [0], [1], [0, 0, 1, 1], [], []>} : vector<16x16xf32>, vector<16x48xf32>, vector<16x48xf32> -> vector<16x48xf32>
    %623 = vector.broadcast %528 : vector<1x48xf32> to vector<16x48xf32>
    %624 = arith.addf %622, %623 : vector<16x48xf32>
    %625 = vector.extract_strided_slice %621 {offsets = [0, 48], sizes = [16, 16], strides = [1, 1]} : vector<16x96xf32> to vector<16x16xf32>
    %626 = vector.extract_strided_slice %624 {offsets = [0, 0], sizes = [16, 16], strides = [1, 1]} : vector<16x48xf32> to vector<16x16xf32>
    %627 = arith.addf %625, %626 : vector<16x16xf32>
    %628 = arith.negf %627 : vector<16x16xf32>
    %629 = math.exp %628 : vector<16x16xf32>
    %cst_186 = arith.constant 1.000000e+00 : f32
    %630 = vector.broadcast %cst_186 : f32 to vector<16x16xf32>
    %631 = arith.addf %630, %629 : vector<16x16xf32>
    %632 = arith.divf %630, %631 : vector<16x16xf32>
    %633 = vector.extract_strided_slice %621 {offsets = [0, 64], sizes = [16, 16], strides = [1, 1]} : vector<16x96xf32> to vector<16x16xf32>
    %634 = vector.extract_strided_slice %624 {offsets = [0, 16], sizes = [16, 16], strides = [1, 1]} : vector<16x48xf32> to vector<16x16xf32>
    %635 = arith.addf %633, %634 : vector<16x16xf32>
    %636 = arith.negf %635 : vector<16x16xf32>
    %637 = math.exp %636 : vector<16x16xf32>
    %cst_187 = arith.constant 1.000000e+00 : f32
    %638 = vector.broadcast %cst_187 : f32 to vector<16x16xf32>
    %639 = arith.addf %638, %637 : vector<16x16xf32>
    %640 = arith.divf %638, %639 : vector<16x16xf32>
    %641 = vector.extract_strided_slice %621 {offsets = [0, 80], sizes = [16, 16], strides = [1, 1]} : vector<16x96xf32> to vector<16x16xf32>
    %642 = vector.extract_strided_slice %624 {offsets = [0, 32], sizes = [16, 16], strides = [1, 1]} : vector<16x48xf32> to vector<16x16xf32>
    %643 = arith.mulf %632, %642 : vector<16x16xf32>
    %644 = arith.addf %641, %643 : vector<16x16xf32>
    %645 = math.tanh %644 : vector<16x16xf32>
    %cst_188 = arith.constant 1.000000e+00 : f32
    %646 = vector.broadcast %cst_188 : f32 to vector<16x16xf32>
    %647 = arith.subf %646, %640 : vector<16x16xf32>
    %648 = arith.mulf %647, %645 : vector<16x16xf32>
    %649 = arith.mulf %640, %590 : vector<16x16xf32>
    %650 = arith.addf %648, %649 : vector<16x16xf32>
    %c32_189 = arith.constant 32 : index
    %c0_190 = arith.constant 0 : index
    %651 = vector.load %arg15[%c32_189, %c0_190] : memref<128x96xf32, #tpu.memory_space<vmem>>, vector<16x96xf32>
    %cst_191 = arith.constant dense<0.000000e+00> : vector<16x48xf32>
    %652 = tpu.matmul %620, %522, %cst_191 {dimension_numbers = #tpu.dot_dimension_numbers<[1], [0], [0], [1], [0, 0, 1, 1], [], []>} : vector<16x16xf32>, vector<16x48xf32>, vector<16x48xf32> -> vector<16x48xf32>
    %653 = vector.broadcast %526 : vector<1x48xf32> to vector<16x48xf32>
    %654 = arith.addf %652, %653 : vector<16x48xf32>
    %655 = vector.extract_strided_slice %651 {offsets = [0, 0], sizes = [16, 16], strides = [1, 1]} : vector<16x96xf32> to vector<16x16xf32>
    %656 = vector.extract_strided_slice %654 {offsets = [0, 0], sizes = [16, 16], strides = [1, 1]} : vector<16x48xf32> to vector<16x16xf32>
    %657 = arith.addf %655, %656 : vector<16x16xf32>
    %658 = arith.negf %657 : vector<16x16xf32>
    %659 = math.exp %658 : vector<16x16xf32>
    %cst_192 = arith.constant 1.000000e+00 : f32
    %660 = vector.broadcast %cst_192 : f32 to vector<16x16xf32>
    %661 = arith.addf %660, %659 : vector<16x16xf32>
    %662 = arith.divf %660, %661 : vector<16x16xf32>
    %663 = vector.extract_strided_slice %651 {offsets = [0, 16], sizes = [16, 16], strides = [1, 1]} : vector<16x96xf32> to vector<16x16xf32>
    %664 = vector.extract_strided_slice %654 {offsets = [0, 16], sizes = [16, 16], strides = [1, 1]} : vector<16x48xf32> to vector<16x16xf32>
    %665 = arith.addf %663, %664 : vector<16x16xf32>
    %666 = arith.negf %665 : vector<16x16xf32>
    %667 = math.exp %666 : vector<16x16xf32>
    %cst_193 = arith.constant 1.000000e+00 : f32
    %668 = vector.broadcast %cst_193 : f32 to vector<16x16xf32>
    %669 = arith.addf %668, %667 : vector<16x16xf32>
    %670 = arith.divf %668, %669 : vector<16x16xf32>
    %671 = vector.extract_strided_slice %651 {offsets = [0, 32], sizes = [16, 16], strides = [1, 1]} : vector<16x96xf32> to vector<16x16xf32>
    %672 = vector.extract_strided_slice %654 {offsets = [0, 32], sizes = [16, 16], strides = [1, 1]} : vector<16x48xf32> to vector<16x16xf32>
    %673 = arith.mulf %662, %672 : vector<16x16xf32>
    %674 = arith.addf %671, %673 : vector<16x16xf32>
    %675 = math.tanh %674 : vector<16x16xf32>
    %cst_194 = arith.constant 1.000000e+00 : f32
    %676 = vector.broadcast %cst_194 : f32 to vector<16x16xf32>
    %677 = arith.subf %676, %670 : vector<16x16xf32>
    %678 = arith.mulf %677, %675 : vector<16x16xf32>
    %679 = arith.mulf %670, %620 : vector<16x16xf32>
    %680 = arith.addf %678, %679 : vector<16x16xf32>
    %c80_195 = arith.constant 80 : index
    %c0_196 = arith.constant 0 : index
    %681 = vector.load %arg15[%c80_195, %c0_196] : memref<128x96xf32, #tpu.memory_space<vmem>>, vector<16x96xf32>
    %cst_197 = arith.constant dense<0.000000e+00> : vector<16x48xf32>
    %682 = tpu.matmul %650, %524, %cst_197 {dimension_numbers = #tpu.dot_dimension_numbers<[1], [0], [0], [1], [0, 0, 1, 1], [], []>} : vector<16x16xf32>, vector<16x48xf32>, vector<16x48xf32> -> vector<16x48xf32>
    %683 = vector.broadcast %528 : vector<1x48xf32> to vector<16x48xf32>
    %684 = arith.addf %682, %683 : vector<16x48xf32>
    %685 = vector.extract_strided_slice %681 {offsets = [0, 48], sizes = [16, 16], strides = [1, 1]} : vector<16x96xf32> to vector<16x16xf32>
    %686 = vector.extract_strided_slice %684 {offsets = [0, 0], sizes = [16, 16], strides = [1, 1]} : vector<16x48xf32> to vector<16x16xf32>
    %687 = arith.addf %685, %686 : vector<16x16xf32>
    %688 = arith.negf %687 : vector<16x16xf32>
    %689 = math.exp %688 : vector<16x16xf32>
    %cst_198 = arith.constant 1.000000e+00 : f32
    %690 = vector.broadcast %cst_198 : f32 to vector<16x16xf32>
    %691 = arith.addf %690, %689 : vector<16x16xf32>
    %692 = arith.divf %690, %691 : vector<16x16xf32>
    %693 = vector.extract_strided_slice %681 {offsets = [0, 64], sizes = [16, 16], strides = [1, 1]} : vector<16x96xf32> to vector<16x16xf32>
    %694 = vector.extract_strided_slice %684 {offsets = [0, 16], sizes = [16, 16], strides = [1, 1]} : vector<16x48xf32> to vector<16x16xf32>
    %695 = arith.addf %693, %694 : vector<16x16xf32>
    %696 = arith.negf %695 : vector<16x16xf32>
    %697 = math.exp %696 : vector<16x16xf32>
    %cst_199 = arith.constant 1.000000e+00 : f32
    %698 = vector.broadcast %cst_199 : f32 to vector<16x16xf32>
    %699 = arith.addf %698, %697 : vector<16x16xf32>
    %700 = arith.divf %698, %699 : vector<16x16xf32>
    %701 = vector.extract_strided_slice %681 {offsets = [0, 80], sizes = [16, 16], strides = [1, 1]} : vector<16x96xf32> to vector<16x16xf32>
    %702 = vector.extract_strided_slice %684 {offsets = [0, 32], sizes = [16, 16], strides = [1, 1]} : vector<16x48xf32> to vector<16x16xf32>
    %703 = arith.mulf %692, %702 : vector<16x16xf32>
    %704 = arith.addf %701, %703 : vector<16x16xf32>
    %705 = math.tanh %704 : vector<16x16xf32>
    %cst_200 = arith.constant 1.000000e+00 : f32
    %706 = vector.broadcast %cst_200 : f32 to vector<16x16xf32>
    %707 = arith.subf %706, %700 : vector<16x16xf32>
    %708 = arith.mulf %707, %705 : vector<16x16xf32>
    %709 = arith.mulf %700, %650 : vector<16x16xf32>
    %710 = arith.addf %708, %709 : vector<16x16xf32>
    %c48_201 = arith.constant 48 : index
    %c0_202 = arith.constant 0 : index
    %711 = vector.load %arg15[%c48_201, %c0_202] : memref<128x96xf32, #tpu.memory_space<vmem>>, vector<16x96xf32>
    %cst_203 = arith.constant dense<0.000000e+00> : vector<16x48xf32>
    %712 = tpu.matmul %680, %522, %cst_203 {dimension_numbers = #tpu.dot_dimension_numbers<[1], [0], [0], [1], [0, 0, 1, 1], [], []>} : vector<16x16xf32>, vector<16x48xf32>, vector<16x48xf32> -> vector<16x48xf32>
    %713 = vector.broadcast %526 : vector<1x48xf32> to vector<16x48xf32>
    %714 = arith.addf %712, %713 : vector<16x48xf32>
    %715 = vector.extract_strided_slice %711 {offsets = [0, 0], sizes = [16, 16], strides = [1, 1]} : vector<16x96xf32> to vector<16x16xf32>
    %716 = vector.extract_strided_slice %714 {offsets = [0, 0], sizes = [16, 16], strides = [1, 1]} : vector<16x48xf32> to vector<16x16xf32>
    %717 = arith.addf %715, %716 : vector<16x16xf32>
    %718 = arith.negf %717 : vector<16x16xf32>
    %719 = math.exp %718 : vector<16x16xf32>
    %cst_204 = arith.constant 1.000000e+00 : f32
    %720 = vector.broadcast %cst_204 : f32 to vector<16x16xf32>
    %721 = arith.addf %720, %719 : vector<16x16xf32>
    %722 = arith.divf %720, %721 : vector<16x16xf32>
    %723 = vector.extract_strided_slice %711 {offsets = [0, 16], sizes = [16, 16], strides = [1, 1]} : vector<16x96xf32> to vector<16x16xf32>
    %724 = vector.extract_strided_slice %714 {offsets = [0, 16], sizes = [16, 16], strides = [1, 1]} : vector<16x48xf32> to vector<16x16xf32>
    %725 = arith.addf %723, %724 : vector<16x16xf32>
    %726 = arith.negf %725 : vector<16x16xf32>
    %727 = math.exp %726 : vector<16x16xf32>
    %cst_205 = arith.constant 1.000000e+00 : f32
    %728 = vector.broadcast %cst_205 : f32 to vector<16x16xf32>
    %729 = arith.addf %728, %727 : vector<16x16xf32>
    %730 = arith.divf %728, %729 : vector<16x16xf32>
    %731 = vector.extract_strided_slice %711 {offsets = [0, 32], sizes = [16, 16], strides = [1, 1]} : vector<16x96xf32> to vector<16x16xf32>
    %732 = vector.extract_strided_slice %714 {offsets = [0, 32], sizes = [16, 16], strides = [1, 1]} : vector<16x48xf32> to vector<16x16xf32>
    %733 = arith.mulf %722, %732 : vector<16x16xf32>
    %734 = arith.addf %731, %733 : vector<16x16xf32>
    %735 = math.tanh %734 : vector<16x16xf32>
    %cst_206 = arith.constant 1.000000e+00 : f32
    %736 = vector.broadcast %cst_206 : f32 to vector<16x16xf32>
    %737 = arith.subf %736, %730 : vector<16x16xf32>
    %738 = arith.mulf %737, %735 : vector<16x16xf32>
    %739 = arith.mulf %730, %680 : vector<16x16xf32>
    %740 = arith.addf %738, %739 : vector<16x16xf32>
    %c64_207 = arith.constant 64 : index
    %c0_208 = arith.constant 0 : index
    %741 = vector.load %arg15[%c64_207, %c0_208] : memref<128x96xf32, #tpu.memory_space<vmem>>, vector<16x96xf32>
    %cst_209 = arith.constant dense<0.000000e+00> : vector<16x48xf32>
    %742 = tpu.matmul %710, %524, %cst_209 {dimension_numbers = #tpu.dot_dimension_numbers<[1], [0], [0], [1], [0, 0, 1, 1], [], []>} : vector<16x16xf32>, vector<16x48xf32>, vector<16x48xf32> -> vector<16x48xf32>
    %743 = vector.broadcast %528 : vector<1x48xf32> to vector<16x48xf32>
    %744 = arith.addf %742, %743 : vector<16x48xf32>
    %745 = vector.extract_strided_slice %741 {offsets = [0, 48], sizes = [16, 16], strides = [1, 1]} : vector<16x96xf32> to vector<16x16xf32>
    %746 = vector.extract_strided_slice %744 {offsets = [0, 0], sizes = [16, 16], strides = [1, 1]} : vector<16x48xf32> to vector<16x16xf32>
    %747 = arith.addf %745, %746 : vector<16x16xf32>
    %748 = arith.negf %747 : vector<16x16xf32>
    %749 = math.exp %748 : vector<16x16xf32>
    %cst_210 = arith.constant 1.000000e+00 : f32
    %750 = vector.broadcast %cst_210 : f32 to vector<16x16xf32>
    %751 = arith.addf %750, %749 : vector<16x16xf32>
    %752 = arith.divf %750, %751 : vector<16x16xf32>
    %753 = vector.extract_strided_slice %741 {offsets = [0, 64], sizes = [16, 16], strides = [1, 1]} : vector<16x96xf32> to vector<16x16xf32>
    %754 = vector.extract_strided_slice %744 {offsets = [0, 16], sizes = [16, 16], strides = [1, 1]} : vector<16x48xf32> to vector<16x16xf32>
    %755 = arith.addf %753, %754 : vector<16x16xf32>
    %756 = arith.negf %755 : vector<16x16xf32>
    %757 = math.exp %756 : vector<16x16xf32>
    %cst_211 = arith.constant 1.000000e+00 : f32
    %758 = vector.broadcast %cst_211 : f32 to vector<16x16xf32>
    %759 = arith.addf %758, %757 : vector<16x16xf32>
    %760 = arith.divf %758, %759 : vector<16x16xf32>
    %761 = vector.extract_strided_slice %741 {offsets = [0, 80], sizes = [16, 16], strides = [1, 1]} : vector<16x96xf32> to vector<16x16xf32>
    %762 = vector.extract_strided_slice %744 {offsets = [0, 32], sizes = [16, 16], strides = [1, 1]} : vector<16x48xf32> to vector<16x16xf32>
    %763 = arith.mulf %752, %762 : vector<16x16xf32>
    %764 = arith.addf %761, %763 : vector<16x16xf32>
    %765 = math.tanh %764 : vector<16x16xf32>
    %cst_212 = arith.constant 1.000000e+00 : f32
    %766 = vector.broadcast %cst_212 : f32 to vector<16x16xf32>
    %767 = arith.subf %766, %760 : vector<16x16xf32>
    %768 = arith.mulf %767, %765 : vector<16x16xf32>
    %769 = arith.mulf %760, %710 : vector<16x16xf32>
    %770 = arith.addf %768, %769 : vector<16x16xf32>
    %c64_213 = arith.constant 64 : index
    %c0_214 = arith.constant 0 : index
    %771 = vector.load %arg15[%c64_213, %c0_214] : memref<128x96xf32, #tpu.memory_space<vmem>>, vector<16x96xf32>
    %cst_215 = arith.constant dense<0.000000e+00> : vector<16x48xf32>
    %772 = tpu.matmul %740, %522, %cst_215 {dimension_numbers = #tpu.dot_dimension_numbers<[1], [0], [0], [1], [0, 0, 1, 1], [], []>} : vector<16x16xf32>, vector<16x48xf32>, vector<16x48xf32> -> vector<16x48xf32>
    %773 = vector.broadcast %526 : vector<1x48xf32> to vector<16x48xf32>
    %774 = arith.addf %772, %773 : vector<16x48xf32>
    %775 = vector.extract_strided_slice %771 {offsets = [0, 0], sizes = [16, 16], strides = [1, 1]} : vector<16x96xf32> to vector<16x16xf32>
    %776 = vector.extract_strided_slice %774 {offsets = [0, 0], sizes = [16, 16], strides = [1, 1]} : vector<16x48xf32> to vector<16x16xf32>
    %777 = arith.addf %775, %776 : vector<16x16xf32>
    %778 = arith.negf %777 : vector<16x16xf32>
    %779 = math.exp %778 : vector<16x16xf32>
    %cst_216 = arith.constant 1.000000e+00 : f32
    %780 = vector.broadcast %cst_216 : f32 to vector<16x16xf32>
    %781 = arith.addf %780, %779 : vector<16x16xf32>
    %782 = arith.divf %780, %781 : vector<16x16xf32>
    %783 = vector.extract_strided_slice %771 {offsets = [0, 16], sizes = [16, 16], strides = [1, 1]} : vector<16x96xf32> to vector<16x16xf32>
    %784 = vector.extract_strided_slice %774 {offsets = [0, 16], sizes = [16, 16], strides = [1, 1]} : vector<16x48xf32> to vector<16x16xf32>
    %785 = arith.addf %783, %784 : vector<16x16xf32>
    %786 = arith.negf %785 : vector<16x16xf32>
    %787 = math.exp %786 : vector<16x16xf32>
    %cst_217 = arith.constant 1.000000e+00 : f32
    %788 = vector.broadcast %cst_217 : f32 to vector<16x16xf32>
    %789 = arith.addf %788, %787 : vector<16x16xf32>
    %790 = arith.divf %788, %789 : vector<16x16xf32>
    %791 = vector.extract_strided_slice %771 {offsets = [0, 32], sizes = [16, 16], strides = [1, 1]} : vector<16x96xf32> to vector<16x16xf32>
    %792 = vector.extract_strided_slice %774 {offsets = [0, 32], sizes = [16, 16], strides = [1, 1]} : vector<16x48xf32> to vector<16x16xf32>
    %793 = arith.mulf %782, %792 : vector<16x16xf32>
    %794 = arith.addf %791, %793 : vector<16x16xf32>
    %795 = math.tanh %794 : vector<16x16xf32>
    %cst_218 = arith.constant 1.000000e+00 : f32
    %796 = vector.broadcast %cst_218 : f32 to vector<16x16xf32>
    %797 = arith.subf %796, %790 : vector<16x16xf32>
    %798 = arith.mulf %797, %795 : vector<16x16xf32>
    %799 = arith.mulf %790, %740 : vector<16x16xf32>
    %800 = arith.addf %798, %799 : vector<16x16xf32>
    %c48_219 = arith.constant 48 : index
    %c0_220 = arith.constant 0 : index
    %801 = vector.load %arg15[%c48_219, %c0_220] : memref<128x96xf32, #tpu.memory_space<vmem>>, vector<16x96xf32>
    %cst_221 = arith.constant dense<0.000000e+00> : vector<16x48xf32>
    %802 = tpu.matmul %770, %524, %cst_221 {dimension_numbers = #tpu.dot_dimension_numbers<[1], [0], [0], [1], [0, 0, 1, 1], [], []>} : vector<16x16xf32>, vector<16x48xf32>, vector<16x48xf32> -> vector<16x48xf32>
    %803 = vector.broadcast %528 : vector<1x48xf32> to vector<16x48xf32>
    %804 = arith.addf %802, %803 : vector<16x48xf32>
    %805 = vector.extract_strided_slice %801 {offsets = [0, 48], sizes = [16, 16], strides = [1, 1]} : vector<16x96xf32> to vector<16x16xf32>
    %806 = vector.extract_strided_slice %804 {offsets = [0, 0], sizes = [16, 16], strides = [1, 1]} : vector<16x48xf32> to vector<16x16xf32>
    %807 = arith.addf %805, %806 : vector<16x16xf32>
    %808 = arith.negf %807 : vector<16x16xf32>
    %809 = math.exp %808 : vector<16x16xf32>
    %cst_222 = arith.constant 1.000000e+00 : f32
    %810 = vector.broadcast %cst_222 : f32 to vector<16x16xf32>
    %811 = arith.addf %810, %809 : vector<16x16xf32>
    %812 = arith.divf %810, %811 : vector<16x16xf32>
    %813 = vector.extract_strided_slice %801 {offsets = [0, 64], sizes = [16, 16], strides = [1, 1]} : vector<16x96xf32> to vector<16x16xf32>
    %814 = vector.extract_strided_slice %804 {offsets = [0, 16], sizes = [16, 16], strides = [1, 1]} : vector<16x48xf32> to vector<16x16xf32>
    %815 = arith.addf %813, %814 : vector<16x16xf32>
    %816 = arith.negf %815 : vector<16x16xf32>
    %817 = math.exp %816 : vector<16x16xf32>
    %cst_223 = arith.constant 1.000000e+00 : f32
    %818 = vector.broadcast %cst_223 : f32 to vector<16x16xf32>
    %819 = arith.addf %818, %817 : vector<16x16xf32>
    %820 = arith.divf %818, %819 : vector<16x16xf32>
    %821 = vector.extract_strided_slice %801 {offsets = [0, 80], sizes = [16, 16], strides = [1, 1]} : vector<16x96xf32> to vector<16x16xf32>
    %822 = vector.extract_strided_slice %804 {offsets = [0, 32], sizes = [16, 16], strides = [1, 1]} : vector<16x48xf32> to vector<16x16xf32>
    %823 = arith.mulf %812, %822 : vector<16x16xf32>
    %824 = arith.addf %821, %823 : vector<16x16xf32>
    %825 = math.tanh %824 : vector<16x16xf32>
    %cst_224 = arith.constant 1.000000e+00 : f32
    %826 = vector.broadcast %cst_224 : f32 to vector<16x16xf32>
    %827 = arith.subf %826, %820 : vector<16x16xf32>
    %828 = arith.mulf %827, %825 : vector<16x16xf32>
    %829 = arith.mulf %820, %770 : vector<16x16xf32>
    %830 = arith.addf %828, %829 : vector<16x16xf32>
    %c80_225 = arith.constant 80 : index
    %c0_226 = arith.constant 0 : index
    %831 = vector.load %arg15[%c80_225, %c0_226] : memref<128x96xf32, #tpu.memory_space<vmem>>, vector<16x96xf32>
    %cst_227 = arith.constant dense<0.000000e+00> : vector<16x48xf32>
    %832 = tpu.matmul %800, %522, %cst_227 {dimension_numbers = #tpu.dot_dimension_numbers<[1], [0], [0], [1], [0, 0, 1, 1], [], []>} : vector<16x16xf32>, vector<16x48xf32>, vector<16x48xf32> -> vector<16x48xf32>
    %833 = vector.broadcast %526 : vector<1x48xf32> to vector<16x48xf32>
    %834 = arith.addf %832, %833 : vector<16x48xf32>
    %835 = vector.extract_strided_slice %831 {offsets = [0, 0], sizes = [16, 16], strides = [1, 1]} : vector<16x96xf32> to vector<16x16xf32>
    %836 = vector.extract_strided_slice %834 {offsets = [0, 0], sizes = [16, 16], strides = [1, 1]} : vector<16x48xf32> to vector<16x16xf32>
    %837 = arith.addf %835, %836 : vector<16x16xf32>
    %838 = arith.negf %837 : vector<16x16xf32>
    %839 = math.exp %838 : vector<16x16xf32>
    %cst_228 = arith.constant 1.000000e+00 : f32
    %840 = vector.broadcast %cst_228 : f32 to vector<16x16xf32>
    %841 = arith.addf %840, %839 : vector<16x16xf32>
    %842 = arith.divf %840, %841 : vector<16x16xf32>
    %843 = vector.extract_strided_slice %831 {offsets = [0, 16], sizes = [16, 16], strides = [1, 1]} : vector<16x96xf32> to vector<16x16xf32>
    %844 = vector.extract_strided_slice %834 {offsets = [0, 16], sizes = [16, 16], strides = [1, 1]} : vector<16x48xf32> to vector<16x16xf32>
    %845 = arith.addf %843, %844 : vector<16x16xf32>
    %846 = arith.negf %845 : vector<16x16xf32>
    %847 = math.exp %846 : vector<16x16xf32>
    %cst_229 = arith.constant 1.000000e+00 : f32
    %848 = vector.broadcast %cst_229 : f32 to vector<16x16xf32>
    %849 = arith.addf %848, %847 : vector<16x16xf32>
    %850 = arith.divf %848, %849 : vector<16x16xf32>
    %851 = vector.extract_strided_slice %831 {offsets = [0, 32], sizes = [16, 16], strides = [1, 1]} : vector<16x96xf32> to vector<16x16xf32>
    %852 = vector.extract_strided_slice %834 {offsets = [0, 32], sizes = [16, 16], strides = [1, 1]} : vector<16x48xf32> to vector<16x16xf32>
    %853 = arith.mulf %842, %852 : vector<16x16xf32>
    %854 = arith.addf %851, %853 : vector<16x16xf32>
    %855 = math.tanh %854 : vector<16x16xf32>
    %cst_230 = arith.constant 1.000000e+00 : f32
    %856 = vector.broadcast %cst_230 : f32 to vector<16x16xf32>
    %857 = arith.subf %856, %850 : vector<16x16xf32>
    %858 = arith.mulf %857, %855 : vector<16x16xf32>
    %859 = arith.mulf %850, %800 : vector<16x16xf32>
    %860 = arith.addf %858, %859 : vector<16x16xf32>
    %c32_231 = arith.constant 32 : index
    %c0_232 = arith.constant 0 : index
    %861 = vector.load %arg15[%c32_231, %c0_232] : memref<128x96xf32, #tpu.memory_space<vmem>>, vector<16x96xf32>
    %cst_233 = arith.constant dense<0.000000e+00> : vector<16x48xf32>
    %862 = tpu.matmul %830, %524, %cst_233 {dimension_numbers = #tpu.dot_dimension_numbers<[1], [0], [0], [1], [0, 0, 1, 1], [], []>} : vector<16x16xf32>, vector<16x48xf32>, vector<16x48xf32> -> vector<16x48xf32>
    %863 = vector.broadcast %528 : vector<1x48xf32> to vector<16x48xf32>
    %864 = arith.addf %862, %863 : vector<16x48xf32>
    %865 = vector.extract_strided_slice %861 {offsets = [0, 48], sizes = [16, 16], strides = [1, 1]} : vector<16x96xf32> to vector<16x16xf32>
    %866 = vector.extract_strided_slice %864 {offsets = [0, 0], sizes = [16, 16], strides = [1, 1]} : vector<16x48xf32> to vector<16x16xf32>
    %867 = arith.addf %865, %866 : vector<16x16xf32>
    %868 = arith.negf %867 : vector<16x16xf32>
    %869 = math.exp %868 : vector<16x16xf32>
    %cst_234 = arith.constant 1.000000e+00 : f32
    %870 = vector.broadcast %cst_234 : f32 to vector<16x16xf32>
    %871 = arith.addf %870, %869 : vector<16x16xf32>
    %872 = arith.divf %870, %871 : vector<16x16xf32>
    %873 = vector.extract_strided_slice %861 {offsets = [0, 64], sizes = [16, 16], strides = [1, 1]} : vector<16x96xf32> to vector<16x16xf32>
    %874 = vector.extract_strided_slice %864 {offsets = [0, 16], sizes = [16, 16], strides = [1, 1]} : vector<16x48xf32> to vector<16x16xf32>
    %875 = arith.addf %873, %874 : vector<16x16xf32>
    %876 = arith.negf %875 : vector<16x16xf32>
    %877 = math.exp %876 : vector<16x16xf32>
    %cst_235 = arith.constant 1.000000e+00 : f32
    %878 = vector.broadcast %cst_235 : f32 to vector<16x16xf32>
    %879 = arith.addf %878, %877 : vector<16x16xf32>
    %880 = arith.divf %878, %879 : vector<16x16xf32>
    %881 = vector.extract_strided_slice %861 {offsets = [0, 80], sizes = [16, 16], strides = [1, 1]} : vector<16x96xf32> to vector<16x16xf32>
    %882 = vector.extract_strided_slice %864 {offsets = [0, 32], sizes = [16, 16], strides = [1, 1]} : vector<16x48xf32> to vector<16x16xf32>
    %883 = arith.mulf %872, %882 : vector<16x16xf32>
    %884 = arith.addf %881, %883 : vector<16x16xf32>
    %885 = math.tanh %884 : vector<16x16xf32>
    %cst_236 = arith.constant 1.000000e+00 : f32
    %886 = vector.broadcast %cst_236 : f32 to vector<16x16xf32>
    %887 = arith.subf %886, %880 : vector<16x16xf32>
    %888 = arith.mulf %887, %885 : vector<16x16xf32>
    %889 = arith.mulf %880, %830 : vector<16x16xf32>
    %890 = arith.addf %888, %889 : vector<16x16xf32>
    %c96_237 = arith.constant 96 : index
    %c0_238 = arith.constant 0 : index
    %891 = vector.load %arg15[%c96_237, %c0_238] : memref<128x96xf32, #tpu.memory_space<vmem>>, vector<16x96xf32>
    %cst_239 = arith.constant dense<0.000000e+00> : vector<16x48xf32>
    %892 = tpu.matmul %860, %522, %cst_239 {dimension_numbers = #tpu.dot_dimension_numbers<[1], [0], [0], [1], [0, 0, 1, 1], [], []>} : vector<16x16xf32>, vector<16x48xf32>, vector<16x48xf32> -> vector<16x48xf32>
    %893 = vector.broadcast %526 : vector<1x48xf32> to vector<16x48xf32>
    %894 = arith.addf %892, %893 : vector<16x48xf32>
    %895 = vector.extract_strided_slice %891 {offsets = [0, 0], sizes = [16, 16], strides = [1, 1]} : vector<16x96xf32> to vector<16x16xf32>
    %896 = vector.extract_strided_slice %894 {offsets = [0, 0], sizes = [16, 16], strides = [1, 1]} : vector<16x48xf32> to vector<16x16xf32>
    %897 = arith.addf %895, %896 : vector<16x16xf32>
    %898 = arith.negf %897 : vector<16x16xf32>
    %899 = math.exp %898 : vector<16x16xf32>
    %cst_240 = arith.constant 1.000000e+00 : f32
    %900 = vector.broadcast %cst_240 : f32 to vector<16x16xf32>
    %901 = arith.addf %900, %899 : vector<16x16xf32>
    %902 = arith.divf %900, %901 : vector<16x16xf32>
    %903 = vector.extract_strided_slice %891 {offsets = [0, 16], sizes = [16, 16], strides = [1, 1]} : vector<16x96xf32> to vector<16x16xf32>
    %904 = vector.extract_strided_slice %894 {offsets = [0, 16], sizes = [16, 16], strides = [1, 1]} : vector<16x48xf32> to vector<16x16xf32>
    %905 = arith.addf %903, %904 : vector<16x16xf32>
    %906 = arith.negf %905 : vector<16x16xf32>
    %907 = math.exp %906 : vector<16x16xf32>
    %cst_241 = arith.constant 1.000000e+00 : f32
    %908 = vector.broadcast %cst_241 : f32 to vector<16x16xf32>
    %909 = arith.addf %908, %907 : vector<16x16xf32>
    %910 = arith.divf %908, %909 : vector<16x16xf32>
    %911 = vector.extract_strided_slice %891 {offsets = [0, 32], sizes = [16, 16], strides = [1, 1]} : vector<16x96xf32> to vector<16x16xf32>
    %912 = vector.extract_strided_slice %894 {offsets = [0, 32], sizes = [16, 16], strides = [1, 1]} : vector<16x48xf32> to vector<16x16xf32>
    %913 = arith.mulf %902, %912 : vector<16x16xf32>
    %914 = arith.addf %911, %913 : vector<16x16xf32>
    %915 = math.tanh %914 : vector<16x16xf32>
    %cst_242 = arith.constant 1.000000e+00 : f32
    %916 = vector.broadcast %cst_242 : f32 to vector<16x16xf32>
    %917 = arith.subf %916, %910 : vector<16x16xf32>
    %918 = arith.mulf %917, %915 : vector<16x16xf32>
    %919 = arith.mulf %910, %860 : vector<16x16xf32>
    %920 = arith.addf %918, %919 : vector<16x16xf32>
    %c16_243 = arith.constant 16 : index
    %c0_244 = arith.constant 0 : index
    %921 = vector.load %arg15[%c16_243, %c0_244] : memref<128x96xf32, #tpu.memory_space<vmem>>, vector<16x96xf32>
    %cst_245 = arith.constant dense<0.000000e+00> : vector<16x48xf32>
    %922 = tpu.matmul %890, %524, %cst_245 {dimension_numbers = #tpu.dot_dimension_numbers<[1], [0], [0], [1], [0, 0, 1, 1], [], []>} : vector<16x16xf32>, vector<16x48xf32>, vector<16x48xf32> -> vector<16x48xf32>
    %923 = vector.broadcast %528 : vector<1x48xf32> to vector<16x48xf32>
    %924 = arith.addf %922, %923 : vector<16x48xf32>
    %925 = vector.extract_strided_slice %921 {offsets = [0, 48], sizes = [16, 16], strides = [1, 1]} : vector<16x96xf32> to vector<16x16xf32>
    %926 = vector.extract_strided_slice %924 {offsets = [0, 0], sizes = [16, 16], strides = [1, 1]} : vector<16x48xf32> to vector<16x16xf32>
    %927 = arith.addf %925, %926 : vector<16x16xf32>
    %928 = arith.negf %927 : vector<16x16xf32>
    %929 = math.exp %928 : vector<16x16xf32>
    %cst_246 = arith.constant 1.000000e+00 : f32
    %930 = vector.broadcast %cst_246 : f32 to vector<16x16xf32>
    %931 = arith.addf %930, %929 : vector<16x16xf32>
    %932 = arith.divf %930, %931 : vector<16x16xf32>
    %933 = vector.extract_strided_slice %921 {offsets = [0, 64], sizes = [16, 16], strides = [1, 1]} : vector<16x96xf32> to vector<16x16xf32>
    %934 = vector.extract_strided_slice %924 {offsets = [0, 16], sizes = [16, 16], strides = [1, 1]} : vector<16x48xf32> to vector<16x16xf32>
    %935 = arith.addf %933, %934 : vector<16x16xf32>
    %936 = arith.negf %935 : vector<16x16xf32>
    %937 = math.exp %936 : vector<16x16xf32>
    %cst_247 = arith.constant 1.000000e+00 : f32
    %938 = vector.broadcast %cst_247 : f32 to vector<16x16xf32>
    %939 = arith.addf %938, %937 : vector<16x16xf32>
    %940 = arith.divf %938, %939 : vector<16x16xf32>
    %941 = vector.extract_strided_slice %921 {offsets = [0, 80], sizes = [16, 16], strides = [1, 1]} : vector<16x96xf32> to vector<16x16xf32>
    %942 = vector.extract_strided_slice %924 {offsets = [0, 32], sizes = [16, 16], strides = [1, 1]} : vector<16x48xf32> to vector<16x16xf32>
    %943 = arith.mulf %932, %942 : vector<16x16xf32>
    %944 = arith.addf %941, %943 : vector<16x16xf32>
    %945 = math.tanh %944 : vector<16x16xf32>
    %cst_248 = arith.constant 1.000000e+00 : f32
    %946 = vector.broadcast %cst_248 : f32 to vector<16x16xf32>
    %947 = arith.subf %946, %940 : vector<16x16xf32>
    %948 = arith.mulf %947, %945 : vector<16x16xf32>
    %949 = arith.mulf %940, %890 : vector<16x16xf32>
    %950 = arith.addf %948, %949 : vector<16x16xf32>
    %c112_249 = arith.constant 112 : index
    %c0_250 = arith.constant 0 : index
    %951 = vector.load %arg15[%c112_249, %c0_250] : memref<128x96xf32, #tpu.memory_space<vmem>>, vector<16x96xf32>
    %cst_251 = arith.constant dense<0.000000e+00> : vector<16x48xf32>
    %952 = tpu.matmul %920, %522, %cst_251 {dimension_numbers = #tpu.dot_dimension_numbers<[1], [0], [0], [1], [0, 0, 1, 1], [], []>} : vector<16x16xf32>, vector<16x48xf32>, vector<16x48xf32> -> vector<16x48xf32>
    %953 = vector.broadcast %526 : vector<1x48xf32> to vector<16x48xf32>
    %954 = arith.addf %952, %953 : vector<16x48xf32>
    %955 = vector.extract_strided_slice %951 {offsets = [0, 0], sizes = [16, 16], strides = [1, 1]} : vector<16x96xf32> to vector<16x16xf32>
    %956 = vector.extract_strided_slice %954 {offsets = [0, 0], sizes = [16, 16], strides = [1, 1]} : vector<16x48xf32> to vector<16x16xf32>
    %957 = arith.addf %955, %956 : vector<16x16xf32>
    %958 = arith.negf %957 : vector<16x16xf32>
    %959 = math.exp %958 : vector<16x16xf32>
    %cst_252 = arith.constant 1.000000e+00 : f32
    %960 = vector.broadcast %cst_252 : f32 to vector<16x16xf32>
    %961 = arith.addf %960, %959 : vector<16x16xf32>
    %962 = arith.divf %960, %961 : vector<16x16xf32>
    %963 = vector.extract_strided_slice %951 {offsets = [0, 16], sizes = [16, 16], strides = [1, 1]} : vector<16x96xf32> to vector<16x16xf32>
    %964 = vector.extract_strided_slice %954 {offsets = [0, 16], sizes = [16, 16], strides = [1, 1]} : vector<16x48xf32> to vector<16x16xf32>
    %965 = arith.addf %963, %964 : vector<16x16xf32>
    %966 = arith.negf %965 : vector<16x16xf32>
    %967 = math.exp %966 : vector<16x16xf32>
    %cst_253 = arith.constant 1.000000e+00 : f32
    %968 = vector.broadcast %cst_253 : f32 to vector<16x16xf32>
    %969 = arith.addf %968, %967 : vector<16x16xf32>
    %970 = arith.divf %968, %969 : vector<16x16xf32>
    %971 = vector.extract_strided_slice %951 {offsets = [0, 32], sizes = [16, 16], strides = [1, 1]} : vector<16x96xf32> to vector<16x16xf32>
    %972 = vector.extract_strided_slice %954 {offsets = [0, 32], sizes = [16, 16], strides = [1, 1]} : vector<16x48xf32> to vector<16x16xf32>
    %973 = arith.mulf %962, %972 : vector<16x16xf32>
    %974 = arith.addf %971, %973 : vector<16x16xf32>
    %975 = math.tanh %974 : vector<16x16xf32>
    %cst_254 = arith.constant 1.000000e+00 : f32
    %976 = vector.broadcast %cst_254 : f32 to vector<16x16xf32>
    %977 = arith.subf %976, %970 : vector<16x16xf32>
    %978 = arith.mulf %977, %975 : vector<16x16xf32>
    %979 = arith.mulf %970, %920 : vector<16x16xf32>
    %980 = arith.addf %978, %979 : vector<16x16xf32>
    %c0_255 = arith.constant 0 : index
    %c0_256 = arith.constant 0 : index
    %981 = vector.load %arg15[%c0_255, %c0_256] : memref<128x96xf32, #tpu.memory_space<vmem>>, vector<16x96xf32>
    %cst_257 = arith.constant dense<0.000000e+00> : vector<16x48xf32>
    %982 = tpu.matmul %950, %524, %cst_257 {dimension_numbers = #tpu.dot_dimension_numbers<[1], [0], [0], [1], [0, 0, 1, 1], [], []>} : vector<16x16xf32>, vector<16x48xf32>, vector<16x48xf32> -> vector<16x48xf32>
    %983 = vector.broadcast %528 : vector<1x48xf32> to vector<16x48xf32>
    %984 = arith.addf %982, %983 : vector<16x48xf32>
    %985 = vector.extract_strided_slice %981 {offsets = [0, 48], sizes = [16, 16], strides = [1, 1]} : vector<16x96xf32> to vector<16x16xf32>
    %986 = vector.extract_strided_slice %984 {offsets = [0, 0], sizes = [16, 16], strides = [1, 1]} : vector<16x48xf32> to vector<16x16xf32>
    %987 = arith.addf %985, %986 : vector<16x16xf32>
    %988 = arith.negf %987 : vector<16x16xf32>
    %989 = math.exp %988 : vector<16x16xf32>
    %cst_258 = arith.constant 1.000000e+00 : f32
    %990 = vector.broadcast %cst_258 : f32 to vector<16x16xf32>
    %991 = arith.addf %990, %989 : vector<16x16xf32>
    %992 = arith.divf %990, %991 : vector<16x16xf32>
    %993 = vector.extract_strided_slice %981 {offsets = [0, 64], sizes = [16, 16], strides = [1, 1]} : vector<16x96xf32> to vector<16x16xf32>
    %994 = vector.extract_strided_slice %984 {offsets = [0, 16], sizes = [16, 16], strides = [1, 1]} : vector<16x48xf32> to vector<16x16xf32>
    %995 = arith.addf %993, %994 : vector<16x16xf32>
    %996 = arith.negf %995 : vector<16x16xf32>
    %997 = math.exp %996 : vector<16x16xf32>
    %cst_259 = arith.constant 1.000000e+00 : f32
    %998 = vector.broadcast %cst_259 : f32 to vector<16x16xf32>
    %999 = arith.addf %998, %997 : vector<16x16xf32>
    %1000 = arith.divf %998, %999 : vector<16x16xf32>
    %1001 = vector.extract_strided_slice %981 {offsets = [0, 80], sizes = [16, 16], strides = [1, 1]} : vector<16x96xf32> to vector<16x16xf32>
    %1002 = vector.extract_strided_slice %984 {offsets = [0, 32], sizes = [16, 16], strides = [1, 1]} : vector<16x48xf32> to vector<16x16xf32>
    %1003 = arith.mulf %992, %1002 : vector<16x16xf32>
    %1004 = arith.addf %1001, %1003 : vector<16x16xf32>
    %1005 = math.tanh %1004 : vector<16x16xf32>
    %cst_260 = arith.constant 1.000000e+00 : f32
    %1006 = vector.broadcast %cst_260 : f32 to vector<16x16xf32>
    %1007 = arith.subf %1006, %1000 : vector<16x16xf32>
    %1008 = arith.mulf %1007, %1005 : vector<16x16xf32>
    %1009 = arith.mulf %1000, %950 : vector<16x16xf32>
    %1010 = arith.addf %1008, %1009 : vector<16x16xf32>
    %c0_261 = arith.constant 0 : index
    %c0_262 = arith.constant 0 : index
    %c0_263 = arith.constant 0 : index
    %1011 = vector.load %arg11[%c0_261, %c0_262, %c0_263] : memref<2x16x32xf32, #tpu.memory_space<vmem>>, vector<1x16x32xf32>
    %1012 = vector.shape_cast %1011 : vector<1x16x32xf32> to vector<16x32xf32>
    %c1_264 = arith.constant 1 : index
    %c0_265 = arith.constant 0 : index
    %c0_266 = arith.constant 0 : index
    %1013 = vector.load %arg11[%c1_264, %c0_265, %c0_266] : memref<2x16x32xf32, #tpu.memory_space<vmem>>, vector<1x16x32xf32>
    %1014 = vector.shape_cast %1013 : vector<1x16x32xf32> to vector<16x32xf32>
    %c0_267 = arith.constant 0 : index
    %c0_268 = arith.constant 0 : index
    %1015 = vector.load %arg12[%c0_267, %c0_268] : memref<8x1xf32, #tpu.memory_space<vmem>>, vector<8x1xf32>
    %c0_269 = arith.constant 0 : index
    %c0_270 = arith.constant 0 : index
    %c0_271 = arith.constant 0 : index
    %1016 = vector.load %arg13[%c0_269, %c0_270, %c0_271] : memref<2x16x1xf32, #tpu.memory_space<vmem>>, vector<1x16x1xf32>
    %1017 = vector.shape_cast %1016 : vector<1x16x1xf32> to vector<16x1xf32>
    %c1_272 = arith.constant 1 : index
    %c0_273 = arith.constant 0 : index
    %c0_274 = arith.constant 0 : index
    %1018 = vector.load %arg13[%c1_272, %c0_273, %c0_274] : memref<2x16x1xf32, #tpu.memory_space<vmem>>, vector<1x16x1xf32>
    %1019 = vector.shape_cast %1018 : vector<1x16x1xf32> to vector<16x1xf32>
    %1020 = vector.extract_strided_slice %980 {offsets = [0, 0], sizes = [8, 16], strides = [1, 1]} : vector<16x16xf32> to vector<8x16xf32>
    %1021 = vector.extract_strided_slice %1010 {offsets = [0, 0], sizes = [8, 16], strides = [1, 1]} : vector<16x16xf32> to vector<8x16xf32>
    %c0_275 = arith.constant 0 : index
    %c0_276 = arith.constant 0 : index
    %c0_277 = arith.constant 0 : index
    %c0_278 = arith.constant 0 : index
    %1022 = vector.load %arg2[%c0_275, %c0_276, %c0_277, %c0_278] : memref<1x2x8x8xf32, #tpu.memory_space<vmem>>, vector<1x1x8x8xf32>
    %1023 = vector.shape_cast %1022 : vector<1x1x8x8xf32> to vector<8x8xf32>
    %cst_279 = arith.constant dense<0.000000e+00> : vector<8x16xf32>
    %1024 = tpu.matmul %1023, %1020, %cst_279 {dimension_numbers = #tpu.dot_dimension_numbers<[1], [0], [0], [1], [0, 0, 1, 1], [], []>} : vector<8x8xf32>, vector<8x16xf32>, vector<8x16xf32> -> vector<8x16xf32>
    %cst_280 = arith.constant dense<0.000000e+00> : vector<8x16xf32>
    %1025 = tpu.matmul %1023, %1021, %cst_280 {dimension_numbers = #tpu.dot_dimension_numbers<[1], [0], [0], [1], [0, 0, 1, 1], [], []>} : vector<8x8xf32>, vector<8x16xf32>, vector<8x16xf32> -> vector<8x16xf32>
    %cst_281 = arith.constant dense<0.000000e+00> : vector<8x32xf32>
    %1026 = tpu.matmul %1024, %1012, %cst_281 {dimension_numbers = #tpu.dot_dimension_numbers<[1], [0], [0], [1], [0, 0, 1, 1], [], []>} : vector<8x16xf32>, vector<16x32xf32>, vector<8x32xf32> -> vector<8x32xf32>
    %cst_282 = arith.constant dense<0.000000e+00> : vector<8x32xf32>
    %1027 = tpu.matmul %1025, %1014, %cst_282 {dimension_numbers = #tpu.dot_dimension_numbers<[1], [0], [0], [1], [0, 0, 1, 1], [], []>} : vector<8x16xf32>, vector<16x32xf32>, vector<8x32xf32> -> vector<8x32xf32>
    %1028 = arith.addf %1026, %1027 : vector<8x32xf32>
    %1029 = vector.broadcast %1015 : vector<8x1xf32> to vector<8x32xf32>
    %1030 = arith.addf %1028, %1029 : vector<8x32xf32>
    %cst_283 = arith.constant 0.000000e+00 : f32
    %1031 = vector.broadcast %cst_283 : f32 to vector<8x32xf32>
    %1032 = arith.maximumf %1030, %1031 : vector<8x32xf32>
    %1033 = tpu.iota {dimensions = array<i32: 0>} : vector<8x32xi32>
    %cst_284 = arith.constant dense<0xFF800000> : vector<32xf32>
    %1034 = vector.multi_reduction <maximumf>, %1032, %cst_284 [0] : vector<8x32xf32> to vector<32xf32>
    %1035 = vector.shape_cast %1034 : vector<32xf32> to vector<1x32xf32>
    %1036 = vector.broadcast %1035 : vector<1x32xf32> to vector<8x32xf32>
    %1037 = arith.cmpf oeq, %1032, %1036 : vector<8x32xf32>
    %c8_i32 = arith.constant 8 : i32
    %1038 = vector.broadcast %c8_i32 : i32 to vector<8x32xi32>
    %1039 = arith.select %1037, %1033, %1038 : vector<8x32xi1>, vector<8x32xi32>
    %cst_285 = arith.constant dense<2147483647> : vector<32xi32>
    %1040 = vector.multi_reduction <minsi>, %1039, %cst_285 [0] : vector<8x32xi32> to vector<32xi32>
    %1041 = vector.shape_cast %1040 : vector<32xi32> to vector<1x32xi32>
    %1042 = vector.broadcast %1041 : vector<1x32xi32> to vector<8x32xi32>
    %1043 = arith.cmpi eq, %1033, %1042 : vector<8x32xi32>
    %1044 = vector.extract_strided_slice %1043 {offsets = [0, 0], sizes = [8, 16], strides = [1, 1]} : vector<8x32xi1> to vector<8x16xi1>
    %cst_286 = arith.constant 0.000000e+00 : f32
    %1045 = vector.broadcast %cst_286 : f32 to vector<8x16xf32>
    %1046 = arith.select %1044, %1020, %1045 : vector<8x16xi1>, vector<8x16xf32>
    %cst_287 = arith.constant dense<0.000000e+00> : vector<16xf32>
    %1047 = vector.multi_reduction <add>, %1046, %cst_287 [0] : vector<8x16xf32> to vector<16xf32>
    %1048 = vector.shape_cast %1047 : vector<16xf32> to vector<1x16xf32>
    %1049 = vector.extract_strided_slice %1043 {offsets = [0, 16], sizes = [8, 16], strides = [1, 1]} : vector<8x32xi1> to vector<8x16xi1>
    %cst_288 = arith.constant 0.000000e+00 : f32
    %1050 = vector.broadcast %cst_288 : f32 to vector<8x16xf32>
    %1051 = arith.select %1049, %1021, %1050 : vector<8x16xi1>, vector<8x16xf32>
    %cst_289 = arith.constant dense<0.000000e+00> : vector<16xf32>
    %1052 = vector.multi_reduction <add>, %1051, %cst_289 [0] : vector<8x16xf32> to vector<16xf32>
    %1053 = vector.shape_cast %1052 : vector<16xf32> to vector<1x16xf32>
    %cst_290 = arith.constant dense<0.000000e+00> : vector<1x1xf32>
    %1054 = tpu.matmul %1048, %1017, %cst_290 {dimension_numbers = #tpu.dot_dimension_numbers<[1], [0], [0], [1], [0, 0, 1, 1], [], []>} : vector<1x16xf32>, vector<16x1xf32>, vector<1x1xf32> -> vector<1x1xf32>
    %cst_291 = arith.constant dense<0.000000e+00> : vector<1x1xf32>
    %1055 = tpu.matmul %1053, %1019, %cst_291 {dimension_numbers = #tpu.dot_dimension_numbers<[1], [0], [0], [1], [0, 0, 1, 1], [], []>} : vector<1x16xf32>, vector<16x1xf32>, vector<1x1xf32> -> vector<1x1xf32>
    %1056 = arith.addf %1054, %1055 : vector<1x1xf32>
    %1057 = vector.extract_strided_slice %980 {offsets = [8, 0], sizes = [8, 16], strides = [1, 1]} : vector<16x16xf32> to vector<8x16xf32>
    %1058 = vector.extract_strided_slice %1010 {offsets = [8, 0], sizes = [8, 16], strides = [1, 1]} : vector<16x16xf32> to vector<8x16xf32>
    %c0_292 = arith.constant 0 : index
    %c1_293 = arith.constant 1 : index
    %c0_294 = arith.constant 0 : index
    %c0_295 = arith.constant 0 : index
    %1059 = vector.load %arg2[%c0_292, %c1_293, %c0_294, %c0_295] : memref<1x2x8x8xf32, #tpu.memory_space<vmem>>, vector<1x1x8x8xf32>
    %1060 = vector.shape_cast %1059 : vector<1x1x8x8xf32> to vector<8x8xf32>
    %cst_296 = arith.constant dense<0.000000e+00> : vector<8x16xf32>
    %1061 = tpu.matmul %1060, %1057, %cst_296 {dimension_numbers = #tpu.dot_dimension_numbers<[1], [0], [0], [1], [0, 0, 1, 1], [], []>} : vector<8x8xf32>, vector<8x16xf32>, vector<8x16xf32> -> vector<8x16xf32>
    %cst_297 = arith.constant dense<0.000000e+00> : vector<8x16xf32>
    %1062 = tpu.matmul %1060, %1058, %cst_297 {dimension_numbers = #tpu.dot_dimension_numbers<[1], [0], [0], [1], [0, 0, 1, 1], [], []>} : vector<8x8xf32>, vector<8x16xf32>, vector<8x16xf32> -> vector<8x16xf32>
    %cst_298 = arith.constant dense<0.000000e+00> : vector<8x32xf32>
    %1063 = tpu.matmul %1061, %1012, %cst_298 {dimension_numbers = #tpu.dot_dimension_numbers<[1], [0], [0], [1], [0, 0, 1, 1], [], []>} : vector<8x16xf32>, vector<16x32xf32>, vector<8x32xf32> -> vector<8x32xf32>
    %cst_299 = arith.constant dense<0.000000e+00> : vector<8x32xf32>
    %1064 = tpu.matmul %1062, %1014, %cst_299 {dimension_numbers = #tpu.dot_dimension_numbers<[1], [0], [0], [1], [0, 0, 1, 1], [], []>} : vector<8x16xf32>, vector<16x32xf32>, vector<8x32xf32> -> vector<8x32xf32>
    %1065 = arith.addf %1063, %1064 : vector<8x32xf32>
    %1066 = vector.broadcast %1015 : vector<8x1xf32> to vector<8x32xf32>
    %1067 = arith.addf %1065, %1066 : vector<8x32xf32>
    %cst_300 = arith.constant 0.000000e+00 : f32
    %1068 = vector.broadcast %cst_300 : f32 to vector<8x32xf32>
    %1069 = arith.maximumf %1067, %1068 : vector<8x32xf32>
    %1070 = tpu.iota {dimensions = array<i32: 0>} : vector<8x32xi32>
    %cst_301 = arith.constant dense<0xFF800000> : vector<32xf32>
    %1071 = vector.multi_reduction <maximumf>, %1069, %cst_301 [0] : vector<8x32xf32> to vector<32xf32>
    %1072 = vector.shape_cast %1071 : vector<32xf32> to vector<1x32xf32>
    %1073 = vector.broadcast %1072 : vector<1x32xf32> to vector<8x32xf32>
    %1074 = arith.cmpf oeq, %1069, %1073 : vector<8x32xf32>
    %c8_i32_302 = arith.constant 8 : i32
    %1075 = vector.broadcast %c8_i32_302 : i32 to vector<8x32xi32>
    %1076 = arith.select %1074, %1070, %1075 : vector<8x32xi1>, vector<8x32xi32>
    %cst_303 = arith.constant dense<2147483647> : vector<32xi32>
    %1077 = vector.multi_reduction <minsi>, %1076, %cst_303 [0] : vector<8x32xi32> to vector<32xi32>
    %1078 = vector.shape_cast %1077 : vector<32xi32> to vector<1x32xi32>
    %1079 = vector.broadcast %1078 : vector<1x32xi32> to vector<8x32xi32>
    %1080 = arith.cmpi eq, %1070, %1079 : vector<8x32xi32>
    %1081 = vector.extract_strided_slice %1080 {offsets = [0, 0], sizes = [8, 16], strides = [1, 1]} : vector<8x32xi1> to vector<8x16xi1>
    %cst_304 = arith.constant 0.000000e+00 : f32
    %1082 = vector.broadcast %cst_304 : f32 to vector<8x16xf32>
    %1083 = arith.select %1081, %1057, %1082 : vector<8x16xi1>, vector<8x16xf32>
    %cst_305 = arith.constant dense<0.000000e+00> : vector<16xf32>
    %1084 = vector.multi_reduction <add>, %1083, %cst_305 [0] : vector<8x16xf32> to vector<16xf32>
    %1085 = vector.shape_cast %1084 : vector<16xf32> to vector<1x16xf32>
    %1086 = vector.extract_strided_slice %1080 {offsets = [0, 16], sizes = [8, 16], strides = [1, 1]} : vector<8x32xi1> to vector<8x16xi1>
    %cst_306 = arith.constant 0.000000e+00 : f32
    %1087 = vector.broadcast %cst_306 : f32 to vector<8x16xf32>
    %1088 = arith.select %1086, %1058, %1087 : vector<8x16xi1>, vector<8x16xf32>
    %cst_307 = arith.constant dense<0.000000e+00> : vector<16xf32>
    %1089 = vector.multi_reduction <add>, %1088, %cst_307 [0] : vector<8x16xf32> to vector<16xf32>
    %1090 = vector.shape_cast %1089 : vector<16xf32> to vector<1x16xf32>
    %cst_308 = arith.constant dense<0.000000e+00> : vector<1x1xf32>
    %1091 = tpu.matmul %1085, %1017, %cst_308 {dimension_numbers = #tpu.dot_dimension_numbers<[1], [0], [0], [1], [0, 0, 1, 1], [], []>} : vector<1x16xf32>, vector<16x1xf32>, vector<1x1xf32> -> vector<1x1xf32>
    %cst_309 = arith.constant dense<0.000000e+00> : vector<1x1xf32>
    %1092 = tpu.matmul %1090, %1019, %cst_309 {dimension_numbers = #tpu.dot_dimension_numbers<[1], [0], [0], [1], [0, 0, 1, 1], [], []>} : vector<1x16xf32>, vector<16x1xf32>, vector<1x1xf32> -> vector<1x1xf32>
    %1093 = arith.addf %1091, %1092 : vector<1x1xf32>
    %1094 = tpu.concatenate %1056, %1093 in 1 : vector<1x1xf32>, vector<1x1xf32> -> vector<1x2xf32>
    %c0_310 = arith.constant 0 : index
    %c0_311 = arith.constant 0 : index
    %c0_312 = arith.constant 0 : index
    %1095 = vector.load %arg14[%c0_310, %c0_311, %c0_312] : memref<1x1x2xf32, #tpu.memory_space<vmem>>, vector<1x1x2xf32>
    %1096 = vector.shape_cast %1095 : vector<1x1x2xf32> to vector<1x2xf32>
    %1097 = vector.shape_cast %1094 : vector<1x2xf32> to vector<1x1x2xf32>
    tpu.vector_store %arg14[%c0_310, %c0_311, %c0_312], %1097 {strides = array<i32>} : memref<1x1x2xf32, #tpu.memory_space<vmem>>, vector<1x1x2xf32>,
    return
  }
  func.func @transform_0(%arg0: i32) -> (i32, i32, i32) {
    %c0_i32 = arith.constant 0 : i32
    %c0_i32_0 = arith.constant 0 : i32
    %c0_i32_1 = arith.constant 0 : i32
    return %arg0, %c0_i32, %c0_i32_0 : i32, i32, i32
  }
  func.func @transform_1(%arg0: i32) -> (i32, i32, i32, i32) {
    %c0_i32 = arith.constant 0 : i32
    %c0_i32_0 = arith.constant 0 : i32
    %c0_i32_1 = arith.constant 0 : i32
    %c0_i32_2 = arith.constant 0 : i32
    return %arg0, %c0_i32, %c0_i32_0, %c0_i32_1 : i32, i32, i32, i32
  }
  func.func @transform_2(%arg0: i32) -> (i32, i32) {
    %c0_i32 = arith.constant 0 : i32
    %c0_i32_0 = arith.constant 0 : i32
    %c0_i32_1 = arith.constant 0 : i32
    return %c0_i32, %c0_i32_0 : i32, i32
  }
  func.func @transform_3(%arg0: i32) -> (i32, i32) {
    %c0_i32 = arith.constant 0 : i32
    %c0_i32_0 = arith.constant 0 : i32
    %c0_i32_1 = arith.constant 0 : i32
    return %c0_i32, %c0_i32_0 : i32, i32
  }
  func.func @transform_4(%arg0: i32) -> (i32, i32, i32) {
    %c0_i32 = arith.constant 0 : i32
    %c0_i32_0 = arith.constant 0 : i32
    %c0_i32_1 = arith.constant 0 : i32
    %c0_i32_2 = arith.constant 0 : i32
    return %c0_i32, %c0_i32_0, %c0_i32_1 : i32, i32, i32
  }
  func.func @transform_5(%arg0: i32) -> (i32, i32, i32) {
    %c0_i32 = arith.constant 0 : i32
    %c0_i32_0 = arith.constant 0 : i32
    %c0_i32_1 = arith.constant 0 : i32
    %c0_i32_2 = arith.constant 0 : i32
    return %c0_i32, %c0_i32_0, %c0_i32_1 : i32, i32, i32
  }
  func.func @transform_6(%arg0: i32) -> (i32, i32) {
    %c0_i32 = arith.constant 0 : i32
    %c0_i32_0 = arith.constant 0 : i32
    %c0_i32_1 = arith.constant 0 : i32
    return %c0_i32, %c0_i32_0 : i32, i32
  }
  func.func @transform_7(%arg0: i32) -> (i32, i32) {
    %c0_i32 = arith.constant 0 : i32
    %c0_i32_0 = arith.constant 0 : i32
    %c0_i32_1 = arith.constant 0 : i32
    return %c0_i32, %c0_i32_0 : i32, i32
  }
  func.func @transform_8(%arg0: i32) -> (i32, i32, i32) {
    %c0_i32 = arith.constant 0 : i32
    %c0_i32_0 = arith.constant 0 : i32
    %c0_i32_1 = arith.constant 0 : i32
    %c0_i32_2 = arith.constant 0 : i32
    return %c0_i32, %c0_i32_0, %c0_i32_1 : i32, i32, i32
  }
  func.func @transform_9(%arg0: i32) -> (i32, i32, i32) {
    %c0_i32 = arith.constant 0 : i32
    %c0_i32_0 = arith.constant 0 : i32
    %c0_i32_1 = arith.constant 0 : i32
    %c0_i32_2 = arith.constant 0 : i32
    return %c0_i32, %c0_i32_0, %c0_i32_1 : i32, i32, i32
  }
  func.func @transform_10(%arg0: i32) -> (i32, i32, i32) {
    %c0_i32 = arith.constant 0 : i32
    %c0_i32_0 = arith.constant 0 : i32
    %c0_i32_1 = arith.constant 0 : i32
    %c0_i32_2 = arith.constant 0 : i32
    return %c0_i32, %c0_i32_0, %c0_i32_1 : i32, i32, i32
  }
  func.func @transform_11(%arg0: i32) -> (i32, i32) {
    %c0_i32 = arith.constant 0 : i32
    %c0_i32_0 = arith.constant 0 : i32
    %c0_i32_1 = arith.constant 0 : i32
    return %c0_i32, %c0_i32_0 : i32, i32
  }
  func.func @transform_12(%arg0: i32) -> (i32, i32, i32) {
    %c0_i32 = arith.constant 0 : i32
    %c0_i32_0 = arith.constant 0 : i32
    %c0_i32_1 = arith.constant 0 : i32
    %c0_i32_2 = arith.constant 0 : i32
    return %c0_i32, %c0_i32_0, %c0_i32_1 : i32, i32, i32
  }
  func.func @transform_13(%arg0: i32) -> (i32, i32, i32) {
    %c0_i32 = arith.constant 0 : i32
    %c0_i32_0 = arith.constant 0 : i32
    %c0_i32_1 = arith.constant 0 : i32
    return %arg0, %c0_i32, %c0_i32_0 : i32, i32, i32
  }
}

</mosaic_0001>

<bundles_post_ra>
// kernel: _forward_impl.1
= control target key start
LH: loop header
LB: loop body
LE: loop exit
PB: predicated region body
PF: predicated region fallthrough
CT: control target
= control target key end

     0   :  { %vm118_vm0 = vcmask 1043456   ;;  %vm69_vm1 = vcmask 31744   ;;  %v7509_v9 = vmov 0.0   ;;  %s8874_s0 = inlined_call_operand.vmem [shape: f32[1,128,4], index: 0, kind: input, shape index: {}]   ;;  %s8875_s1 = inlined_call_operand.vmem [shape: f32[1,2,8,8], index: 1, kind: input, shape index: {}]   ;;  %s8876_s2 = inlined_call_operand.vmem [shape: f32[4,96], index: 2, kind: input, shape index: {}]   ;;  %s8877_s3 = inlined_call_operand.vmem [shape: f32[1,96], index: 3, kind: input, shape index: {}]   ;;  %s8878_s4 = inlined_call_operand.vmem [shape: f32[2,16,48], index: 4, kind: input, shape index: {}]   ;;  %s8879_s5 = inlined_call_operand.vmem [shape: f32[2,1,48], index: 5, kind: input, shape index: {}]   ;;  %s8880_s6 = inlined_call_operand.vmem [shape: f32[32,96], index: 6, kind: input, shape index: {}]   ;;  %s8881_s7 = inlined_call_operand.vmem [shape: f32[1,96], index: 7, kind: input, shape index: {}]   ;;  %s8882_s8 = inlined_call_operand.vmem [shape: f32[2,16,48], index: 8, kind: input, shape index: {}]   ;;  %s8883_s9 = inlined_call_operand.vmem [shape: f32[2,1,48], index: 9, kind: input, shape index: {}]   ;;  %s8884_s10 = inlined_call_operand.vmem [shape: f32[2,16,32], index: 10, kind: input, shape index: {}]   ;;  %s8885_s11 = inlined_call_operand.vmem [shape: f32[8,1], index: 11, kind: input, shape index: {}]   ;;  %s8886_s12 = inlined_call_operand.vmem [shape: f32[2,16,1], index: 12, kind: input, shape index: {}]   ;;  %s8887_s13 = inlined_call_operand.hbm [shape: f32[1,1,2], index: 13, kind: output, shape index: {}]  }
   0x1   :  { %v61_v0 = vld [vmem:[%s8876_s2] sm:$0xf]  ;;  %v46_v2 = vld [vmem:[%s8874_s0 + $0x8] sm:$0xff]  ;;  %v6192_v3 = vld [vmem:[%s8878_s4 + $0x10] sm:$0xff]  ;;  %6590 = vmatprep.mubr.f32.mxu1 %v7509_v9 }
   0x2   :  { %v45_v1 = vld [vmem:[%s8874_s0] sm:$0xff]  ;;  %6553 = vmatprep.subr.msk.mxu0 %vm118_vm0, %v61_v0  ;;  %v6193_v4 = vld [vmem:[%s8878_s4 + $0x18] sm:$0xff]  ;;  %v285_v7 = vld [vmem:[%s8878_s4 + $0x8] sm:$0xff] }
   0x3   :  { %6555 = vmatprep.mubr.msk.f32.mxu0 %vm69_vm1, %v45_v1  ;;  %v284_v5 = vld [vmem:[%s8878_s4] sm:$0xff]  ;;  %6554 = vmatpush3.msk.msra.mxu0 %vm118_vm0, %v61_v0  ;;  %v7611_v6 = vpack.c.bf16 %v6193_v4, %v6192_v3  ;;  %v47_v8 = vld [vmem:[%s8874_s0 + $0x10] sm:$0xff]  ;;  %v48_v11 = vld [vmem:[%s8874_s0 + $0x18] sm:$0xff] }
   0x4   :  { %6556 = vmatmul.mubr.msk.f32.vlgmr.msra.gmra.mrb[0].mxu0 %vm69_vm1, %v46_v2  ;;  %v7621_v10 = vpack.c.bf16 %v285_v7, %v284_v5  ;;  %v49_v12 = vld [vmem:[%s8874_s0 + $0x20] sm:$0xff] }
   0x5   :  { %6916 = vmatprep.subr.bf16.mxu1 %v7611_v6  ;;  %6558 = vmatprep.mubr.msk.f32.mxu0 %vm69_vm1, %v47_v8 }
   0x6   :  { %6918 = vmatpush3.bf16.msra.mxu1 %v7611_v6  ;;  %6912 = vmatprep.subr.bf16.mxu0 %v7621_v10 }
   0x7   :  { %6914 = vmatpush3.bf16.msra.mxu0 %v7621_v10  ;;  %6920 = vmatprep.subr.bf16.mxu1 %v7621_v10 }
   0x8   :  { %6559 = vmatmul.mubr.msk.f32.gmra.mrb[2].mxu0 %vm69_vm1, %v48_v11  ;;  %6944 = vmatprep.subr.bf16.mxu0 %v7621_v10 }
   0x9   :  { %18 = vsyncpa [#allocation5], 0  ;;  %6591 = vmatmul.mubr.f32.vlgmr.msra.gmra.mrb[0].mxu1 %v7509_v9  ;;  %6561 = vmatprep.mubr.msk.f32.mxu0 %vm69_vm1, %v49_v12  ;;  %v50_v13 = vld [vmem:[%s8874_s0 + $0x28] sm:$0xff]  ;;  %v51_v14 = vld [vmem:[%s8874_s0 + $0x30] sm:$0xff]  ;;  %vm267_vm2 = vcmask 785408   ;;  %s7511_s15 = smov 16  }
   0xa   :  { %6922 = vmatpush3.bf16.msra.mxu1 %v7621_v10  ;;  %v52_v15 = vld [vmem:[%s8874_s0 + $0x38] sm:$0xff]  ;;  %v53_v16 = vld [vmem:[%s8874_s0 + $0x40] sm:$0xff]  ;;  %v54_v17 = vld [vmem:[%s8874_s0 + $0x48] sm:$0xff]  ;;  %s7512_s2 = smov 96   ;;  %s7513_s18 = smov 32   ;;  %vm300_vm3 = vcmask 130048  }
   0xb   :  { %6924 = vmatprep.subr.bf16.mxu1 %v7611_v6  ;;  %v55_v18 = vld [vmem:[%s8874_s0 + $0x50] sm:$0xff]  ;;  %v56_v19 = vld [vmem:[%s8874_s0 + $0x58] sm:$0xff]  ;;  %v57_v20 = vld [vmem:[%s8874_s0 + $0x60] sm:$0xff]  ;;  %s7514_s19 = smov 112   ;;  %s7515_s20 = smov 64   ;;  %vm590_vm4 = vcmask 261248  }
   0xc   :  { %6562 = vmatmul.mubr.msk.f32.gmra.mrb[4].mxu0 %vm69_vm1, %v50_v13  ;;  %v58_v21 = vld [vmem:[%s8874_s0 + $0x68] sm:$0xff]  ;;  %v59_v22 = vld [vmem:[%s8874_s0 + $0x70] sm:$0xff]  ;;  %v60_v23 = vld [vmem:[%s8874_s0 + $0x78] sm:$0xff]  ;;  %vm2692_vm5 = vcmask 261120   ;;  %vm7517_vm6 = vmmov 0   ;;  %vm5174_vm7 = vcmask 64512  }
   0xd   :  { %6564 = vmatprep.mubr.msk.f32.mxu0 %vm69_vm1, %v51_v14  ;;  %v6174_v24 = vld [vmem:[%s8877_s3] ss:$0 sm:$0xff]  ;;  %v7697_v30 = vld [vmem:[%s8879_s5 + $0x1] ss:$0 sm:$0xff]  ;;  %s7510_s3 = smov 48  }
   0xe   :  { %v7720_v62 = vld [vmem:[%s8879_s5] ss:$0 sm:$0xff] }
  0x10   :  { %6565 = vmatmul.mubr.msk.f32.gmra.mrb[6].mxu0 %vm69_vm1, %v52_v15 }
  0x11   :  { %6567 = vmatprep.mubr.msk.f32.mxu0 %vm69_vm1, %v53_v16 }
  0x14   :  { %6568 = vmatmul.mubr.msk.f32.gmra.mrb[8].mxu0 %vm69_vm1, %v54_v17 }
  0x15   :  { %6570 = vmatprep.mubr.msk.f32.mxu0 %vm69_vm1, %v55_v18 }
  0x18   :  { %6571 = vmatmul.mubr.msk.f32.gmra.mrb[10].mxu0 %vm69_vm1, %v56_v19 }
  0x19   :  { %6573 = vmatprep.mubr.msk.f32.mxu0 %vm69_vm1, %v57_v20 }
  0x1c   :  { %6574 = vmatmul.mubr.msk.f32.gmra.mrb[12].mxu0 %vm69_vm1, %v58_v21 }
  0x1d   :  { %6576 = vmatprep.mubr.msk.f32.mxu0 %vm69_vm1, %v59_v22 }
  0x20   :  { %6577 = vmatmul.mubr.msk.f32.gmra.mrb[14].mxu0 %vm69_vm1, %v60_v23 }
  0x21   :  { %6583 = vmatprep.mubr.f32.mxu0 %v7509_v9 }
  0x24   :  { %6584 = vmatmul.mubr.f32.vlgmr.msra.gmra.mrb[16].mxu0 %v7509_v9 }
  0x25   :  { %6946 = vmatpush3.bf16.msra.mxu0 %v7621_v10 }
  0x26   :  { %6952 = vmatprep.subr.bf16.mxu0 %v7621_v10 }
  0xd7   :  { %v6557_v25 = vpop.f32.mrb[0].mxu0 }
  0xd8   :  { %v194_v26 = vadd.f32 %v6557_v25, %v6174_v24  ;;  %v188_v27 = vpop.f32.mrb[1].mxu0 }
  0xd9   :  { %v189_v28 = vadd.f32 %v6174_v24, %v188_v27 }
  0xda   :  { %269 = vst.msk [vmem:[#allocation2 + $0x8] sm:$0xff] %vm267_vm2, %v194_v26 }
  0xdb   :  { %268 = vst.msk [vmem:[#allocation2] sm:$0xff] %vm267_vm2, %v189_v28  ;;  %v6560_v29 = vpop.f32.mrb[2].mxu0 }
  0xdc   :  { %v204_v31 = vadd.f32 %v6560_v29, %v6174_v24  ;;  %v6592_v32 = vpop.f32.mrb[0].mxu1  ;;  %v198_v33 = vpop.f32.mrb[3].mxu0 }
  0xdd   :  { %v199_v34 = vadd.f32 %v6174_v24, %v198_v33  ;;  %v505_v35 = vpop.f32.mrb[1].mxu1  ;;  %v511_v38 = vadd.f32 %v6592_v32, %v7697_v30 }
  0xde   :  { %271 = vst.msk [vmem:[#allocation2 + $0x18] sm:$0xff] %vm267_vm2, %v204_v31  ;;  %v506_v36 = vadd.f32 %v7697_v30, %v505_v35 }
  0xdf   :  { %270 = vst.msk [vmem:[#allocation2 + $0x10] sm:$0xff] %vm267_vm2, %v199_v34  ;;  %v6563_v37 = vpop.f32.mrb[4].mxu0 }
  0xe0   :  { %516 = vrot.lane.b32.xlu0 %v506_v36, %s7510_s3  ;;  %v214_v39 = vadd.f32 %v6563_v37, %v6174_v24  ;;  %v208_v40 = vpop.f32.mrb[5].mxu0 }
  0xe1   :  { %v209_v41 = vadd.f32 %v6174_v24, %v208_v40  ;;  %v293_v5 = vld [vmem:[#allocation2 + $0x8] sm:$0xff] }
  0xe2   :  { %273 = vst.msk [vmem:[#allocation2 + $0x28] sm:$0xff] %vm267_vm2, %v214_v39  ;;  %v292_v3 = vld [vmem:[#allocation2] sm:$0xff] }
  0xe3   :  { %272 = vst.msk [vmem:[#allocation2 + $0x20] sm:$0xff] %vm267_vm2, %v209_v41  ;;  %v6566_v42 = vpop.f32.mrb[6].mxu0 }
  0xe4   :  { %518 = vrot.lane.b32.xlu0 %v511_v38, %s7510_s3  ;;  %v224_v43 = vadd.f32 %v6566_v42, %v6174_v24  ;;  %v218_v44 = vpop.f32.mrb[7].mxu0 }
  0xe5   :  { %v219_v45 = vadd.f32 %v6174_v24, %v218_v44 }
  0xe6   :  { %275 = vst.msk [vmem:[#allocation2 + $0x38] sm:$0xff] %vm267_vm2, %v224_v43 }
  0xe7   :  { %274 = vst.msk [vmem:[#allocation2 + $0x30] sm:$0xff] %vm267_vm2, %v219_v45  ;;  %v6569_v46 = vpop.f32.mrb[8].mxu0 }
  0xe8   :  { %536 = vrot.lane.b32.xlu0 %v506_v36, %s7511_s15  ;;  %v234_v47 = vadd.f32 %v6569_v46, %v6174_v24  ;;  %v228_v48 = vpop.f32.mrb[9].mxu0 }
  0xe9   :  { %v229_v49 = vadd.f32 %v6174_v24, %v228_v48 }
  0xea   :  { %277 = vst.msk [vmem:[#allocation2 + $0x48] sm:$0xff] %vm267_vm2, %v234_v47 }
  0xeb   :  { %276 = vst.msk [vmem:[#allocation2 + $0x40] sm:$0xff] %vm267_vm2, %v229_v49  ;;  %v6572_v50 = vpop.f32.mrb[10].mxu0 }
  0xec   :  { %v244_v51 = vadd.f32 %v6572_v50, %v6174_v24  ;;  %v238_v52 = vpop.f32.mrb[11].mxu0 }
  0xed   :  { %v239_v53 = vadd.f32 %v6174_v24, %v238_v52 }
  0xee   :  { %279 = vst.msk [vmem:[#allocation2 + $0x58] sm:$0xff] %vm267_vm2, %v244_v51 }
  0xef   :  { %278 = vst.msk [vmem:[#allocation2 + $0x50] sm:$0xff] %vm267_vm2, %v239_v53  ;;  %v6575_v54 = vpop.f32.mrb[12].mxu0 }
  0xf0   :  { %v254_v55 = vadd.f32 %v6575_v54, %v6174_v24  ;;  %v248_v56 = vpop.f32.mrb[13].mxu0 }
  0xf1   :  { %v249_v57 = vadd.f32 %v6174_v24, %v248_v56 }
  0xf2   :  { %281 = vst.msk [vmem:[#allocation2 + $0x68] sm:$0xff] %vm267_vm2, %v254_v55 }
  0xf3   :  { %280 = vst.msk [vmem:[#allocation2 + $0x60] sm:$0xff] %vm267_vm2, %v249_v57  ;;  %v6578_v58 = vpop.f32.mrb[14].mxu0 }
  0xf4   :  { %v264_v59 = vadd.f32 %v6578_v58, %v6174_v24  ;;  %v258_v60 = vpop.f32.mrb[15].mxu0 }
  0xf5   :  { %v259_v61 = vadd.f32 %v6174_v24, %v258_v60 }
  0xf6   :  { %283 = vst.msk [vmem:[#allocation2 + $0x78] sm:$0xff] %vm267_vm2, %v264_v59 }
  0xf7   :  { %282 = vst.msk [vmem:[#allocation2 + $0x70] sm:$0xff] %vm267_vm2, %v259_v61  ;;  %v6585_v63 = vpop.f32.mrb[16].mxu0 }
  0xf8   :  { %v370_v0 = vpop.f32.mrb[17].mxu0  ;;  %v376_v2 = vadd.f32 %v6585_v63, %v7720_v62 }
  0xf9   :  { %v371_v1 = vadd.f32 %v7720_v62, %v370_v0 }
  0xfa   :  { %v380_v7 = vadd.f32 %v376_v2, %v293_v5 }
  0xfb   :  { %395 = vrot.lane.b32.xlu1 %v371_v1, %s7512_s2  ;;  %v379_v4 = vadd.f32 %v371_v1, %v292_v3 }
  0xfc   :  { %v6197_v11 = vmul.f32 -1.442695, %v380_v7 }
  0xfd   :  { %v6196_v8 = vmul.f32 -1.442695, %v379_v4  ;;  %v432_v17 = vld [vmem:[#allocation2 + $0x78] sm:$0xff] }
  0xfe   :  { %v431_v13 = vld [vmem:[#allocation2 + $0x70] sm:$0xff] }
  0xff   :  { %397 = vrot.lane.b32.xlu1 %v376_v2, %s7512_s2  ;;  %7089 = vpow2.f32 %v6196_v8 }
 0x100   :  { %7091 = vpow2.f32 %v6197_v11 }
 0x103   :  { %538 = vrot.lane.b32.xlu1 %v511_v38, %s7511_s15 }
 0x109   :  { %v7090_v20 = vpop.eup %7089 }
 0x10a   :  { %v387_v21 = vadd.f32 1.0, %v7090_v20  ;;  %v7092_v22 = vpop.eup %7091 }
 0x10b   :  { %v388_v25 = vadd.f32 1.0, %v7092_v22 }
 0x152   :  { %v517_v12 = vpop.permute.xlu0 %516 }
 0x153   :  { %v522_v14 = vadd.f32 %v517_v12, %v431_v13 }
 0x155   :  { %v6199_v15 = vmul.f32 -1.442695, %v522_v14 }
 0x156   :  { %v519_v16 = vpop.permute.xlu0 %518 }
 0x157   :  { %7093 = vpow2.f32 %v6199_v15  ;;  %v523_v18 = vadd.f32 %v519_v16, %v432_v17 }
 0x159   :  { %v6200_v19 = vmul.f32 -1.442695, %v523_v18 }
 0x15a   :  { %v537_v34 = vpop.permute.xlu0 %536 }
 0x15b   :  { %7095 = vpow2.f32 %v6200_v19 }
 0x15c   :  { %7097 = vrcp.f32 %v387_v21 }
 0x161   :  { %v7094_v23 = vpop.eup %7093 }
 0x162   :  { %v530_v24 = vadd.f32 1.0, %v7094_v23 }
 0x164   :  { %7099 = vrcp.f32 %v530_v24 }
 0x165   :  { %v7096_v26 = vpop.eup %7095  ;;  %7101 = vrcp.f32 %v388_v25  ;;  %v594_v25 = vld [vmem:[#allocation2 + $0x18] sm:$0xff] }
 0x166   :  { %v531_v27 = vadd.f32 1.0, %v7096_v26  ;;  %v7098_v28 = vpop.eup %7097 }
 0x167   :  { %v415_v53 = vsub.f32 1.0, %v7098_v28  ;;  %v427_v55 = vmul.f32 0.0, %v7098_v28 }
 0x168   :  { %7103 = vrcp.f32 %v531_v27  ;;  %v593_v27 = vld [vmem:[#allocation2 + $0x10] sm:$0xff] }
 0x16d   :  { %v396_v29 = vpop.permute.xlu1 %395 }
 0x16e   :  { %v401_v31 = vmul.f32 %v7098_v28, %v396_v29  ;;  %v7100_v32 = vpop.eup %7099 }
 0x16f   :  { %v7102_v33 = vpop.eup %7101  ;;  %v542_v36 = vmul.f32 %v7100_v32, %v537_v34  ;;  %v556_v60 = vsub.f32 1.0, %v7100_v32  ;;  %v568_v1 = vmul.f32 0.0, %v7100_v32 }
 0x170   :  { %405 = vrot.lane.b32.xlu0 %v401_v31, %s7513_s18  ;;  %v416_v58 = vsub.f32 1.0, %v7102_v33  ;;  %v428_v61 = vmul.f32 0.0, %v7102_v33 }
 0x171   :  { %v398_v35 = vpop.permute.xlu1 %397 }
 0x172   :  { %v402_v37 = vmul.f32 %v7102_v33, %v398_v35  ;;  %v7104_v38 = vpop.eup %7103 }
 0x173   :  { %v557_v4 = vsub.f32 1.0, %v7104_v38  ;;  %v569_v8 = vmul.f32 0.0, %v7104_v38 }
 0x174   :  { %407 = vrot.lane.b32.xlu1 %v402_v37, %s7513_s18  ;;  %546 = vrot.lane.b32.xlu0 %v542_v36, %s7513_s18  ;;  %v727_v36 = vld [vmem:[#allocation2 + $0x68] sm:$0xff] }
 0x175   :  { %v539_v39 = vpop.permute.xlu1 %538 }
 0x176   :  { %v543_v40 = vmul.f32 %v7104_v38, %v539_v39  ;;  %v726_v39 = vld [vmem:[#allocation2 + $0x60] sm:$0xff] }
 0x178   :  { %548 = vrot.lane.b32.xlu1 %v543_v40, %s7513_s18 }
 0x1e2   :  { %v406_v41 = vpop.permute.xlu0 %405 }
 0x1e3   :  { %v411_v42 = vadd.f32 %v406_v41, %v292_v3 }
 0x1e5   :  { %7105 = vtanh.f32 %v411_v42 }
 0x1e6   :  { %v408_v43 = vpop.permute.xlu1 %407  ;;  %v547_v44 = vpop.permute.xlu0 %546 }
 0x1e7   :  { %v412_v45 = vadd.f32 %v408_v43, %v293_v5  ;;  %v552_v46 = vadd.f32 %v547_v44, %v431_v13 }
 0x1e9   :  { %7107 = vtanh.f32 %v412_v45 }
 0x1ea   :  { %7109 = vtanh.f32 %v552_v46  ;;  %v549_v47 = vpop.permute.xlu1 %548 }
 0x1eb   :  { %v553_v48 = vadd.f32 %v549_v47, %v432_v17 }
 0x1ed   :  { %7111 = vtanh.f32 %v553_v48 }
 0x1ef   :  { %v7106_v49 = vpop.eup %7105 }
 0x1f0   :  { %419 = vrot.lane.b32.xlu0 %v7106_v49, %s7514_s19 }
 0x1f3   :  { %v7108_v50 = vpop.eup %7107 }
 0x1f4   :  { %v7110_v51 = vpop.eup %7109  ;;  %421 = vrot.lane.b32.xlu1 %v7108_v50, %s7514_s19 }
 0x1f5   :  { %560 = vrot.lane.b32.xlu0 %v7110_v51, %s7514_s19 }
 0x1f7   :  { %v7112_v52 = vpop.eup %7111 }
 0x1f8   :  { %562 = vrot.lane.b32.xlu1 %v7112_v52, %s7514_s19 }
 0x262   :  { %v420_v54 = vpop.permute.xlu0 %419 }
 0x263   :  { %v425_v56 = vmul.f32 %v420_v54, %v415_v53 }
 0x265   :  { %v7736_v57 = vadd.f32 %v427_v55, %v425_v56 }
 0x266   :  { %v422_v59 = vpop.permute.xlu1 %421 }
 0x267   :  { %v426_v63 = vmul.f32 %v422_v59, %v416_v58  ;;  %v561_v0 = vpop.permute.xlu0 %560  ;;  %574 = vrot.lane.b32.xlu0 %v7736_v57, %s7514_s19 }
 0x268   :  { %v566_v2 = vmul.f32 %v561_v0, %v556_v60 }
 0x269   :  { %v7740_v3 = vadd.f32 %v428_v61, %v426_v63 }
 0x26a   :  { %v7742_v5 = vadd.f32 %v568_v1, %v566_v2  ;;  %v563_v7 = vpop.permute.xlu1 %562 }
 0x26b   :  { %v567_v11 = vmul.f32 %v563_v7, %v557_v4  ;;  %576 = vrot.lane.b32.xlu1 %v7740_v3, %s7514_s19 }
 0x26c   :  { %728 = vrot.lane.b32.xlu0 %v7742_v5, %s7515_s20 }
 0x26d   :  { %v7748_v12 = vadd.f32 %v569_v8, %v567_v11 }
 0x26f   :  { %730 = vrot.lane.b32.xlu1 %v7748_v12, %s7515_s20 }
 0x2d9   :  { %v575_v13 = vpop.permute.xlu0 %574 }
 0x2da   :  { %580 = vst.msk [vmem:[#allocation3] sm:$0xff] %vm300_vm3, %v575_v13  ;;  %6597 = vmatprep.mubr.msk.f32.mxu1 %vm300_vm3, %v575_v13 }
 0x2dd   :  { %v577_v14 = vpop.permute.xlu1 %576 }
 0x2de   :  { %581 = vst.msk [vmem:[#allocation3 + $0x8] sm:$0xff] %vm300_vm3, %v577_v14  ;;  %v729_v15 = vpop.permute.xlu0 %728  ;;  %6598 = vmatmul.mubr.msk.f32.vlgmr.msra.gmra.mrb[2].mxu1 %vm300_vm3, %v577_v14 }
 0x2df   :  { %6926 = vmatpush3.bf16.msra.mxu1 %v7611_v6  ;;  %6604 = vmatprep.mubr.msk.f32.mxu1 %vm300_vm3, %v729_v15 }
 0x2e0   :  { %6928 = vmatprep.subr.bf16.mxu1 %v7621_v10 }
 0x2e1   :  { %v731_v16 = vpop.permute.xlu1 %730 }
 0x2e2   :  { %6605 = vmatmul.mubr.msk.f32.vlgmr.msra.gmra.mrb[4].mxu1 %vm300_vm3, %v731_v16 }
 0x2e3   :  { %6930 = vmatpush3.bf16.msra.mxu1 %v7621_v10 }
 0x2e4   :  { %6932 = vmatprep.subr.bf16.mxu1 %v7611_v6 }
 0x3b1   :  { %v6599_v17 = vpop.f32.mrb[2].mxu1 }
 0x3b2   :  { %v665_v18 = vpop.f32.mrb[3].mxu1  ;;  %v671_v23 = vadd.f32 %v6599_v17, %v7720_v62 }
 0x3b3   :  { %v666_v24 = vadd.f32 %v7720_v62, %v665_v18 }
 0x3b4   :  { %v675_v26 = vadd.f32 %v671_v23, %v594_v25 }
 0x3b5   :  { %v6606_v19 = vpop.f32.mrb[4].mxu1  ;;  %v674_v28 = vadd.f32 %v666_v24, %v593_v27 }
 0x3b6   :  { %v808_v20 = vadd.f32 %v6606_v19, %v7697_v30  ;;  %v802_v21 = vpop.f32.mrb[5].mxu1  ;;  %v6204_v29 = vmul.f32 -1.442695, %v675_v26 }
 0x3b7   :  { %v803_v22 = vadd.f32 %v7697_v30, %v802_v21  ;;  %v6203_v31 = vmul.f32 -1.442695, %v674_v28 }
 0x3b8   :  { %815 = vrot.lane.b32.xlu1 %v808_v20, %s7510_s3  ;;  %7113 = vpow2.f32 %v6204_v29 }
 0x3b9   :  { %813 = vrot.lane.b32.xlu0 %v803_v22, %s7510_s3  ;;  %7115 = vpow2.f32 %v6203_v31 }
 0x3bc   :  { %692 = vrot.lane.b32.xlu1 %v671_v23, %s7512_s2 }
 0x3bd   :  { %690 = vrot.lane.b32.xlu0 %v666_v24, %s7512_s2 }
 0x3c0   :  { %835 = vrot.lane.b32.xlu1 %v808_v20, %s7511_s15 }
 0x3c1   :  { %833 = vrot.lane.b32.xlu0 %v803_v22, %s7511_s15 }
 0x3c2   :  { %v7114_v32 = vpop.eup %7113 }
 0x3c3   :  { %v7116_v33 = vpop.eup %7115  ;;  %v683_v34 = vadd.f32 1.0, %v7114_v32 }
 0x3c4   :  { %v682_v35 = vadd.f32 1.0, %v7116_v33 }
 0x3c5   :  { %7117 = vrcp.f32 %v683_v34 }
 0x3c6   :  { %7119 = vrcp.f32 %v682_v35 }
 0x3cf   :  { %v7118_v43 = vpop.eup %7117 }
 0x3d0   :  { %v7120_v46 = vpop.eup %7119  ;;  %v711_v16 = vsub.f32 1.0, %v7118_v43  ;;  %v723_v19 = vmul.f32 %v7118_v43, %v7740_v3 }
 0x3d1   :  { %v710_v18 = vsub.f32 1.0, %v7120_v46  ;;  %v722_v22 = vmul.f32 %v7120_v46, %v7736_v57 }
 0x42a   :  { %v816_v37 = vpop.permute.xlu1 %815 }
 0x42b   :  { %v820_v38 = vadd.f32 %v816_v37, %v727_v36  ;;  %v814_v40 = vpop.permute.xlu0 %813 }
 0x42c   :  { %v819_v41 = vadd.f32 %v814_v40, %v726_v39 }
 0x42d   :  { %v6208_v42 = vmul.f32 -1.442695, %v820_v38 }
 0x42e   :  { %v6207_v44 = vmul.f32 -1.442695, %v819_v41  ;;  %v693_v45 = vpop.permute.xlu1 %692 }
 0x42f   :  { %7121 = vpow2.f32 %v6208_v42  ;;  %v697_v47 = vmul.f32 %v7118_v43, %v693_v45  ;;  %v691_v48 = vpop.permute.xlu0 %690 }
 0x430   :  { %7123 = vpow2.f32 %v6207_v44  ;;  %v696_v49 = vmul.f32 %v7120_v46, %v691_v48 }
 0x431   :  { %702 = vrot.lane.b32.xlu1 %v697_v47, %s7513_s18  ;;  %v7820_v47 = vld [vmem:[#allocation2 + $0x28] sm:$0xff] }
 0x432   :  { %700 = vrot.lane.b32.xlu0 %v696_v49, %s7513_s18  ;;  %v836_v55 = vpop.permute.xlu1 %835  ;;  %v7823_v49 = vld [vmem:[#allocation2 + $0x20] sm:$0xff] }
 0x433   :  { %v834_v59 = vpop.permute.xlu0 %833 }
 0x439   :  { %v7122_v50 = vpop.eup %7121 }
 0x43a   :  { %v7124_v51 = vpop.eup %7123  ;;  %v828_v52 = vadd.f32 1.0, %v7122_v50 }
 0x43b   :  { %v827_v53 = vadd.f32 1.0, %v7124_v51 }
 0x43c   :  { %7125 = vrcp.f32 %v828_v52 }
 0x43d   :  { %7127 = vrcp.f32 %v827_v53 }
 0x446   :  { %v7126_v54 = vpop.eup %7125 }
 0x447   :  { %v7128_v56 = vpop.eup %7127  ;;  %v840_v58 = vmul.f32 %v7126_v54, %v836_v55  ;;  %v854_v26 = vsub.f32 1.0, %v7126_v54  ;;  %v866_v3 = vmul.f32 %v7126_v54, %v7748_v12 }
 0x448   :  { %v839_v60 = vmul.f32 %v7128_v56, %v834_v59  ;;  %v853_v28 = vsub.f32 1.0, %v7128_v56  ;;  %v865_v57 = vmul.f32 %v7128_v56, %v7742_v5 }
 0x449   :  { %845 = vrot.lane.b32.xlu1 %v840_v58, %s7513_s18  ;;  %v7826_v58 = vld [vmem:[#allocation2 + $0x58] sm:$0xff] }
 0x44a   :  { %843 = vrot.lane.b32.xlu0 %v839_v60, %s7513_s18 }
 0x4a3   :  { %v703_v61 = vpop.permute.xlu1 %702 }
 0x4a4   :  { %v707_v63 = vadd.f32 %v703_v61, %v594_v25  ;;  %v701_v0 = vpop.permute.xlu0 %700  ;;  %v7829_v61 = vld [vmem:[#allocation2 + $0x50] sm:$0xff] }
 0x4a5   :  { %v706_v1 = vadd.f32 %v701_v0, %v593_v27 }
 0x4a6   :  { %7129 = vtanh.f32 %v707_v63 }
 0x4a7   :  { %7131 = vtanh.f32 %v706_v1 }
 0x4b0   :  { %v7130_v2 = vpop.eup %7129 }
 0x4b1   :  { %v7132_v4 = vpop.eup %7131  ;;  %716 = vrot.lane.b32.xlu1 %v7130_v2, %s7514_s19 }
 0x4b2   :  { %714 = vrot.lane.b32.xlu0 %v7132_v4, %s7514_s19 }
 0x4bb   :  { %v846_v7 = vpop.permute.xlu1 %845 }
 0x4bc   :  { %v850_v8 = vadd.f32 %v846_v7, %v727_v36  ;;  %v844_v11 = vpop.permute.xlu0 %843 }
 0x4bd   :  { %v849_v13 = vadd.f32 %v844_v11, %v726_v39 }
 0x4be   :  { %7133 = vtanh.f32 %v850_v8 }
 0x4bf   :  { %7135 = vtanh.f32 %v849_v13 }
 0x4c8   :  { %v7134_v14 = vpop.eup %7133 }
 0x4c9   :  { %v7136_v15 = vpop.eup %7135  ;;  %859 = vrot.lane.b32.xlu1 %v7134_v14, %s7514_s19 }
 0x4ca   :  { %857 = vrot.lane.b32.xlu0 %v7136_v15, %s7514_s19 }
 0x523   :  { %v717_v17 = vpop.permute.xlu1 %716 }
 0x524   :  { %v721_v20 = vmul.f32 %v717_v17, %v711_v16  ;;  %v715_v21 = vpop.permute.xlu0 %714 }
 0x525   :  { %v720_v23 = vmul.f32 %v715_v21, %v710_v18 }
 0x526   :  { %v7782_v24 = vadd.f32 %v723_v19, %v721_v20 }
 0x527   :  { %v7784_v25 = vadd.f32 %v722_v22, %v720_v23 }
 0x528   :  { %873 = vrot.lane.b32.xlu1 %v7782_v24, %s7514_s19 }
 0x529   :  { %871 = vrot.lane.b32.xlu0 %v7784_v25, %s7514_s19 }
 0x53b   :  { %v860_v27 = vpop.permute.xlu1 %859 }
 0x53c   :  { %v864_v29 = vmul.f32 %v860_v27, %v854_v26  ;;  %v858_v31 = vpop.permute.xlu0 %857 }
 0x53d   :  { %v863_v32 = vmul.f32 %v858_v31, %v853_v28 }
 0x53e   :  { %v7792_v33 = vadd.f32 %v866_v3, %v864_v29 }
 0x53f   :  { %v7794_v34 = vadd.f32 %v865_v57, %v863_v32 }
 0x540   :  { %1026 = vrot.lane.b32.xlu1 %v7792_v33, %s7515_s20 }
 0x541   :  { %1024 = vrot.lane.b32.xlu0 %v7794_v34, %s7515_s20 }
 0x59a   :  { %v874_v35 = vpop.permute.xlu1 %873 }
 0x59b   :  { %878 = vst.msk [vmem:[#allocation3 + $0x18] sm:$0xff] %vm300_vm3, %v874_v35  ;;  %v872_v36 = vpop.permute.xlu0 %871 }
 0x59c   :  { %877 = vst.msk [vmem:[#allocation3 + $0x10] sm:$0xff] %vm300_vm3, %v872_v36  ;;  %6611 = vmatprep.mubr.msk.f32.mxu1 %vm300_vm3, %v872_v36 }
 0x59d   :  { %6612 = vmatmul.mubr.msk.f32.vlgmr.msra.gmra.mrb[6].mxu1 %vm300_vm3, %v874_v35 }
 0x59e   :  { %6934 = vmatpush3.bf16.msra.mxu1 %v7611_v6 }
 0x59f   :  { %6936 = vmatprep.subr.bf16.mxu1 %v7621_v10 }
 0x5b2   :  { %v1027_v38 = vpop.permute.xlu1 %1026 }
 0x5b3   :  { %v1025_v37 = vpop.permute.xlu0 %1024 }
 0x5b4   :  { %6618 = vmatprep.mubr.msk.f32.mxu1 %vm300_vm3, %v1025_v37 }
 0x5b5   :  { %6619 = vmatmul.mubr.msk.f32.vlgmr.msra.gmra.mrb[8].mxu1 %vm300_vm3, %v1027_v38 }
 0x5b6   :  { %6938 = vmatpush3.bf16.msra.mxu1 %v7621_v10 }
 0x5b7   :  { %6940 = vmatprep.subr.bf16.mxu1 %v7611_v6 }
 0x670   :  { %v6613_v39 = vpop.f32.mrb[6].mxu1 }
 0x671   :  { %v961_v40 = vpop.f32.mrb[7].mxu1  ;;  %v967_v45 = vadd.f32 %v6613_v39, %v7720_v62 }
 0x672   :  { %v962_v46 = vadd.f32 %v7720_v62, %v961_v40 }
 0x673   :  { %v971_v48 = vadd.f32 %v967_v45, %v7820_v47 }
 0x674   :  { %v970_v50 = vadd.f32 %v962_v46, %v7823_v49 }
 0x675   :  { %v6212_v51 = vmul.f32 -1.442695, %v971_v48 }
 0x676   :  { %v6211_v52 = vmul.f32 -1.442695, %v970_v50 }
 0x677   :  { %7137 = vpow2.f32 %v6212_v51 }
 0x678   :  { %7139 = vpow2.f32 %v6211_v52 }
 0x681   :  { %v7138_v53 = vpop.eup %7137 }
 0x682   :  { %v7140_v54 = vpop.eup %7139  ;;  %v979_v55 = vadd.f32 1.0, %v7138_v53 }
 0x683   :  { %v978_v56 = vadd.f32 1.0, %v7140_v54 }
 0x684   :  { %7141 = vrcp.f32 %v979_v55 }
 0x685   :  { %7143 = vrcp.f32 %v978_v56 }
 0x688   :  { %v6620_v41 = vpop.f32.mrb[8].mxu1 }
 0x689   :  { %v1104_v42 = vadd.f32 %v6620_v41, %v7697_v30  ;;  %v1098_v43 = vpop.f32.mrb[9].mxu1 }
 0x68a   :  { %v1099_v44 = vadd.f32 %v7697_v30, %v1098_v43 }
 0x68b   :  { %1111 = vrot.lane.b32.xlu1 %v1104_v42, %s7510_s3 }
 0x68c   :  { %1109 = vrot.lane.b32.xlu0 %v1099_v44, %s7510_s3 }
 0x68e   :  { %v7142_v2 = vpop.eup %7141 }
 0x68f   :  { %988 = vrot.lane.b32.xlu1 %v967_v45, %s7512_s2  ;;  %v7144_v8 = vpop.eup %7143  ;;  %v1007_v40 = vsub.f32 1.0, %v7142_v2  ;;  %v1019_v43 = vmul.f32 %v7142_v2, %v7782_v24 }
 0x690   :  { %986 = vrot.lane.b32.xlu0 %v962_v46, %s7512_s2  ;;  %v1018_v46 = vmul.f32 %v7144_v8, %v7784_v25 }
 0x693   :  { %1131 = vrot.lane.b32.xlu1 %v1104_v42, %s7511_s15  ;;  %v1006_v42 = vsub.f32 1.0, %v7144_v8 }
 0x694   :  { %1129 = vrot.lane.b32.xlu0 %v1099_v44, %s7511_s15 }
 0x6fd   :  { %v1112_v59 = vpop.permute.xlu1 %1111 }
 0x6fe   :  { %v1116_v60 = vadd.f32 %v1112_v59, %v7826_v58  ;;  %v1110_v63 = vpop.permute.xlu0 %1109 }
 0x6ff   :  { %v1115_v0 = vadd.f32 %v1110_v63, %v7829_v61 }
 0x700   :  { %v6216_v1 = vmul.f32 -1.442695, %v1116_v60 }
 0x701   :  { %v6215_v4 = vmul.f32 -1.442695, %v1115_v0  ;;  %v989_v7 = vpop.permute.xlu1 %988 }
 0x702   :  { %7145 = vpow2.f32 %v6216_v1  ;;  %v993_v11 = vmul.f32 %v7142_v2, %v989_v7  ;;  %v987_v13 = vpop.permute.xlu0 %986 }
 0x703   :  { %7147 = vpow2.f32 %v6215_v4  ;;  %v992_v14 = vmul.f32 %v7144_v8, %v987_v13 }
 0x704   :  { %998 = vrot.lane.b32.xlu1 %v993_v11, %s7513_s18 }
 0x705   :  { %996 = vrot.lane.b32.xlu0 %v992_v14, %s7513_s18  ;;  %v1132_v20 = vpop.permute.xlu1 %1131 }
 0x706   :  { %v1130_v23 = vpop.permute.xlu0 %1129 }
 0x70c   :  { %v7146_v15 = vpop.eup %7145 }
 0x70d   :  { %v7148_v16 = vpop.eup %7147  ;;  %v1124_v17 = vadd.f32 1.0, %v7146_v15 }
 0x70e   :  { %v1123_v18 = vadd.f32 1.0, %v7148_v16  ;;  %v7880_v16 = vld [vmem:[#allocation2 + $0x48] sm:$0xff] }
 0x70f   :  { %7149 = vrcp.f32 %v1124_v17 }
 0x710   :  { %7151 = vrcp.f32 %v1123_v18 }
 0x719   :  { %v7150_v19 = vpop.eup %7149 }
 0x71a   :  { %v7152_v21 = vpop.eup %7151  ;;  %v1136_v22 = vmul.f32 %v7150_v19, %v1132_v20  ;;  %v1150_v52 = vsub.f32 1.0, %v7150_v19  ;;  %v1162_v24 = vmul.f32 %v7150_v19, %v7792_v33  ;;  %v7883_v19 = vld [vmem:[#allocation2 + $0x40] sm:$0xff] }
 0x71b   :  { %v1135_v26 = vmul.f32 %v7152_v21, %v1130_v23  ;;  %v1149_v54 = vsub.f32 1.0, %v7152_v21  ;;  %v1161_v25 = vmul.f32 %v7152_v21, %v7794_v34 }
 0x71c   :  { %1141 = vrot.lane.b32.xlu1 %v1136_v22, %s7513_s18 }
 0x71d   :  { %1139 = vrot.lane.b32.xlu0 %v1135_v26, %s7513_s18 }
 0x776   :  { %v999_v27 = vpop.permute.xlu1 %998 }
 0x777   :  { %v1003_v28 = vadd.f32 %v999_v27, %v7820_v47  ;;  %v997_v3 = vpop.permute.xlu0 %996 }
 0x778   :  { %v1002_v29 = vadd.f32 %v997_v3, %v7823_v49 }
 0x779   :  { %7153 = vtanh.f32 %v1003_v28 }
 0x77a   :  { %7155 = vtanh.f32 %v1002_v29 }
 0x783   :  { %v7154_v31 = vpop.eup %7153 }
 0x784   :  { %v7156_v57 = vpop.eup %7155  ;;  %1012 = vrot.lane.b32.xlu1 %v7154_v31, %s7514_s19 }
 0x785   :  { %1010 = vrot.lane.b32.xlu0 %v7156_v57, %s7514_s19 }
 0x78e   :  { %v1142_v32 = vpop.permute.xlu1 %1141 }
 0x78f   :  { %v1146_v35 = vadd.f32 %v1142_v32, %v7826_v58  ;;  %v1140_v36 = vpop.permute.xlu0 %1139 }
 0x790   :  { %v1145_v37 = vadd.f32 %v1140_v36, %v7829_v61 }
 0x791   :  { %7157 = vtanh.f32 %v1146_v35 }
 0x792   :  { %7159 = vtanh.f32 %v1145_v37 }
 0x79b   :  { %v7158_v38 = vpop.eup %7157 }
 0x79c   :  { %v7160_v39 = vpop.eup %7159  ;;  %1155 = vrot.lane.b32.xlu1 %v7158_v38, %s7514_s19 }
 0x79d   :  { %1153 = vrot.lane.b32.xlu0 %v7160_v39, %s7514_s19 }
 0x7f6   :  { %v1013_v41 = vpop.permute.xlu1 %1012 }
 0x7f7   :  { %v1017_v44 = vmul.f32 %v1013_v41, %v1007_v40  ;;  %v1011_v45 = vpop.permute.xlu0 %1010 }
 0x7f8   :  { %v1016_v48 = vmul.f32 %v1011_v45, %v1006_v42 }
 0x7f9   :  { %v7846_v50 = vadd.f32 %v1019_v43, %v1017_v44  ;;  %v7896_v44 = vld [vmem:[#allocation2 + $0x38] sm:$0xff] }
 0x7fa   :  { %v7848_v51 = vadd.f32 %v1018_v46, %v1016_v48  ;;  %v7899_v46 = vld [vmem:[#allocation2 + $0x30] sm:$0xff] }
 0x7fb   :  { %1169 = vrot.lane.b32.xlu1 %v7846_v50, %s7514_s19 }
 0x7fc   :  { %1167 = vrot.lane.b32.xlu0 %v7848_v51, %s7514_s19 }
 0x80e   :  { %v1156_v53 = vpop.permute.xlu1 %1155 }
 0x80f   :  { %v1160_v55 = vmul.f32 %v1156_v53, %v1150_v52  ;;  %v1154_v56 = vpop.permute.xlu0 %1153 }
 0x810   :  { %v1159_v59 = vmul.f32 %v1154_v56, %v1149_v54 }
 0x811   :  { %v7856_v60 = vadd.f32 %v1162_v24, %v1160_v55 }
 0x812   :  { %v7858_v63 = vadd.f32 %v1161_v25, %v1159_v59 }
 0x813   :  { %1322 = vrot.lane.b32.xlu1 %v7856_v60, %s7515_s20 }
 0x814   :  { %1320 = vrot.lane.b32.xlu0 %v7858_v63, %s7515_s20 }
 0x86d   :  { %v1170_v0 = vpop.permute.xlu1 %1169 }
 0x86e   :  { %1174 = vst.msk [vmem:[#allocation3 + $0x28] sm:$0xff] %vm300_vm3, %v1170_v0  ;;  %v1168_v1 = vpop.permute.xlu0 %1167 }
 0x86f   :  { %1173 = vst.msk [vmem:[#allocation3 + $0x20] sm:$0xff] %vm300_vm3, %v1168_v1  ;;  %6625 = vmatprep.mubr.msk.f32.mxu1 %vm300_vm3, %v1168_v1 }
 0x870   :  { %6626 = vmatmul.mubr.msk.f32.vlgmr.msra.gmra.mrb[10].mxu1 %vm300_vm3, %v1170_v0 }
 0x871   :  { %6942 = vmatpush3.bf16.msra.mxu1 %v7611_v6 }
 0x872   :  { %6948 = vmatprep.subr.bf16.mxu1 %v7611_v6 }
 0x885   :  { %v1323_v4 = vpop.permute.xlu1 %1322 }
 0x886   :  { %v1321_v2 = vpop.permute.xlu0 %1320 }
 0x887   :  { %6632 = vmatprep.mubr.msk.f32.mxu1 %vm300_vm3, %v1321_v2 }
 0x888   :  { %6633 = vmatmul.mubr.msk.f32.vlgmr.msra.gmra.mrb[12].mxu1 %vm300_vm3, %v1323_v4 }
 0x889   :  { %6950 = vmatpush3.bf16.msra.mxu1 %v7611_v6 }
 0x88a   :  { %6956 = vmatprep.subr.bf16.mxu1 %v7611_v6 }
 0x943   :  { %v6627_v7 = vpop.f32.mrb[10].mxu1 }
 0x944   :  { %v1257_v8 = vpop.f32.mrb[11].mxu1  ;;  %v1263_v42 = vadd.f32 %v6627_v7, %v7720_v62 }
 0x945   :  { %v1258_v43 = vadd.f32 %v7720_v62, %v1257_v8 }
 0x946   :  { %v1267_v45 = vadd.f32 %v1263_v42, %v7896_v44 }
 0x947   :  { %v1266_v48 = vadd.f32 %v1258_v43, %v7899_v46 }
 0x948   :  { %v6220_v52 = vmul.f32 -1.442695, %v1267_v45 }
 0x949   :  { %v6219_v53 = vmul.f32 -1.442695, %v1266_v48 }
 0x95b   :  { %v6634_v11 = vpop.f32.mrb[12].mxu1 }
 0x95c   :  { %v1400_v13 = vadd.f32 %v6634_v11, %v7697_v30  ;;  %v1394_v14 = vpop.f32.mrb[13].mxu1 }
 0x95d   :  { %v1395_v15 = vadd.f32 %v7697_v30, %v1394_v14 }
 0x95e   :  { %1407 = vrot.lane.b32.xlu1 %v1400_v13, %s7510_s3 }
 0x95f   :  { %1405 = vrot.lane.b32.xlu0 %v1395_v15, %s7510_s3 }
 0x962   :  { %1427 = vrot.lane.b32.xlu1 %v1400_v13, %s7511_s15 }
 0x963   :  { %1425 = vrot.lane.b32.xlu0 %v1395_v15, %s7511_s15 }
 0x9d0   :  { %v1408_v17 = vpop.permute.xlu1 %1407 }
 0x9d1   :  { %v1412_v18 = vadd.f32 %v1408_v17, %v7880_v16  ;;  %v1406_v20 = vpop.permute.xlu0 %1405 }
 0x9d2   :  { %v1411_v21 = vadd.f32 %v1406_v20, %v7883_v19 }
 0x9d3   :  { %v6224_v22 = vmul.f32 -1.442695, %v1412_v18 }
 0x9d4   :  { %v6223_v30 = vmul.f32 -1.442695, %v1411_v21  ;;  %v1428_v29 = vpop.permute.xlu1 %1427 }
 0x9d5   :  { %7161 = vpow2.f32 %v6224_v22  ;;  %v1426_v32 = vpop.permute.xlu0 %1425 }
 0x9d6   :  { %7163 = vpow2.f32 %v6223_v30 }
 0x9df   :  { %v7162_v23 = vpop.eup %7161 }
 0x9e0   :  { %v7164_v26 = vpop.eup %7163  ;;  %v1420_v27 = vadd.f32 1.0, %v7162_v23 }
 0x9e1   :  { %v1419_v28 = vadd.f32 1.0, %v7164_v26 }
 0x9e2   :  { %7165 = vrcp.f32 %v1420_v27 }
 0x9e3   :  { %7167 = vrcp.f32 %v1419_v28 }
 0x9ec   :  { %v7166_v3 = vpop.eup %7165 }
 0x9ed   :  { %v7168_v31 = vpop.eup %7167  ;;  %v1432_v57 = vmul.f32 %v7166_v3, %v1428_v29  ;;  %v1446_v25 = vsub.f32 1.0, %v7166_v3  ;;  %v1458_v1 = vmul.f32 %v7166_v3, %v7856_v60 }
 0x9ee   :  { %v1431_v35 = vmul.f32 %v7168_v31, %v1426_v32  ;;  %v1445_v0 = vsub.f32 1.0, %v7168_v31  ;;  %v1457_v7 = vmul.f32 %v7168_v31, %v7858_v63 }
 0x9ef   :  { %1437 = vrot.lane.b32.xlu1 %v1432_v57, %s7513_s18 }
 0x9f0   :  { %1435 = vrot.lane.b32.xlu0 %v1431_v35, %s7513_s18 }
 0xa61   :  { %v1438_v36 = vpop.permute.xlu1 %1437 }
 0xa62   :  { %v1442_v37 = vadd.f32 %v1438_v36, %v7880_v16  ;;  %v1436_v38 = vpop.permute.xlu0 %1435 }
 0xa63   :  { %v1441_v39 = vadd.f32 %v1436_v38, %v7883_v19 }
 0xa64   :  { %7169 = vtanh.f32 %v1442_v37 }
 0xa65   :  { %7171 = vtanh.f32 %v1441_v39 }
 0xa66   :  { %7173 = vpow2.f32 %v6220_v52 }
 0xa67   :  { %7175 = vpow2.f32 %v6219_v53 }
 0xa6e   :  { %v7170_v40 = vpop.eup %7169 }
 0xa6f   :  { %v7172_v41 = vpop.eup %7171  ;;  %1451 = vrot.lane.b32.xlu1 %v7170_v40, %s7514_s19 }
 0xa70   :  { %1449 = vrot.lane.b32.xlu0 %v7172_v41, %s7514_s19  ;;  %v7174_v54 = vpop.eup %7173 }
 0xa71   :  { %v7176_v24 = vpop.eup %7175  ;;  %v1275_v55 = vadd.f32 1.0, %v7174_v54 }
 0xa72   :  { %v1274_v56 = vadd.f32 1.0, %v7176_v24 }
 0xa73   :  { %1284 = vrot.lane.b32.xlu1 %v1263_v42, %s7512_s2  ;;  %7177 = vrcp.f32 %v1275_v55 }
 0xa74   :  { %1282 = vrot.lane.b32.xlu0 %v1258_v43, %s7512_s2  ;;  %7179 = vrcp.f32 %v1274_v56 }
 0xa7d   :  { %v7178_v17 = vpop.eup %7177 }
 0xa7e   :  { %v7180_v18 = vpop.eup %7179  ;;  %v1303_v31 = vsub.f32 1.0, %v7178_v17  ;;  %v1315_v35 = vmul.f32 %v7178_v17, %v7846_v50  ;;  %v7935_v50 = vld [vmem:[%s8879_s5 + $0x1] ss:$0 sm:$0xff] }
 0xa7f   :  { %v1302_v32 = vsub.f32 1.0, %v7180_v18  ;;  %v1314_v38 = vmul.f32 %v7180_v18, %v7848_v51 }
 0xae1   :  { %v1452_v59 = vpop.permute.xlu1 %1451 }
 0xae2   :  { %v1456_v2 = vmul.f32 %v1452_v59, %v1446_v25  ;;  %v1450_v4 = vpop.permute.xlu0 %1449 }
 0xae3   :  { %v1455_v8 = vmul.f32 %v1450_v4, %v1445_v0 }
 0xae4   :  { %v7904_v11 = vadd.f32 %v1458_v1, %v1456_v2 }
 0xae5   :  { %v7906_v13 = vadd.f32 %v1457_v7, %v1455_v8  ;;  %v1285_v14 = vpop.permute.xlu1 %1284 }
 0xae6   :  { %1618 = vrot.lane.b32.xlu1 %v7904_v11, %s7515_s20  ;;  %v1283_v15 = vpop.permute.xlu0 %1282  ;;  %v1289_v20 = vmul.f32 %v7178_v17, %v1285_v14 }
 0xae7   :  { %1616 = vrot.lane.b32.xlu0 %v7906_v13, %s7515_s20  ;;  %v1288_v21 = vmul.f32 %v7180_v18, %v1283_v15 }
 0xaea   :  { %1294 = vrot.lane.b32.xlu1 %v1289_v20, %s7513_s18 }
 0xaeb   :  { %1292 = vrot.lane.b32.xlu0 %v1288_v21, %s7513_s18 }
 0xb58   :  { %v1619_v22 = vpop.permute.xlu1 %1618 }
 0xb59   :  { %v1617_v30 = vpop.permute.xlu0 %1616 }
 0xb5a   :  { %6646 = vmatprep.mubr.msk.f32.mxu1 %vm300_vm3, %v1617_v30 }
 0xb5b   :  { %6647 = vmatmul.mubr.msk.f32.vlgmr.msra.gmra.mrb[14].mxu1 %vm300_vm3, %v1619_v22 }
 0xb5c   :  { %v1295_v23 = vpop.permute.xlu1 %1294  ;;  %6958 = vmatpush3.bf16.msra.mxu1 %v7611_v6 }
 0xb5d   :  { %v1299_v26 = vadd.f32 %v1295_v23, %v7896_v44  ;;  %v1293_v27 = vpop.permute.xlu0 %1292  ;;  %6964 = vmatprep.subr.bf16.mxu1 %v7611_v6 }
 0xb5e   :  { %v1298_v28 = vadd.f32 %v1293_v27, %v7899_v46 }
 0xb5f   :  { %7181 = vtanh.f32 %v1299_v26 }
 0xb60   :  { %7183 = vtanh.f32 %v1298_v28 }
 0xb69   :  { %v7182_v3 = vpop.eup %7181 }
 0xb6a   :  { %v7184_v29 = vpop.eup %7183  ;;  %1308 = vrot.lane.b32.xlu1 %v7182_v3, %s7514_s19 }
 0xb6b   :  { %1306 = vrot.lane.b32.xlu0 %v7184_v29, %s7514_s19 }
 0xbdc   :  { %v1309_v57 = vpop.permute.xlu1 %1308 }
 0xbdd   :  { %v1313_v36 = vmul.f32 %v1309_v57, %v1303_v31  ;;  %v1307_v37 = vpop.permute.xlu0 %1306 }
 0xbde   :  { %v1312_v39 = vmul.f32 %v1307_v37, %v1302_v32 }
 0xbdf   :  { %v7924_v40 = vadd.f32 %v1315_v35, %v1313_v36 }
 0xbe0   :  { %v7926_v41 = vadd.f32 %v1314_v38, %v1312_v39 }
 0xbe1   :  { %1465 = vrot.lane.b32.xlu1 %v7924_v40, %s7514_s19 }
 0xbe2   :  { %1463 = vrot.lane.b32.xlu0 %v7926_v41, %s7514_s19 }
 0xc2e   :  { %v6648_v42 = vpop.f32.mrb[14].mxu1 }
 0xc2f   :  { %v1696_v43 = vadd.f32 %v7935_v50, %v6648_v42  ;;  %v1690_v51 = vpop.f32.mrb[15].mxu1 }
 0xc30   :  { %v1691_v45 = vadd.f32 %v7935_v50, %v1690_v51 }
 0xc31   :  { %1703 = vrot.lane.b32.xlu1 %v1696_v43, %s7510_s3 }
 0xc32   :  { %1701 = vrot.lane.b32.xlu0 %v1691_v45, %s7510_s3 }
 0xc35   :  { %1723 = vrot.lane.b32.xlu1 %v1696_v43, %s7511_s15 }
 0xc36   :  { %1721 = vrot.lane.b32.xlu0 %v1691_v45, %s7511_s15 }
 0xc53   :  { %v1466_v48 = vpop.permute.xlu1 %1465 }
 0xc54   :  { %1470 = vst.msk [vmem:[#allocation3 + $0x38] sm:$0xff] %vm300_vm3, %v1466_v48  ;;  %v1464_v52 = vpop.permute.xlu0 %1463 }
 0xc55   :  { %1469 = vst.msk [vmem:[#allocation3 + $0x30] sm:$0xff] %vm300_vm3, %v1464_v52  ;;  %6639 = vmatprep.mubr.msk.f32.mxu0 %vm300_vm3, %v1464_v52 }
 0xc56   :  { %6640 = vmatmul.mubr.msk.f32.vlgmr.msra.gmra.mrb[18].mxu0 %vm300_vm3, %v1466_v48 }
 0xc57   :  { %6954 = vmatpush3.bf16.msra.mxu0 %v7621_v10 }
 0xc58   :  { %6960 = vmatprep.subr.bf16.mxu0 %v7621_v10 }
 0xca3   :  { %v1704_v53 = vpop.permute.xlu1 %1703 }
 0xca4   :  { %v1708_v54 = vadd.f32 %v1704_v53, %v7896_v44  ;;  %v1702_v24 = vpop.permute.xlu0 %1701 }
 0xca5   :  { %v1707_v55 = vadd.f32 %v1702_v24, %v7899_v46 }
 0xca6   :  { %v6232_v56 = vmul.f32 -1.442695, %v1708_v54 }
 0xca7   :  { %v6231_v25 = vmul.f32 -1.442695, %v1707_v55  ;;  %v1724_v7 = vpop.permute.xlu1 %1723 }
 0xca8   :  { %7185 = vpow2.f32 %v6232_v56  ;;  %v1722_v15 = vpop.permute.xlu0 %1721 }
 0xca9   :  { %7187 = vpow2.f32 %v6231_v25 }
 0xcb2   :  { %v7186_v59 = vpop.eup %7185 }
 0xcb3   :  { %v7188_v0 = vpop.eup %7187  ;;  %v1716_v1 = vadd.f32 1.0, %v7186_v59 }
 0xcb4   :  { %v1715_v2 = vadd.f32 1.0, %v7188_v0 }
 0xcb5   :  { %7189 = vrcp.f32 %v1716_v1 }
 0xcb6   :  { %7191 = vrcp.f32 %v1715_v2 }
 0xcbf   :  { %v7190_v4 = vpop.eup %7189 }
 0xcc0   :  { %v7192_v8 = vpop.eup %7191  ;;  %v1728_v14 = vmul.f32 %v7190_v4, %v1724_v7  ;;  %v1742_v51 = vsub.f32 1.0, %v7190_v4  ;;  %v1754_v52 = vmul.f32 %v7190_v4, %v7904_v11 }
 0xcc1   :  { %v1727_v17 = vmul.f32 %v7192_v8, %v1722_v15  ;;  %v1741_v48 = vsub.f32 1.0, %v7192_v8  ;;  %v1753_v24 = vmul.f32 %v7192_v8, %v7906_v13 }
 0xcc2   :  { %1733 = vrot.lane.b32.xlu1 %v1728_v14, %s7513_s18 }
 0xcc3   :  { %1731 = vrot.lane.b32.xlu0 %v1727_v17, %s7513_s18 }
 0xd29   :  { %v6641_v18 = vpop.f32.mrb[18].mxu0 }
 0xd2a   :  { %v1559_v20 = vadd.f32 %v6641_v18, %v7720_v62  ;;  %v1553_v21 = vpop.f32.mrb[19].mxu0 }
 0xd2b   :  { %v1554_v22 = vadd.f32 %v7720_v62, %v1553_v21 }
 0xd2c   :  { %1580 = vrot.lane.b32.xlu1 %v1559_v20, %s7512_s2  ;;  %v1563_v62 = vadd.f32 %v1559_v20, %v7880_v16 }
 0xd2d   :  { %1578 = vrot.lane.b32.xlu0 %v1554_v22, %s7512_s2  ;;  %v1562_v29 = vadd.f32 %v1554_v22, %v7883_v19 }
 0xd2e   :  { %v6228_v31 = vmul.f32 -1.442695, %v1563_v62 }
 0xd2f   :  { %v6227_v57 = vmul.f32 -1.442695, %v1562_v29 }
 0xd34   :  { %v1734_v30 = vpop.permute.xlu1 %1733 }
 0xd35   :  { %v1738_v23 = vadd.f32 %v1734_v30, %v7896_v44  ;;  %v1732_v26 = vpop.permute.xlu0 %1731 }
 0xd36   :  { %v1737_v27 = vadd.f32 %v1732_v26, %v7899_v46 }
 0xd37   :  { %7193 = vtanh.f32 %v1738_v23 }
 0xd38   :  { %7195 = vtanh.f32 %v1737_v27 }
 0xd39   :  { %7197 = vpow2.f32 %v6228_v31 }
 0xd3a   :  { %7199 = vpow2.f32 %v6227_v57 }
 0xd41   :  { %v7194_v28 = vpop.eup %7193 }
 0xd42   :  { %v7196_v3 = vpop.eup %7195  ;;  %1747 = vrot.lane.b32.xlu1 %v7194_v28, %s7514_s19 }
 0xd43   :  { %1745 = vrot.lane.b32.xlu0 %v7196_v3, %s7514_s19  ;;  %v7198_v44 = vpop.eup %7197 }
 0xd44   :  { %v7200_v32 = vpop.eup %7199  ;;  %v1571_v35 = vadd.f32 1.0, %v7198_v44 }
 0xd45   :  { %v1570_v46 = vadd.f32 1.0, %v7200_v32 }
 0xd46   :  { %7201 = vrcp.f32 %v1571_v35 }
 0xd47   :  { %7203 = vrcp.f32 %v1570_v46 }
 0xd50   :  { %v7202_v36 = vpop.eup %7201 }
 0xd51   :  { %v7204_v38 = vpop.eup %7203  ;;  %v1611_v17 = vmul.f32 %v7202_v36, %v7924_v40 }
 0xd52   :  { %v1598_v15 = vsub.f32 1.0, %v7204_v38  ;;  %v1610_v21 = vmul.f32 %v7204_v38, %v7926_v41 }
 0xd9e   :  { %v1581_v37 = vpop.permute.xlu1 %1580 }
 0xd9f   :  { %v1585_v39 = vmul.f32 %v7202_v36, %v1581_v37  ;;  %v1579_v42 = vpop.permute.xlu0 %1578 }
 0xda0   :  { %v1584_v43 = vmul.f32 %v7204_v38, %v1579_v42 }
 0xda1   :  { %1590 = vrot.lane.b32.xlu1 %v1585_v39, %s7513_s18 }
 0xda2   :  { %1588 = vrot.lane.b32.xlu0 %v1584_v43, %s7513_s18 }
 0xdb4   :  { %v1748_v45 = vpop.permute.xlu1 %1747 }
 0xdb5   :  { %v1752_v53 = vmul.f32 %v1748_v45, %v1742_v51  ;;  %v1746_v54 = vpop.permute.xlu0 %1745 }
 0xdb6   :  { %v1751_v55 = vmul.f32 %v1746_v54, %v1741_v48 }
 0xdb7   :  { %v7967_v56 = vadd.f32 %v1754_v52, %v1752_v53  ;;  %v8016_v52 = vld [vmem:[%s8879_s5] ss:$0 sm:$0xff] }
 0xdb8   :  { %v7969_v25 = vadd.f32 %v1753_v24, %v1751_v55 }
 0xdb9   :  { %1914 = vrot.lane.b32.xlu1 %v7967_v56, %s7515_s20 }
 0xdba   :  { %1912 = vrot.lane.b32.xlu0 %v7969_v25, %s7515_s20 }
 0xe13   :  { %v1591_v59 = vpop.permute.xlu1 %1590 }
 0xe14   :  { %v1595_v0 = vadd.f32 %v1591_v59, %v7880_v16  ;;  %v1589_v1 = vpop.permute.xlu0 %1588  ;;  %v1599_v16 = vsub.f32 1.0, %v7202_v36 }
 0xe15   :  { %v1594_v2 = vadd.f32 %v1589_v1, %v7883_v19 }
 0xe16   :  { %7205 = vtanh.f32 %v1595_v0 }
 0xe17   :  { %7207 = vtanh.f32 %v1594_v2 }
 0xe20   :  { %v7206_v4 = vpop.eup %7205 }
 0xe21   :  { %v7208_v7 = vpop.eup %7207  ;;  %1604 = vrot.lane.b32.xlu1 %v7206_v4, %s7514_s19 }
 0xe22   :  { %1602 = vrot.lane.b32.xlu0 %v7208_v7, %s7514_s19 }
 0xe2b   :  { %v1915_v14 = vpop.permute.xlu1 %1914 }
 0xe2c   :  { %v1913_v8 = vpop.permute.xlu0 %1912 }
 0xe2d   :  { %6660 = vmatprep.mubr.msk.f32.mxu1 %vm300_vm3, %v1913_v8 }
 0xe2e   :  { %6661 = vmatmul.mubr.msk.f32.vlgmr.msra.gmra.mrb[16].mxu1 %vm300_vm3, %v1915_v14 }
 0xe2f   :  { %6966 = vmatpush3.bf16.msra.mxu1 %v7611_v6 }
 0xe30   :  { %6972 = vmatprep.subr.bf16.mxu1 %v7611_v6 }
 0xe93   :  { %v1605_v19 = vpop.permute.xlu1 %1604 }
 0xe94   :  { %v1609_v18 = vmul.f32 %v1605_v19, %v1599_v16  ;;  %v1603_v20 = vpop.permute.xlu0 %1602 }
 0xe95   :  { %v1608_v22 = vmul.f32 %v1603_v20, %v1598_v15 }
 0xe96   :  { %v7985_v30 = vadd.f32 %v1611_v17, %v1609_v18 }
 0xe97   :  { %v7987_v23 = vadd.f32 %v1610_v21, %v1608_v22 }
 0xe98   :  { %1761 = vrot.lane.b32.xlu1 %v7985_v30, %s7514_s19 }
 0xe99   :  { %1759 = vrot.lane.b32.xlu0 %v7987_v23, %s7514_s19 }
 0xf01   :  { %v6662_v26 = vpop.f32.mrb[16].mxu1 }
 0xf02   :  { %v1992_v27 = vadd.f32 %v7935_v50, %v6662_v26  ;;  %v1986_v28 = vpop.f32.mrb[17].mxu1 }
 0xf03   :  { %v1987_v40 = vadd.f32 %v7935_v50, %v1986_v28 }
 0xf04   :  { %1999 = vrot.lane.b32.xlu1 %v1992_v27, %s7510_s3 }
 0xf05   :  { %1997 = vrot.lane.b32.xlu0 %v1987_v40, %s7510_s3 }
 0xf08   :  { %2019 = vrot.lane.b32.xlu1 %v1992_v27, %s7511_s15 }
 0xf09   :  { %2017 = vrot.lane.b32.xlu0 %v1987_v40, %s7511_s15 }
 0xf0a   :  { %v8001_v3 = vpop.permute.xlu1 %1761 }
 0xf0b   :  { %v7999_v41 = vpop.permute.xlu0 %1759 }
 0xf0c   :  { %6653 = vmatprep.mubr.msk.f32.mxu0 %vm300_vm3, %v7999_v41 }
 0xf0d   :  { %6654 = vmatmul.mubr.msk.f32.vlgmr.msra.gmra.mrb[20].mxu0 %vm300_vm3, %v8001_v3 }
 0xf0e   :  { %6962 = vmatpush3.bf16.msra.mxu0 %v7621_v10 }
 0xf0f   :  { %6968 = vmatprep.subr.bf16.mxu0 %v7621_v10 }
 0xf76   :  { %v2000_v62 = vpop.permute.xlu1 %1999 }
 0xf77   :  { %v2004_v29 = vadd.f32 %v2000_v62, %v7820_v47  ;;  %v1998_v31 = vpop.permute.xlu0 %1997 }
 0xf78   :  { %v2003_v57 = vadd.f32 %v1998_v31, %v7823_v49 }
 0xf79   :  { %v6240_v44 = vmul.f32 -1.442695, %v2004_v29 }
 0xf7a   :  { %v6239_v32 = vmul.f32 -1.442695, %v2003_v57  ;;  %v2020_v39 = vpop.permute.xlu1 %2019 }
 0xf7b   :  { %7209 = vpow2.f32 %v6240_v44  ;;  %v2018_v51 = vpop.permute.xlu0 %2017 }
 0xf7c   :  { %7211 = vpow2.f32 %v6239_v32 }
 0xf85   :  { %v7210_v35 = vpop.eup %7209 }
 0xf86   :  { %v7212_v46 = vpop.eup %7211  ;;  %v2012_v36 = vadd.f32 1.0, %v7210_v35 }
 0xf87   :  { %v2011_v37 = vadd.f32 1.0, %v7212_v46 }
 0xf88   :  { %7213 = vrcp.f32 %v2012_v36 }
 0xf89   :  { %7215 = vrcp.f32 %v2011_v37 }
 0xf92   :  { %v7214_v38 = vpop.eup %7213 }
 0xf93   :  { %v7216_v42 = vpop.eup %7215  ;;  %v2024_v43 = vmul.f32 %v7214_v38, %v2020_v39  ;;  %v2038_v27 = vsub.f32 1.0, %v7214_v38  ;;  %v2050_v62 = vmul.f32 %v7214_v38, %v7967_v56 }
 0xf94   :  { %v2023_v45 = vmul.f32 %v7216_v42, %v2018_v51  ;;  %v2037_v40 = vsub.f32 1.0, %v7216_v42  ;;  %v2049_v57 = vmul.f32 %v7216_v42, %v7969_v25 }
 0xf95   :  { %2029 = vrot.lane.b32.xlu1 %v2024_v43, %s7513_s18 }
 0xf96   :  { %2027 = vrot.lane.b32.xlu0 %v2023_v45, %s7513_s18 }
 0xfe0   :  { %v6655_v48 = vpop.f32.mrb[20].mxu0 }
 0xfe1   :  { %v1855_v53 = vadd.f32 %v8016_v52, %v6655_v48  ;;  %v1849_v54 = vpop.f32.mrb[21].mxu0 }
 0xfe2   :  { %v1850_v24 = vadd.f32 %v8016_v52, %v1849_v54 }
 0xfe3   :  { %1876 = vrot.lane.b32.xlu1 %v1855_v53, %s7512_s2  ;;  %v1859_v7 = vadd.f32 %v1855_v53, %v7826_v58 }
 0xfe4   :  { %1874 = vrot.lane.b32.xlu0 %v1850_v24, %s7512_s2  ;;  %v1858_v8 = vadd.f32 %v1850_v24, %v7829_v61 }
 0xfe5   :  { %v6236_v14 = vmul.f32 -1.442695, %v1859_v7 }
 0xfe6   :  { %v6235_v16 = vmul.f32 -1.442695, %v1858_v8 }
0x1007   :  { %v2030_v55 = vpop.permute.xlu1 %2029 }
0x1008   :  { %v2034_v59 = vadd.f32 %v2030_v55, %v7820_v47  ;;  %v2028_v0 = vpop.permute.xlu0 %2027 }
0x1009   :  { %v2033_v1 = vadd.f32 %v2028_v0, %v7823_v49 }
0x100a   :  { %7217 = vtanh.f32 %v2034_v59 }
0x100b   :  { %7219 = vtanh.f32 %v2033_v1 }
0x100c   :  { %7221 = vpow2.f32 %v6236_v14  ;;  %v2207_v14 = vld [vmem:[#allocation2 + $0x18] sm:$0xff] }
0x100d   :  { %7223 = vpow2.f32 %v6235_v16 }
0x1014   :  { %v7218_v2 = vpop.eup %7217 }
0x1015   :  { %v7220_v4 = vpop.eup %7219  ;;  %2043 = vrot.lane.b32.xlu1 %v7218_v2, %s7514_s19 }
0x1016   :  { %2041 = vrot.lane.b32.xlu0 %v7220_v4, %s7514_s19  ;;  %v7222_v47 = vpop.eup %7221 }
0x1017   :  { %v7224_v19 = vpop.eup %7223  ;;  %v1867_v15 = vadd.f32 1.0, %v7222_v47  ;;  %v2206_v47 = vld [vmem:[#allocation2 + $0x10] sm:$0xff] }
0x1018   :  { %v1866_v49 = vadd.f32 1.0, %v7224_v19 }
0x1019   :  { %7225 = vrcp.f32 %v1867_v15 }
0x101a   :  { %7227 = vrcp.f32 %v1866_v49 }
0x1023   :  { %v7226_v17 = vpop.eup %7225 }
0x1024   :  { %v7228_v20 = vpop.eup %7227 }
0x1025   :  { %v1894_v48 = vsub.f32 1.0, %v7228_v20  ;;  %v1906_v24 = vmul.f32 %v7228_v20, %v7987_v23 }
0x1055   :  { %v1877_v18 = vpop.permute.xlu1 %1876 }
0x1056   :  { %v1881_v21 = vmul.f32 %v7226_v17, %v1877_v18  ;;  %v1875_v22 = vpop.permute.xlu0 %1874 }
0x1057   :  { %v1880_v26 = vmul.f32 %v7228_v20, %v1875_v22 }
0x1058   :  { %1886 = vrot.lane.b32.xlu1 %v1881_v21, %s7513_s18 }
0x1059   :  { %1884 = vrot.lane.b32.xlu0 %v1880_v26, %s7513_s18 }
0x1087   :  { %v2044_v28 = vpop.permute.xlu1 %2043 }
0x1088   :  { %v2048_v29 = vmul.f32 %v2044_v28, %v2038_v27  ;;  %v2042_v31 = vpop.permute.xlu0 %2041 }
0x1089   :  { %v2047_v44 = vmul.f32 %v2042_v31, %v2037_v40 }
0x108a   :  { %v8032_v32 = vadd.f32 %v2050_v62, %v2048_v29 }
0x108b   :  { %v8034_v35 = vadd.f32 %v2049_v57, %v2047_v44  ;;  %v2074_v44 = vld [vmem:[#allocation2 + $0x68] sm:$0xff] }
0x108c   :  { %2210 = vrot.lane.b32.xlu1 %v8032_v32, %s7515_s20 }
0x108d   :  { %2208 = vrot.lane.b32.xlu0 %v8034_v35, %s7515_s20 }
0x10ca   :  { %v1887_v46 = vpop.permute.xlu1 %1886 }
0x10cb   :  { %v1891_v36 = vadd.f32 %v1887_v46, %v7826_v58  ;;  %v1885_v37 = vpop.permute.xlu0 %1884  ;;  %v1895_v58 = vsub.f32 1.0, %v7226_v17 }
0x10cc   :  { %v1890_v38 = vadd.f32 %v1885_v37, %v7829_v61  ;;  %v1907_v61 = vmul.f32 %v7226_v17, %v7985_v30 }
0x10cd   :  { %7229 = vtanh.f32 %v1891_v36  ;;  %v2073_v36 = vld [vmem:[#allocation2 + $0x60] sm:$0xff] }
0x10ce   :  { %7231 = vtanh.f32 %v1890_v38 }
0x10d7   :  { %v7230_v39 = vpop.eup %7229 }
0x10d8   :  { %v7232_v42 = vpop.eup %7231  ;;  %1900 = vrot.lane.b32.xlu1 %v7230_v39, %s7514_s19 }
0x10d9   :  { %1898 = vrot.lane.b32.xlu0 %v7232_v42, %s7514_s19 }
0x10fe   :  { %v2211_v51 = vpop.permute.xlu1 %2210 }
0x10ff   :  { %v2209_v43 = vpop.permute.xlu0 %2208 }
0x1100   :  { %6674 = vmatprep.mubr.msk.f32.mxu1 %vm300_vm3, %v2209_v43 }
0x1101   :  { %6675 = vmatmul.mubr.msk.f32.vlgmr.msra.gmra.mrb[18].mxu1 %vm300_vm3, %v2211_v51 }
0x1102   :  { %6974 = vmatpush3.bf16.msra.mxu1 %v7611_v6 }
0x114a   :  { %v1901_v45 = vpop.permute.xlu1 %1900 }
0x114b   :  { %v1905_v53 = vmul.f32 %v1901_v45, %v1895_v58  ;;  %v1899_v54 = vpop.permute.xlu0 %1898 }
0x114c   :  { %v1904_v55 = vmul.f32 %v1899_v54, %v1894_v48 }
0x114d   :  { %v8049_v59 = vadd.f32 %v1907_v61, %v1905_v53 }
0x114e   :  { %v8051_v0 = vadd.f32 %v1906_v24, %v1904_v55 }
0x114f   :  { %2057 = vrot.lane.b32.xlu1 %v8049_v59, %s7514_s19 }
0x1150   :  { %2055 = vrot.lane.b32.xlu0 %v8051_v0, %s7514_s19 }
0x11c1   :  { %v8059_v1 = vpop.permute.xlu1 %2057 }
0x11c2   :  { %v8057_v6 = vpop.permute.xlu0 %2055 }
0x11c3   :  { %6667 = vmatprep.mubr.msk.f32.mxu0 %vm300_vm3, %v8057_v6 }
0x11c4   :  { %6668 = vmatmul.mubr.msk.f32.vlgmr.msra.gmra.mrb[22].mxu0 %vm300_vm3, %v8059_v1 }
0x11c5   :  { %6970 = vmatpush3.bf16.msra.mxu0 %v7621_v10 }
0x11d4   :  { %v6676_v30 = vpop.f32.mrb[18].mxu1 }
0x11d5   :  { %v2288_v23 = vadd.f32 %v7935_v50, %v6676_v30  ;;  %v2282_v2 = vpop.f32.mrb[19].mxu1 }
0x11d6   :  { %v2283_v4 = vadd.f32 %v7935_v50, %v2282_v2 }
0x11d7   :  { %2295 = vrot.lane.b32.xlu1 %v2288_v23, %s7510_s3 }
0x11d8   :  { %2293 = vrot.lane.b32.xlu0 %v2283_v4, %s7510_s3 }
0x11db   :  { %2315 = vrot.lane.b32.xlu1 %v2288_v23, %s7511_s15 }
0x11dc   :  { %2313 = vrot.lane.b32.xlu0 %v2283_v4, %s7511_s15 }
0x1249   :  { %v2296_v7 = vpop.permute.xlu1 %2295 }
0x124a   :  { %v2294_v8 = vpop.permute.xlu0 %2293  ;;  %v2300_v16 = vadd.f32 %v2296_v7, %v2207_v14 }
0x124b   :  { %v2299_v10 = vadd.f32 %v2294_v8, %v2206_v47 }
0x124c   :  { %v6248_v19 = vmul.f32 -1.442695, %v2300_v16 }
0x124d   :  { %v6247_v15 = vmul.f32 -1.442695, %v2299_v10  ;;  %v2316_v62 = vpop.permute.xlu1 %2315 }
0x124e   :  { %7233 = vpow2.f32 %v6248_v19  ;;  %v2314_v31 = vpop.permute.xlu0 %2313 }
0x124f   :  { %7235 = vpow2.f32 %v6247_v15 }
0x1258   :  { %v7234_v49 = vpop.eup %7233 }
0x1259   :  { %v7236_v17 = vpop.eup %7235  ;;  %v2308_v18 = vadd.f32 1.0, %v7234_v49 }
0x125a   :  { %v2307_v20 = vadd.f32 1.0, %v7236_v17 }
0x125b   :  { %7237 = vrcp.f32 %v2308_v18 }
0x125c   :  { %7239 = vrcp.f32 %v2307_v20 }
0x1265   :  { %v7238_v27 = vpop.eup %7237 }
0x1266   :  { %v7240_v40 = vpop.eup %7239  ;;  %v2320_v29 = vmul.f32 %v7238_v27, %v2316_v62  ;;  %v2346_v18 = vmul.f32 %v7238_v27, %v8032_v32 }
0x1267   :  { %v2319_v57 = vmul.f32 %v7240_v40, %v2314_v31  ;;  %v2333_v17 = vsub.f32 1.0, %v7240_v40 }
0x1297   :  { %v6669_v21 = vpop.f32.mrb[22].mxu0 }
0x1298   :  { %v2151_v22 = vadd.f32 %v8016_v52, %v6669_v21  ;;  %v2145_v26 = vpop.f32.mrb[23].mxu0 }
0x1299   :  { %v2146_v28 = vadd.f32 %v8016_v52, %v2145_v26 }
0x129a   :  { %2172 = vrot.lane.b32.xlu1 %v2151_v22, %s7512_s2  ;;  %v2155_v46 = vadd.f32 %v2151_v22, %v2074_v44  ;;  %v2345_v22 = vmul.f32 %v7240_v40, %v8034_v35 }
0x129b   :  { %2170 = vrot.lane.b32.xlu0 %v2146_v28, %s7512_s2  ;;  %v2154_v37 = vadd.f32 %v2146_v28, %v2073_v36 }
0x129c   :  { %v6244_v38 = vmul.f32 -1.442695, %v2155_v46 }
0x129d   :  { %v6243_v39 = vmul.f32 -1.442695, %v2154_v37 }
0x129e   :  { %2325 = vrot.lane.b32.xlu1 %v2320_v29, %s7513_s18  ;;  %7241 = vpow2.f32 %v6244_v38 }
0x129f   :  { %2323 = vrot.lane.b32.xlu0 %v2319_v57, %s7513_s18  ;;  %7243 = vpow2.f32 %v6243_v39 }
0x12a8   :  { %v7242_v42 = vpop.eup %7241 }
0x12a9   :  { %v7244_v43 = vpop.eup %7243  ;;  %v2163_v51 = vadd.f32 1.0, %v7242_v42 }
0x12aa   :  { %v2162_v58 = vadd.f32 1.0, %v7244_v43 }
0x12ab   :  { %7245 = vrcp.f32 %v2163_v51 }
0x12ac   :  { %7247 = vrcp.f32 %v2162_v58 }
0x12b5   :  { %v7246_v45 = vpop.eup %7245 }
0x12b6   :  { %v7248_v61 = vpop.eup %7247  ;;  %v2191_v29 = vsub.f32 1.0, %v7246_v45 }
0x12b7   :  { %v2190_v57 = vsub.f32 1.0, %v7248_v61  ;;  %v2202_v40 = vmul.f32 %v7248_v61, %v8051_v0 }
0x130c   :  { %v2173_v48 = vpop.permute.xlu1 %2172 }
0x130d   :  { %v2177_v53 = vmul.f32 %v7246_v45, %v2173_v48  ;;  %v2171_v54 = vpop.permute.xlu0 %2170 }
0x130e   :  { %v2176_v24 = vmul.f32 %v7248_v61, %v2171_v54 }
0x130f   :  { %2182 = vrot.lane.b32.xlu1 %v2177_v53, %s7513_s18 }
0x1310   :  { %v2326_v55 = vpop.permute.xlu1 %2325  ;;  %2180 = vrot.lane.b32.xlu0 %v2176_v24, %s7513_s18  ;;  %v2503_v24 = vld [vmem:[#allocation2 + $0x8] sm:$0xff] }
0x1311   :  { %v2330_v30 = vadd.f32 %v2326_v55, %v2207_v14  ;;  %v2324_v23 = vpop.permute.xlu0 %2323  ;;  %v2334_v14 = vsub.f32 1.0, %v7238_v27  ;;  %v2203_v27 = vmul.f32 %v7246_v45, %v8049_v59 }
0x1312   :  { %v2329_v2 = vadd.f32 %v2324_v23, %v2206_v47 }
0x1313   :  { %7249 = vtanh.f32 %v2330_v30  ;;  %v2502_v30 = vld [vmem:[#allocation2] sm:$0xff] }
0x1314   :  { %7251 = vtanh.f32 %v2329_v2 }
0x131d   :  { %v7250_v4 = vpop.eup %7249 }
0x131e   :  { %v7252_v7 = vpop.eup %7251  ;;  %2339 = vrot.lane.b32.xlu1 %v7250_v4, %s7514_s19 }
0x131f   :  { %2337 = vrot.lane.b32.xlu0 %v7252_v7, %s7514_s19 }
0x1381   :  { %v2183_v8 = vpop.permute.xlu1 %2182 }
0x1382   :  { %v2187_v16 = vadd.f32 %v2183_v8, %v2074_v44  ;;  %v2181_v10 = vpop.permute.xlu0 %2180 }
0x1383   :  { %v2186_v19 = vadd.f32 %v2181_v10, %v2073_v36 }
0x1384   :  { %7253 = vtanh.f32 %v2187_v16 }
0x1385   :  { %7255 = vtanh.f32 %v2186_v19 }
0x138e   :  { %v7254_v15 = vpop.eup %7253 }
0x138f   :  { %v7256_v49 = vpop.eup %7255  ;;  %2196 = vrot.lane.b32.xlu1 %v7254_v15, %s7514_s19 }
0x1390   :  { %v2340_v47 = vpop.permute.xlu1 %2339  ;;  %2194 = vrot.lane.b32.xlu0 %v7256_v49, %s7514_s19 }
0x1391   :  { %v2344_v20 = vmul.f32 %v2340_v47, %v2334_v14  ;;  %v2338_v21 = vpop.permute.xlu0 %2337 }
0x1392   :  { %v2343_v26 = vmul.f32 %v2338_v21, %v2333_v17  ;;  %v2369_v21 = vld [vmem:[#allocation2 + $0x70] sm:$0xff] }
0x1393   :  { %v8086_v28 = vadd.f32 %v2346_v18, %v2344_v20  ;;  %v2370_v18 = vld [vmem:[#allocation2 + $0x78] sm:$0xff] }
0x1394   :  { %v8088_v62 = vadd.f32 %v2345_v22, %v2343_v26 }
0x1395   :  { %2506 = vrot.lane.b32.xlu1 %v8086_v28, %s7515_s20 }
0x1396   :  { %2504 = vrot.lane.b32.xlu0 %v8088_v62, %s7515_s20 }
0x1401   :  { %v2197_v31 = vpop.permute.xlu1 %2196 }
0x1402   :  { %v2201_v44 = vmul.f32 %v2197_v31, %v2191_v29  ;;  %v2195_v46 = vpop.permute.xlu0 %2194 }
0x1403   :  { %v2200_v36 = vmul.f32 %v2195_v46, %v2190_v57 }
0x1404   :  { %v8096_v37 = vadd.f32 %v2203_v27, %v2201_v44 }
0x1405   :  { %v8098_v38 = vadd.f32 %v2202_v40, %v2200_v36 }
0x1406   :  { %2353 = vrot.lane.b32.xlu1 %v8096_v37, %s7514_s19 }
0x1407   :  { %2351 = vrot.lane.b32.xlu0 %v8098_v38, %s7514_s19  ;;  %v2507_v42 = vpop.permute.xlu1 %2506 }
0x1408   :  { %v2505_v39 = vpop.permute.xlu0 %2504 }
0x1409   :  { %6688 = vmatprep.mubr.msk.f32.mxu1 %vm300_vm3, %v2505_v39 }
0x140a   :  { %6689 = vmatmul.mubr.msk.f32.vlgmr.msra.gmra.mrb[20].mxu1 %vm300_vm3, %v2507_v42 }
0x140b   :  { %6727 = vmatprep.mubr.f32.mxu1 %v7509_v9 }
0x1478   :  { %v8109_v0 = vpop.permute.xlu1 %2353 }
0x1479   :  { %v8107_v59 = vpop.permute.xlu0 %2351 }
0x147a   :  { %6681 = vmatprep.mubr.msk.f32.mxu0 %vm300_vm3, %v8107_v59 }
0x147b   :  { %6682 = vmatmul.mubr.msk.f32.vlgmr.msra.gmra.mrb[24].mxu0 %vm300_vm3, %v8109_v0 }
0x14dd   :  { %v6690_v43 = vpop.f32.mrb[20].mxu1 }
0x14de   :  { %v2584_v51 = vadd.f32 %v7935_v50, %v6690_v43  ;;  %v2578_v58 = vpop.f32.mrb[21].mxu1 }
0x14df   :  { %v2579_v45 = vadd.f32 %v7935_v50, %v2578_v58 }
0x14e0   :  { %2591 = vrot.lane.b32.xlu1 %v2584_v51, %s7510_s3 }
0x14e1   :  { %2589 = vrot.lane.b32.xlu0 %v2579_v45, %s7510_s3 }
0x14e4   :  { %2611 = vrot.lane.b32.xlu1 %v2584_v51, %s7511_s15 }
0x14e5   :  { %2609 = vrot.lane.b32.xlu0 %v2579_v45, %s7511_s15 }
0x154e   :  { %v6683_v48 = vpop.f32.mrb[24].mxu0 }
0x154f   :  { %v2447_v61 = vadd.f32 %v8016_v52, %v6683_v48  ;;  %v2441_v53 = vpop.f32.mrb[25].mxu0 }
0x1550   :  { %v2442_v54 = vadd.f32 %v8016_v52, %v2441_v53 }
0x1551   :  { %2468 = vrot.lane.b32.xlu1 %v2447_v61, %s7512_s2  ;;  %v2451_v20 = vadd.f32 %v2447_v61, %v2370_v18 }
0x1552   :  { %v2592_v55 = vpop.permute.xlu1 %2591  ;;  %2466 = vrot.lane.b32.xlu0 %v2442_v54, %s7512_s2  ;;  %v2450_v22 = vadd.f32 %v2442_v54, %v2369_v21  ;;  %v2902_v54 = vld [vmem:[%s8882_s8] sm:$0xff] }
0x1553   :  { %v2596_v50 = vadd.f32 %v2592_v55, %v2503_v24  ;;  %v2590_v23 = vpop.permute.xlu0 %2589  ;;  %v6252_v26 = vmul.f32 -1.442695, %v2451_v20  ;;  %v2903_v55 = vld [vmem:[%s8882_s8 + $0x8] sm:$0xff] }
0x1554   :  { %v2595_v2 = vadd.f32 %v2590_v23, %v2502_v30  ;;  %v6251_v29 = vmul.f32 -1.442695, %v2450_v22 }
0x1555   :  { %v6256_v4 = vmul.f32 -1.442695, %v2596_v50  ;;  %v8152_v50 = vpack.c.bf16 %v2903_v55, %v2902_v54 }
0x1556   :  { %v6255_v7 = vmul.f32 -1.442695, %v2595_v2  ;;  %v2612_v15 = vpop.permute.xlu1 %2611 }
0x1557   :  { %7257 = vpow2.f32 %v6256_v4  ;;  %v2610_v47 = vpop.permute.xlu0 %2609  ;;  %6984 = vmatprep.subr.bf16.mxu1 %v8152_v50 }
0x1558   :  { %7259 = vpow2.f32 %v6255_v7  ;;  %6986 = vmatpush3.bf16.msra.mxu1 %v8152_v50 }
0x155b   :  { %6728 = vmatmul.mubr.f32.vlgmr.msra.gmra.mrb[22].mxu1 %v7509_v9 }
0x155c   :  { %6734 = vmatprep.mubr.f32.mxu1 %v7509_v9 }
0x1561   :  { %v7258_v8 = vpop.eup %7257 }
0x1562   :  { %v7260_v16 = vpop.eup %7259  ;;  %v2604_v10 = vadd.f32 1.0, %v7258_v8 }
0x1563   :  { %v2603_v19 = vadd.f32 1.0, %v7260_v16 }
0x1564   :  { %7261 = vrcp.f32 %v2604_v10 }
0x1565   :  { %7263 = vrcp.f32 %v2603_v19  ;;  %v2681_v19 = vld [vmem:[%s8880_s6] sm:$0xff] }
0x1566   :  { %7265 = vpow2.f32 %v6252_v26 }
0x1567   :  { %7267 = vpow2.f32 %v6251_v29 }
0x156e   :  { %v8125_v52 = vpop.eup %7261 }
0x156f   :  { %v8127_v49 = vpop.eup %7263  ;;  %v2616_v14 = vmul.f32 %v8125_v52, %v2612_v15  ;;  %v2682_v15 = vld [vmem:[%s8880_s6 + $0x8] sm:$0xff]  ;;  %v2630_v20 = vsub.f32 1.0, %v8125_v52  ;;  %v2642_v26 = vmul.f32 %v8125_v52, %v8086_v28  ;;  %v8235_v52 = vld [vmem:[%s8883_s9 + $0x1] ss:$0 sm:$0xff] }
0x1570   :  { %v2615_v17 = vmul.f32 %v8127_v49, %v2610_v47  ;;  %v7266_v31 = vpop.eup %7265  ;;  %v2683_v47 = vld [vmem:[%s8880_s6 + $0x10] sm:$0xff]  ;;  %v2629_v22 = vsub.f32 1.0, %v8127_v49 }
0x1571   :  { %2621 = vrot.lane.b32.xlu1 %v2616_v14, %s7513_s18  ;;  %v7268_v57 = vpop.eup %7267  ;;  %v2459_v27 = vadd.f32 1.0, %v7266_v31  ;;  %v6975_v14 = vpack.c.bf16 %v2682_v15, %v2681_v19 }
0x1572   :  { %2619 = vrot.lane.b32.xlu0 %v2615_v17, %s7513_s18  ;;  %v2458_v44 = vadd.f32 1.0, %v7268_v57  ;;  %v2684_v17 = vld [vmem:[%s8880_s6 + $0x18] sm:$0xff]  ;;  %v2641_v57 = vmul.f32 %v8127_v49, %v8088_v62 }
0x1573   :  { %7269 = vrcp.f32 %v2459_v27  ;;  %6976 = vmatprep.subr.bf16.mxu0 %v6975_v14 }
0x1574   :  { %7271 = vrcp.f32 %v2458_v44  ;;  %6978 = vmatpush3.bf16.msra.mxu0 %v6975_v14 }
0x157d   :  { %v8133_v46 = vpop.eup %7269 }
0x157e   :  { %v8135_v36 = vpop.eup %7271 }
0x15c3   :  { %v2469_v40 = vpop.permute.xlu1 %2468 }
0x15c4   :  { %v2473_v39 = vmul.f32 %v8133_v46, %v2469_v40  ;;  %v2467_v42 = vpop.permute.xlu0 %2466 }
0x15c5   :  { %v2472_v43 = vmul.f32 %v8135_v36, %v2467_v42 }
0x15c6   :  { %2478 = vrot.lane.b32.xlu1 %v2473_v39, %s7513_s18 }
0x15c7   :  { %2476 = vrot.lane.b32.xlu0 %v2472_v43, %s7513_s18 }
0x15e3   :  { %v2622_v51 = vpop.permute.xlu1 %2621 }
0x15e4   :  { %v2626_v58 = vadd.f32 %v2622_v51, %v2503_v24  ;;  %v2620_v45 = vpop.permute.xlu0 %2619  ;;  %v6274_v24 = vld [vmem:[%s8882_s8 + $0x10] sm:$0xff] }
0x15e5   :  { %v2625_v48 = vadd.f32 %v2620_v45, %v2502_v30  ;;  %v6275_v30 = vld [vmem:[%s8882_s8 + $0x18] sm:$0xff]  ;;  %s7516_s8 = smov 80  }
0x15e6   :  { %7273 = vtanh.f32 %v2626_v58  ;;  %v8157_v23 = vpack.c.bf16 %v6275_v30, %v6274_v24 }
0x15e7   :  { %7275 = vtanh.f32 %v2625_v48 }
0x15e8   :  { %6988 = vmatprep.subr.bf16.mxu1 %v8157_v23 }
0x15e9   :  { %6990 = vmatpush3.bf16.msra.mxu1 %v8157_v23 }
0x15ea   :  { %6992 = vmatprep.subr.bf16.mxu1 %v8152_v50 }
0x15ec   :  { %6735 = vmatmul.mubr.f32.vlgmr.msra.gmra.mrb[24].mxu1 %v7509_v9 }
0x15ed   :  { %6994 = vmatpush3.bf16.msra.mxu1 %v8152_v50 }
0x15ee   :  { %6996 = vmatprep.subr.bf16.mxu1 %v8157_v23 }
0x15f0   :  { %v7274_v61 = vpop.eup %7273 }
0x15f1   :  { %v7276_v53 = vpop.eup %7275  ;;  %2635 = vrot.lane.b32.xlu1 %v7274_v61, %s7514_s19 }
0x15f2   :  { %2633 = vrot.lane.b32.xlu0 %v7276_v53, %s7514_s19 }
0x1638   :  { %v2479_v2 = vpop.permute.xlu1 %2478 }
0x1639   :  { %v2483_v4 = vadd.f32 %v2479_v2, %v2370_v18  ;;  %v2477_v7 = vpop.permute.xlu0 %2476  ;;  %v6979_v18 = vpack.c.bf16 %v2684_v17, %v2683_v47 }
0x163a   :  { %v2482_v8 = vadd.f32 %v2477_v7, %v2369_v21 }
0x163b   :  { %7277 = vtanh.f32 %v2483_v4  ;;  %6980 = vmatprep.subr.bf16.mxu0 %v6979_v18 }
0x163c   :  { %7279 = vtanh.f32 %v2482_v8  ;;  %6982 = vmatpush3.bf16.msra.mxu0 %v6979_v18 }
0x163d   :  { %7020 = vmatprep.subr.bf16.mxu0 %v8157_v23 }
0x1645   :  { %v7278_v16 = vpop.eup %7277 }
0x1646   :  { %v7280_v10 = vpop.eup %7279  ;;  %2492 = vrot.lane.b32.xlu1 %v7278_v16, %s7514_s19 }
0x1647   :  { %2490 = vrot.lane.b32.xlu0 %v7280_v10, %s7514_s19 }
0x164a   :  { %2363 = vrot.lane.b32.xlu1 %v8086_v28, %s7516_s8 }
0x164b   :  { %2361 = vrot.lane.b32.xlu0 %v8088_v62, %s7516_s8 }
0x1663   :  { %v2636_v21 = vpop.permute.xlu1 %2635 }
0x1664   :  { %v2640_v29 = vmul.f32 %v2636_v21, %v2630_v20  ;;  %v2634_v31 = vpop.permute.xlu0 %2633 }
0x1665   :  { %v2639_v27 = vmul.f32 %v2634_v31, %v2629_v22 }
0x1666   :  { %v2644_v44 = vadd.f32 %v2642_v26, %v2640_v29  ;;  %v8305_v26 = vld [vmem:[%s8881_s7] ss:$0 sm:$0xff] }
0x1667   :  { %v2643_v40 = vadd.f32 %v2641_v57, %v2639_v27 }
0x1668   :  { %2659 = vrot.lane.b32.xlu1 %v2644_v44, %s7516_s8 }
0x1669   :  { %2657 = vrot.lane.b32.xlu0 %v2643_v40, %s7516_s8 }
0x166c   :  { %2067 = vrot.lane.b32.xlu1 %v8032_v32, %s7516_s8 }
0x166d   :  { %2065 = vrot.lane.b32.xlu0 %v8034_v35, %s7516_s8 }
0x1670   :  { %1771 = vrot.lane.b32.xlu1 %v7967_v56, %s7516_s8 }
0x1671   :  { %1769 = vrot.lane.b32.xlu0 %v7969_v25, %s7516_s8 }
0x1674   :  { %1475 = vrot.lane.b32.xlu1 %v7904_v11, %s7516_s8  ;;  %v2487_v11 = vsub.f32 1.0, %v8133_v46 }
0x1675   :  { %1473 = vrot.lane.b32.xlu0 %v7906_v13, %s7516_s8 }
0x1678   :  { %1179 = vrot.lane.b32.xlu1 %v7856_v60, %s7516_s8  ;;  %v2486_v60 = vsub.f32 1.0, %v8135_v36 }
0x1679   :  { %1177 = vrot.lane.b32.xlu0 %v7858_v63, %s7516_s8  ;;  %v2499_v63 = vmul.f32 %v8133_v46, %v8096_v37  ;;  %v6729_v37 = vpop.f32.mrb[22].mxu1 }
0x167c   :  { %883 = vrot.lane.b32.xlu1 %v7792_v33, %s7516_s8  ;;  %v2498_v33 = vmul.f32 %v8135_v36, %v8098_v38  ;;  %v2984_v38 = vpop.f32.mrb[23].mxu1  ;;  %v8241_v36 = vld [vmem:[%s8883_s9] ss:$0 sm:$0xff] }
0x167d   :  { %881 = vrot.lane.b32.xlu0 %v7794_v34, %s7516_s8  ;;  %v8247_v45 = vadd.f32 %v6729_v37, %v8241_v36  ;;  %v8252_v53 = vadd.f32 %v8241_v36, %v2984_v38 }
0x1680   :  { %586 = vrot.lane.b32.xlu1 %v7748_v12, %s7516_s8 }
0x1681   :  { %584 = vrot.lane.b32.xlu0 %v7742_v5, %s7516_s8 }
0x16b8   :  { %v2493_v13 = vpop.permute.xlu1 %2492 }
0x16b9   :  { %v2497_v56 = vmul.f32 %v2493_v13, %v2487_v11  ;;  %v2491_v25 = vpop.permute.xlu0 %2490 }
0x16ba   :  { %v2496_v34 = vmul.f32 %v2491_v25, %v2486_v60 }
0x16bb   :  { %v2501_v32 = vadd.f32 %v2499_v63, %v2497_v56 }
0x16bc   :  { %v2500_v12 = vadd.f32 %v2498_v33, %v2496_v34  ;;  %v2364_v35 = vpop.permute.xlu1 %2363 }
0x16bd   :  { %2368 = vst.msk [vmem:[#allocation3 + $0x18] sm:$0xff] %vm590_vm4, %v2364_v35  ;;  %2649 = vrot.lane.b32.xlu1 %v2501_v32, %s7514_s19  ;;  %v2362_v5 = vpop.permute.xlu0 %2361 }
0x16be   :  { %2367 = vst.msk [vmem:[#allocation3 + $0x10] sm:$0xff] %vm590_vm4, %v2362_v5  ;;  %2647 = vrot.lane.b32.xlu0 %v2500_v12, %s7514_s19 }
0x16bf   :  { %v6736_v39 = vpop.f32.mrb[24].mxu1 }
0x16c0   :  { %v3125_v42 = vadd.f32 %v6736_v39, %v8235_v52  ;;  %v3119_v43 = vpop.f32.mrb[25].mxu1 }
0x16c1   :  { %v3120_v51 = vadd.f32 %v8235_v52, %v3119_v43 }
0x16c2   :  { %3132 = vrot.lane.b32.xlu1 %v3125_v42, %s7510_s3 }
0x16c3   :  { %3130 = vrot.lane.b32.xlu0 %v3120_v51, %s7510_s3 }
0x16c4   :  { %v2668_v2 = vld [vmem:[#allocation3 + $0x18] sm:$0xff] }
0x16c5   :  { %v2667_v55 = vld [vmem:[#allocation3 + $0x10] sm:$0xff] }
0x16c6   :  { %3011 = vrot.lane.b32.xlu1 %v8247_v45, %s7512_s2 }
0x16c7   :  { %3009 = vrot.lane.b32.xlu0 %v8252_v53, %s7512_s2 }
0x16ca   :  { %3152 = vrot.lane.b32.xlu1 %v3125_v42, %s7511_s15 }
0x16cb   :  { %3150 = vrot.lane.b32.xlu0 %v3120_v51, %s7511_s15 }
0x16da   :  { %v2660_v28 = vpop.permute.xlu1 %2659 }
0x16db   :  { %2664 = vst.msk [vmem:[#allocation3 + $0x8] sm:$0xff] %vm590_vm4, %v2660_v28  ;;  %v2658_v62 = vpop.permute.xlu0 %2657 }
0x16dc   :  { %2663 = vst.msk [vmem:[#allocation3] sm:$0xff] %vm590_vm4, %v2658_v62 }
0x16de   :  { %v2068_v49 = vpop.permute.xlu1 %2067 }
0x16df   :  { %2072 = vst.msk [vmem:[#allocation3 + $0x28] sm:$0xff] %vm590_vm4, %v2068_v49  ;;  %v2066_v46 = vpop.permute.xlu0 %2065 }
0x16e0   :  { %2071 = vst.msk [vmem:[#allocation3 + $0x20] sm:$0xff] %vm590_vm4, %v2066_v46 }
0x16e2   :  { %v1772_v58 = vpop.permute.xlu1 %1771  ;;  %v2666_v54 = vld [vmem:[#allocation3 + $0x8] sm:$0xff] }
0x16e3   :  { %1776 = vst.msk [vmem:[#allocation3 + $0x38] sm:$0xff] %vm590_vm4, %v1772_v58  ;;  %v1770_v48 = vpop.permute.xlu0 %1769  ;;  %v2665_v61 = vld [vmem:[#allocation3] sm:$0xff] }
0x16e4   :  { %1775 = vst.msk [vmem:[#allocation3 + $0x30] sm:$0xff] %vm590_vm4, %v1770_v48  ;;  %6699 = vmatprep.mubr.msk.f32.mxu0 %vm2692_vm5, %v2665_v61 }
0x16e5   :  { %6700 = vmatmul.mubr.msk.f32.vlgmr.msra.gmra.mrb[26].mxu0 %vm2692_vm5, %v2666_v54 }
0x16e6   :  { %v1476_v24 = vpop.permute.xlu1 %1475  ;;  %6702 = vmatprep.mubr.msk.f32.mxu0 %vm2692_vm5, %v2667_v55  ;;  %7022 = vmatpush3.bf16.msra.mxu0 %v8157_v23 }
0x16e7   :  { %1480 = vst.msk [vmem:[#allocation3 + $0x48] sm:$0xff] %vm590_vm4, %v1476_v24  ;;  %v1474_v30 = vpop.permute.xlu0 %1473  ;;  %7028 = vmatprep.subr.bf16.mxu0 %v8157_v23  ;;  %v2669_v4 = vld [vmem:[#allocation3 + $0x20] sm:$0xff] }
0x16e8   :  { %1766 = vst.msk [vmem:[#allocation3 + $0x48] sm:$0xff] %vm300_vm3, %v8001_v3  ;;  %v2670_v3 = vld [vmem:[#allocation3 + $0x28] sm:$0xff] }
0x16e9   :  { %1479 = vst.msk [vmem:[#allocation3 + $0x40] sm:$0xff] %vm590_vm4, %v1474_v30  ;;  %6703 = vmatmul.mubr.msk.f32.gmra.mrb[28].mxu0 %vm2692_vm5, %v2668_v2 }
0x16ea   :  { %1765 = vst.msk [vmem:[#allocation3 + $0x40] sm:$0xff] %vm300_vm3, %v7999_v41  ;;  %v1180_v7 = vpop.permute.xlu1 %1179  ;;  %6705 = vmatprep.mubr.msk.f32.mxu0 %vm2692_vm5, %v2669_v4 }
0x16eb   :  { %1184 = vst.msk [vmem:[#allocation3 + $0x58] sm:$0xff] %vm590_vm4, %v1180_v7  ;;  %v1178_v8 = vpop.permute.xlu0 %1177  ;;  %v2671_v41 = vld [vmem:[#allocation3 + $0x30] sm:$0xff] }
0x16ec   :  { %2062 = vst.msk [vmem:[#allocation3 + $0x58] sm:$0xff] %vm300_vm3, %v8059_v1  ;;  %v2672_v1 = vld [vmem:[#allocation3 + $0x38] sm:$0xff] }
0x16ed   :  { %1183 = vst.msk [vmem:[#allocation3 + $0x50] sm:$0xff] %vm590_vm4, %v1178_v8  ;;  %6706 = vmatmul.mubr.msk.f32.gmra.mrb[30].mxu0 %vm2692_vm5, %v2670_v3 }
0x16ee   :  { %2061 = vst.msk [vmem:[#allocation3 + $0x50] sm:$0xff] %vm300_vm3, %v8057_v6  ;;  %v884_v16 = vpop.permute.xlu1 %883  ;;  %6708 = vmatprep.mubr.msk.f32.mxu0 %vm2692_vm5, %v2671_v41 }
0x16ef   :  { %888 = vst.msk [vmem:[#allocation3 + $0x68] sm:$0xff] %vm590_vm4, %v884_v16  ;;  %v882_v10 = vpop.permute.xlu0 %881  ;;  %v2674_v14 = vld [vmem:[#allocation3 + $0x48] sm:$0xff] }
0x16f0   :  { %2358 = vst.msk [vmem:[#allocation3 + $0x68] sm:$0xff] %vm300_vm3, %v8109_v0 }
0x16f1   :  { %887 = vst.msk [vmem:[#allocation3 + $0x60] sm:$0xff] %vm590_vm4, %v882_v10  ;;  %v2673_v19 = vld [vmem:[#allocation3 + $0x40] sm:$0xff]  ;;  %6709 = vmatmul.mubr.msk.f32.gmra.mrb[32].mxu0 %vm2692_vm5, %v2672_v1 }
0x16f2   :  { %2357 = vst.msk [vmem:[#allocation3 + $0x60] sm:$0xff] %vm300_vm3, %v8107_v59  ;;  %v587_v6 = vpop.permute.xlu1 %586  ;;  %6711 = vmatprep.mubr.msk.f32.mxu0 %vm2692_vm5, %v2673_v19 }
0x16f3   :  { %592 = vst.msk [vmem:[#allocation3 + $0x78] sm:$0xff] %vm590_vm4, %v587_v6  ;;  %v585_v15 = vpop.permute.xlu0 %584  ;;  %v2676_v0 = vld [vmem:[#allocation3 + $0x58] sm:$0xff] }
0x16f4   :  { %591 = vst.msk [vmem:[#allocation3 + $0x70] sm:$0xff] %vm590_vm4, %v585_v15 }
0x16f5   :  { %v2675_v47 = vld [vmem:[#allocation3 + $0x50] sm:$0xff]  ;;  %6712 = vmatmul.mubr.msk.f32.gmra.mrb[34].mxu0 %vm2692_vm5, %v2674_v14 }
0x16f6   :  { %6714 = vmatprep.mubr.msk.f32.mxu0 %vm2692_vm5, %v2675_v47 }
0x16f7   :  { %v2678_v59 = vld [vmem:[#allocation3 + $0x68] sm:$0xff] }
0x16f9   :  { %v2677_v17 = vld [vmem:[#allocation3 + $0x60] sm:$0xff]  ;;  %6715 = vmatmul.mubr.msk.f32.gmra.mrb[36].mxu0 %vm2692_vm5, %v2676_v0 }
0x16fa   :  { %6717 = vmatprep.mubr.msk.f32.mxu0 %vm2692_vm5, %v2677_v17 }
0x16fd   :  { %6718 = vmatmul.mubr.msk.f32.gmra.mrb[38].mxu0 %vm2692_vm5, %v2678_v59 }
0x172f   :  { %v2650_v18 = vpop.permute.xlu1 %2649 }
0x1730   :  { %2654 = vst.msk [vmem:[#allocation3 + $0x78] sm:$0xff] %vm300_vm3, %v2650_v18  ;;  %v2648_v20 = vpop.permute.xlu0 %2647 }
0x1731   :  { %2653 = vst.msk [vmem:[#allocation3 + $0x70] sm:$0xff] %vm300_vm3, %v2648_v20 }
0x1734   :  { %v3133_v4 = vpop.permute.xlu1 %3132 }
0x1735   :  { %v3131_v7 = vpop.permute.xlu0 %3130 }
0x1737   :  { %v2680_v22 = vld [vmem:[#allocation3 + $0x78] sm:$0xff] }
0x1738   :  { %v2679_v21 = vld [vmem:[#allocation3 + $0x70] sm:$0xff]  ;;  %v3012_v8 = vpop.permute.xlu1 %3011 }
0x1739   :  { %6720 = vmatprep.mubr.msk.f32.mxu0 %vm2692_vm5, %v2679_v21  ;;  %v3010_v3 = vpop.permute.xlu0 %3009 }
0x173a   :  { %6721 = vmatmul.mubr.msk.f32.gmra.mrb[40].mxu0 %vm2692_vm5, %v2680_v22 }
0x17b8   :  { %v6701_v29 = vpop.f32.mrb[26].mxu0 }
0x17b9   :  { %v2813_v31 = vadd.f32 %v6701_v29, %v8305_v26  ;;  %v2807_v57 = vpop.f32.mrb[27].mxu0 }
0x17ba   :  { %v2808_v27 = vadd.f32 %v8305_v26, %v2807_v57 }
0x17bb   :  { %2887 = vst.msk [vmem:[#allocation2 + $0x8] sm:$0xff] %vm267_vm2, %v2813_v31 }
0x17bc   :  { %2886 = vst.msk [vmem:[#allocation2] sm:$0xff] %vm267_vm2, %v2808_v27  ;;  %v6704_v44 = vpop.f32.mrb[28].mxu0 }
0x17bd   :  { %v2823_v40 = vadd.f32 %v6704_v44, %v8305_v26  ;;  %v2817_v11 = vpop.f32.mrb[29].mxu0 }
0x17be   :  { %v2818_v13 = vadd.f32 %v8305_v26, %v2817_v11 }
0x17bf   :  { %2889 = vst.msk [vmem:[#allocation2 + $0x18] sm:$0xff] %vm267_vm2, %v2823_v40  ;;  %v3151_v40 = vpop.permute.xlu0 %3150 }
0x17c0   :  { %2888 = vst.msk [vmem:[#allocation2 + $0x10] sm:$0xff] %vm267_vm2, %v2818_v13  ;;  %v6707_v60 = vpop.f32.mrb[30].mxu0 }
0x17c1   :  { %v2833_v63 = vadd.f32 %v6707_v60, %v8305_v26  ;;  %v2827_v56 = vpop.f32.mrb[31].mxu0 }
0x17c2   :  { %v2828_v25 = vadd.f32 %v8305_v26, %v2827_v56  ;;  %v8317_v33 = vld [vmem:[#allocation2 + $0x8] sm:$0xff] }
0x17c3   :  { %2891 = vst.msk [vmem:[#allocation2 + $0x28] sm:$0xff] %vm267_vm2, %v2833_v63  ;;  %v2994_v34 = vadd.f32 %v8247_v45, %v8317_v33  ;;  %v8322_v32 = vld [vmem:[#allocation2] sm:$0xff] }
0x17c4   :  { %2890 = vst.msk [vmem:[#allocation2 + $0x20] sm:$0xff] %vm267_vm2, %v2828_v25  ;;  %v6710_v12 = vpop.f32.mrb[32].mxu0  ;;  %v2993_v35 = vadd.f32 %v8252_v53, %v8322_v32 }
0x17c5   :  { %v2843_v5 = vadd.f32 %v6710_v12, %v8305_v26  ;;  %v2837_v28 = vpop.f32.mrb[33].mxu0  ;;  %v6279_v62 = vmul.f32 -1.442695, %v2994_v34 }
0x17c6   :  { %v2838_v37 = vadd.f32 %v8305_v26, %v2837_v28  ;;  %v6278_v38 = vmul.f32 -1.442695, %v2993_v35 }
0x17c7   :  { %2893 = vst.msk [vmem:[#allocation2 + $0x38] sm:$0xff] %vm267_vm2, %v2843_v5  ;;  %7281 = vpow2.f32 %v6279_v62 }
0x17c8   :  { %2892 = vst.msk [vmem:[#allocation2 + $0x30] sm:$0xff] %vm267_vm2, %v2838_v37  ;;  %v6713_v49 = vpop.f32.mrb[34].mxu0  ;;  %7283 = vpow2.f32 %v6278_v38 }
0x17c9   :  { %v2853_v46 = vadd.f32 %v6713_v49, %v8305_v26  ;;  %v2847_v39 = vpop.f32.mrb[35].mxu0 }
0x17ca   :  { %v2848_v42 = vadd.f32 %v8305_v26, %v2847_v39 }
0x17cb   :  { %2895 = vst.msk [vmem:[#allocation2 + $0x48] sm:$0xff] %vm267_vm2, %v2853_v46 }
0x17cc   :  { %2894 = vst.msk [vmem:[#allocation2 + $0x40] sm:$0xff] %vm267_vm2, %v2848_v42  ;;  %v6716_v43 = vpop.f32.mrb[36].mxu0 }
0x17cd   :  { %v2863_v51 = vadd.f32 %v6716_v43, %v8305_v26  ;;  %v2857_v58 = vpop.f32.mrb[37].mxu0 }
0x17ce   :  { %v2858_v45 = vadd.f32 %v8305_v26, %v2857_v58 }
0x17cf   :  { %2897 = vst.msk [vmem:[#allocation2 + $0x58] sm:$0xff] %vm267_vm2, %v2863_v51 }
0x17d0   :  { %2896 = vst.msk [vmem:[#allocation2 + $0x50] sm:$0xff] %vm267_vm2, %v2858_v45  ;;  %v6719_v48 = vpop.f32.mrb[38].mxu0 }
0x17d1   :  { %v7282_v61 = vpop.eup %7281  ;;  %v2873_v53 = vadd.f32 %v6719_v48, %v8305_v26  ;;  %v2867_v54 = vpop.f32.mrb[39].mxu0 }
0x17d2   :  { %v7284_v55 = vpop.eup %7283  ;;  %v2868_v24 = vadd.f32 %v8305_v26, %v2867_v54  ;;  %v3002_v30 = vadd.f32 1.0, %v7282_v61 }
0x17d3   :  { %2899 = vst.msk [vmem:[#allocation2 + $0x68] sm:$0xff] %vm267_vm2, %v2873_v53  ;;  %v3001_v2 = vadd.f32 1.0, %v7284_v55 }
0x17d4   :  { %2898 = vst.msk [vmem:[#allocation2 + $0x60] sm:$0xff] %vm267_vm2, %v2868_v24  ;;  %7285 = vrcp.f32 %v3002_v30 }
0x17d5   :  { %7287 = vrcp.f32 %v3001_v2 }
0x17de   :  { %v7286_v41 = vpop.eup %7285 }
0x17df   :  { %v7288_v16 = vpop.eup %7287  ;;  %v3016_v10 = vmul.f32 %v7286_v41, %v3012_v8  ;;  %v3042_v49 = vmul.f32 0.0, %v7286_v41 }
0x17e0   :  { %v3015_v1 = vmul.f32 %v7288_v16, %v3010_v3  ;;  %v3029_v38 = vsub.f32 1.0, %v7288_v16  ;;  %v3041_v42 = vmul.f32 0.0, %v7288_v16 }
0x17e1   :  { %3021 = vrot.lane.b32.xlu1 %v3016_v10, %s7513_s18 }
0x17e2   :  { %3019 = vrot.lane.b32.xlu0 %v3015_v1, %s7513_s18 }
0x180d   :  { %v6722_v19 = vpop.f32.mrb[40].mxu0 }
0x180e   :  { %v2883_v6 = vadd.f32 %v6722_v19, %v8305_v26  ;;  %v2877_v15 = vpop.f32.mrb[41].mxu0 }
0x180f   :  { %v2878_v14 = vadd.f32 %v8305_v26, %v2877_v15  ;;  %v3153_v26 = vpop.permute.xlu1 %3152 }
0x1810   :  { %2901 = vst.msk [vmem:[#allocation2 + $0x78] sm:$0xff] %vm267_vm2, %v2883_v6 }
0x1811   :  { %2900 = vst.msk [vmem:[#allocation2 + $0x70] sm:$0xff] %vm267_vm2, %v2878_v14  ;;  %vm6156_vm2 = vcmask 7168  }
0x1817   :  { %v3046_v47 = vld [vmem:[#allocation2 + $0x78] sm:$0xff] }
0x1818   :  { %v3137_v0 = vadd.f32 %v3133_v4, %v3046_v47  ;;  %v3045_v17 = vld [vmem:[#allocation2 + $0x70] sm:$0xff] }
0x1819   :  { %v3136_v59 = vadd.f32 %v3131_v7, %v3045_v17 }
0x181a   :  { %v6282_v18 = vmul.f32 -1.442695, %v3137_v0  ;;  %v3187_v0 = vld [vmem:[#allocation2 + $0x18] sm:$0xff] }
0x181b   :  { %v6281_v20 = vmul.f32 -1.442695, %v3136_v59  ;;  %v3186_v59 = vld [vmem:[#allocation2 + $0x10] sm:$0xff] }
0x181c   :  { %7289 = vpow2.f32 %v6282_v18 }
0x181d   :  { %7291 = vpow2.f32 %v6281_v20 }
0x1826   :  { %v7290_v21 = vpop.eup %7289 }
0x1827   :  { %v7292_v22 = vpop.eup %7291  ;;  %v3145_v29 = vadd.f32 1.0, %v7290_v21 }
0x1828   :  { %v3144_v31 = vadd.f32 1.0, %v7292_v22 }
0x1829   :  { %7293 = vrcp.f32 %v3145_v29 }
0x182a   :  { %7295 = vrcp.f32 %v3144_v31 }
0x1833   :  { %v7294_v57 = vpop.eup %7293 }
0x1834   :  { %v7296_v27 = vpop.eup %7295  ;;  %v3157_v44 = vmul.f32 %v7294_v57, %v3153_v26  ;;  %v3171_v45 = vsub.f32 1.0, %v7294_v57  ;;  %v3183_v53 = vmul.f32 0.0, %v7294_v57  ;;  %v3326_v26 = vld [vmem:[#allocation2 + $0x68] sm:$0xff] }
0x1835   :  { %v3156_v11 = vmul.f32 %v7296_v27, %v3151_v40  ;;  %v3170_v61 = vsub.f32 1.0, %v7296_v27  ;;  %v3182_v24 = vmul.f32 0.0, %v7296_v27  ;;  %v3325_v40 = vld [vmem:[#allocation2 + $0x60] sm:$0xff] }
0x1836   :  { %3162 = vrot.lane.b32.xlu1 %v3157_v44, %s7513_s18 }
0x1837   :  { %3160 = vrot.lane.b32.xlu0 %v3156_v11, %s7513_s18 }
0x1853   :  { %v3022_v13 = vpop.permute.xlu1 %3021 }
0x1854   :  { %v3026_v60 = vadd.f32 %v3022_v13, %v8317_v33  ;;  %v3020_v63 = vpop.permute.xlu0 %3019  ;;  %v3030_v33 = vsub.f32 1.0, %v7286_v41 }
0x1855   :  { %v3025_v56 = vadd.f32 %v3020_v63, %v8322_v32 }
0x1856   :  { %7297 = vtanh.f32 %v3026_v60 }
0x1857   :  { %7299 = vtanh.f32 %v3025_v56 }
0x1860   :  { %v7298_v25 = vpop.eup %7297 }
0x1861   :  { %v7300_v34 = vpop.eup %7299  ;;  %3035 = vrot.lane.b32.xlu1 %v7298_v25, %s7514_s19 }
0x1862   :  { %3033 = vrot.lane.b32.xlu0 %v7300_v34, %s7514_s19 }
0x18a8   :  { %v3163_v12 = vpop.permute.xlu1 %3162 }
0x18a9   :  { %v3167_v35 = vadd.f32 %v3163_v12, %v3046_v47  ;;  %v3161_v5 = vpop.permute.xlu0 %3160 }
0x18aa   :  { %v3166_v28 = vadd.f32 %v3161_v5, %v3045_v17 }
0x18ab   :  { %7301 = vtanh.f32 %v3167_v35 }
0x18ac   :  { %7303 = vtanh.f32 %v3166_v28 }
0x18b5   :  { %v7302_v62 = vpop.eup %7301 }
0x18b6   :  { %v7304_v37 = vpop.eup %7303  ;;  %3176 = vrot.lane.b32.xlu1 %v7302_v62, %s7514_s19 }
0x18b7   :  { %3174 = vrot.lane.b32.xlu0 %v7304_v37, %s7514_s19 }
0x18d3   :  { %v3036_v32 = vpop.permute.xlu1 %3035 }
0x18d4   :  { %v3040_v46 = vmul.f32 %v3036_v32, %v3030_v33  ;;  %v3034_v39 = vpop.permute.xlu0 %3033 }
0x18d5   :  { %v3039_v43 = vmul.f32 %v3034_v39, %v3029_v38 }
0x18d6   :  { %v8357_v51 = vadd.f32 %v3042_v49, %v3040_v46 }
0x18d7   :  { %v8359_v58 = vadd.f32 %v3041_v42, %v3039_v43 }
0x18d8   :  { %3192 = vrot.lane.b32.xlu1 %v8357_v51, %s7514_s19 }
0x18d9   :  { %3190 = vrot.lane.b32.xlu0 %v8359_v58, %s7514_s19 }
0x1928   :  { %v3177_v48 = vpop.permute.xlu1 %3176 }
0x1929   :  { %v3181_v54 = vmul.f32 %v3177_v48, %v3171_v45  ;;  %v3175_v55 = vpop.permute.xlu0 %3174 }
0x192a   :  { %v3180_v30 = vmul.f32 %v3175_v55, %v3170_v61 }
0x192b   :  { %v8365_v2 = vadd.f32 %v3183_v53, %v3181_v54 }
0x192c   :  { %v8367_v4 = vadd.f32 %v3182_v24, %v3180_v30 }
0x192d   :  { %3331 = vrot.lane.b32.xlu1 %v8365_v2, %s7515_s20 }
0x192e   :  { %3329 = vrot.lane.b32.xlu0 %v8367_v4, %s7515_s20 }
0x194a   :  { %v3193_v8 = vpop.permute.xlu1 %3192 }
0x194b   :  { %v3191_v7 = vpop.permute.xlu0 %3190 }
0x194c   :  { %6741 = vmatprep.mubr.msk.f32.mxu1 %vm300_vm3, %v3191_v7 }
0x194d   :  { %6742 = vmatmul.mubr.msk.f32.vlgmr.msra.gmra.mrb[26].mxu1 %vm300_vm3, %v3193_v8 }
0x194e   :  { %6998 = vmatpush3.bf16.msra.mxu1 %v8157_v23 }
0x194f   :  { %7000 = vmatprep.subr.bf16.mxu1 %v8152_v50 }
0x199f   :  { %v3332_v41 = vpop.permute.xlu1 %3331 }
0x19a0   :  { %v3330_v3 = vpop.permute.xlu0 %3329 }
0x19a1   :  { %6748 = vmatprep.mubr.msk.f32.mxu1 %vm300_vm3, %v3330_v3 }
0x19a2   :  { %6749 = vmatmul.mubr.msk.f32.vlgmr.msra.gmra.mrb[28].mxu1 %vm300_vm3, %v3332_v41 }
0x19a3   :  { %7002 = vmatpush3.bf16.msra.mxu1 %v8152_v50 }
0x19a4   :  { %7004 = vmatprep.subr.bf16.mxu1 %v8157_v23 }
0x1a20   :  { %v6743_v16 = vpop.f32.mrb[26].mxu1 }
0x1a21   :  { %v3264_v10 = vpop.f32.mrb[27].mxu1  ;;  %v3270_v14 = vadd.f32 %v6743_v16, %v8241_v36 }
0x1a22   :  { %v3265_v47 = vadd.f32 %v8241_v36, %v3264_v10 }
0x1a23   :  { %v3274_v17 = vadd.f32 %v3270_v14, %v3187_v0 }
0x1a24   :  { %v3273_v18 = vadd.f32 %v3265_v47, %v3186_v59 }
0x1a25   :  { %v6286_v20 = vmul.f32 -1.442695, %v3274_v17 }
0x1a26   :  { %v6285_v21 = vmul.f32 -1.442695, %v3273_v18 }
0x1a27   :  { %7305 = vpow2.f32 %v6286_v20 }
0x1a28   :  { %7307 = vpow2.f32 %v6285_v21 }
0x1a31   :  { %v7306_v22 = vpop.eup %7305 }
0x1a32   :  { %v7308_v29 = vpop.eup %7307  ;;  %v3282_v31 = vadd.f32 1.0, %v7306_v22 }
0x1a33   :  { %v3281_v57 = vadd.f32 1.0, %v7308_v29 }
0x1a34   :  { %7309 = vrcp.f32 %v3282_v31 }
0x1a35   :  { %7311 = vrcp.f32 %v3281_v57 }
0x1a3e   :  { %v7310_v63 = vpop.eup %7309 }
0x1a3f   :  { %v7312_v34 = vpop.eup %7311  ;;  %v3310_v41 = vsub.f32 1.0, %v7310_v63 }
0x1a40   :  { %v3309_v10 = vsub.f32 1.0, %v7312_v34 }
0x1a75   :  { %v6750_v1 = vpop.f32.mrb[28].mxu1 }
0x1a76   :  { %v3409_v19 = vadd.f32 %v6750_v1, %v8235_v52  ;;  %v3403_v6 = vpop.f32.mrb[29].mxu1  ;;  %v3322_v1 = vmul.f32 %v7310_v63, %v8357_v51 }
0x1a77   :  { %v3404_v15 = vadd.f32 %v8235_v52, %v3403_v6 }
0x1a78   :  { %3416 = vrot.lane.b32.xlu1 %v3409_v19, %s7510_s3 }
0x1a79   :  { %3414 = vrot.lane.b32.xlu0 %v3404_v15, %s7510_s3 }
0x1a7c   :  { %3291 = vrot.lane.b32.xlu1 %v3270_v14, %s7512_s2 }
0x1a7d   :  { %3289 = vrot.lane.b32.xlu0 %v3265_v47, %s7512_s2 }
0x1a80   :  { %3436 = vrot.lane.b32.xlu1 %v3409_v19, %s7511_s15 }
0x1a81   :  { %3434 = vrot.lane.b32.xlu0 %v3404_v15, %s7511_s15  ;;  %v3321_v15 = vmul.f32 %v7312_v34, %v8359_v58 }
0x1aea   :  { %v3417_v27 = vpop.permute.xlu1 %3416 }
0x1aeb   :  { %v3421_v44 = vadd.f32 %v3417_v27, %v3326_v26  ;;  %v3415_v11 = vpop.permute.xlu0 %3414 }
0x1aec   :  { %v3420_v13 = vadd.f32 %v3415_v11, %v3325_v40 }
0x1aed   :  { %v6290_v60 = vmul.f32 -1.442695, %v3421_v44 }
0x1aee   :  { %v6289_v56 = vmul.f32 -1.442695, %v3420_v13  ;;  %v3292_v25 = vpop.permute.xlu1 %3291 }
0x1aef   :  { %7313 = vpow2.f32 %v6290_v60  ;;  %v3296_v12 = vmul.f32 %v7310_v63, %v3292_v25  ;;  %v3290_v35 = vpop.permute.xlu0 %3289  ;;  %v8437_v25 = vld [vmem:[#allocation2 + $0x28] sm:$0xff] }
0x1af0   :  { %7315 = vpow2.f32 %v6289_v56  ;;  %v3295_v5 = vmul.f32 %v7312_v34, %v3290_v35 }
0x1af1   :  { %3301 = vrot.lane.b32.xlu1 %v3296_v12, %s7513_s18  ;;  %v8440_v12 = vld [vmem:[#allocation2 + $0x20] sm:$0xff] }
0x1af2   :  { %3299 = vrot.lane.b32.xlu0 %v3295_v5, %s7513_s18  ;;  %v3437_v38 = vpop.permute.xlu1 %3436 }
0x1af3   :  { %v3435_v39 = vpop.permute.xlu0 %3434 }
0x1af9   :  { %v7314_v28 = vpop.eup %7313 }
0x1afa   :  { %v7316_v62 = vpop.eup %7315  ;;  %v3429_v37 = vadd.f32 1.0, %v7314_v28 }
0x1afb   :  { %v3428_v33 = vadd.f32 1.0, %v7316_v62 }
0x1afc   :  { %7317 = vrcp.f32 %v3429_v37 }
0x1afd   :  { %7319 = vrcp.f32 %v3428_v33 }
0x1b06   :  { %v7318_v32 = vpop.eup %7317 }
0x1b07   :  { %v7320_v49 = vpop.eup %7319  ;;  %v3441_v46 = vmul.f32 %v7318_v32, %v3437_v38  ;;  %v3455_v17 = vsub.f32 1.0, %v7318_v32  ;;  %v3467_v51 = vmul.f32 %v7318_v32, %v8365_v2  ;;  %v8443_v38 = vld [vmem:[#allocation2 + $0x58] sm:$0xff] }
0x1b08   :  { %v3440_v42 = vmul.f32 %v7320_v49, %v3435_v39  ;;  %v3454_v18 = vsub.f32 1.0, %v7320_v49  ;;  %v3466_v58 = vmul.f32 %v7320_v49, %v8367_v4  ;;  %v8446_v39 = vld [vmem:[#allocation2 + $0x50] sm:$0xff] }
0x1b09   :  { %3446 = vrot.lane.b32.xlu1 %v3441_v46, %s7513_s18 }
0x1b0a   :  { %3444 = vrot.lane.b32.xlu0 %v3440_v42, %s7513_s18 }
0x1b63   :  { %v3302_v43 = vpop.permute.xlu1 %3301 }
0x1b64   :  { %v3306_v45 = vadd.f32 %v3302_v43, %v3187_v0  ;;  %v3300_v48 = vpop.permute.xlu0 %3299 }
0x1b65   :  { %v3305_v61 = vadd.f32 %v3300_v48, %v3186_v59 }
0x1b66   :  { %7321 = vtanh.f32 %v3306_v45 }
0x1b67   :  { %7323 = vtanh.f32 %v3305_v61 }
0x1b70   :  { %v7322_v53 = vpop.eup %7321 }
0x1b71   :  { %v7324_v54 = vpop.eup %7323  ;;  %3315 = vrot.lane.b32.xlu1 %v7322_v53, %s7514_s19 }
0x1b72   :  { %3313 = vrot.lane.b32.xlu0 %v7324_v54, %s7514_s19 }
0x1b7b   :  { %v3447_v55 = vpop.permute.xlu1 %3446 }
0x1b7c   :  { %v3451_v24 = vadd.f32 %v3447_v55, %v3326_v26  ;;  %v3445_v30 = vpop.permute.xlu0 %3444 }
0x1b7d   :  { %v3450_v7 = vadd.f32 %v3445_v30, %v3325_v40 }
0x1b7e   :  { %7325 = vtanh.f32 %v3451_v24 }
0x1b7f   :  { %7327 = vtanh.f32 %v3450_v7 }
0x1b88   :  { %v7326_v8 = vpop.eup %7325 }
0x1b89   :  { %v7328_v3 = vpop.eup %7327  ;;  %3460 = vrot.lane.b32.xlu1 %v7326_v8, %s7514_s19 }
0x1b8a   :  { %3458 = vrot.lane.b32.xlu0 %v7328_v3, %s7514_s19 }
0x1be3   :  { %v3316_v16 = vpop.permute.xlu1 %3315 }
0x1be4   :  { %v3320_v19 = vmul.f32 %v3316_v16, %v3310_v41  ;;  %v3314_v6 = vpop.permute.xlu0 %3313 }
0x1be5   :  { %v3319_v14 = vmul.f32 %v3314_v6, %v3309_v10 }
0x1be6   :  { %v8401_v47 = vadd.f32 %v3322_v1, %v3320_v19 }
0x1be7   :  { %v8403_v0 = vadd.f32 %v3321_v15, %v3319_v14 }
0x1be8   :  { %3476 = vrot.lane.b32.xlu1 %v8401_v47, %s7514_s19 }
0x1be9   :  { %3474 = vrot.lane.b32.xlu0 %v8403_v0, %s7514_s19 }
0x1bfb   :  { %v3461_v59 = vpop.permute.xlu1 %3460 }
0x1bfc   :  { %v3465_v20 = vmul.f32 %v3461_v59, %v3455_v17  ;;  %v3459_v21 = vpop.permute.xlu0 %3458 }
0x1bfd   :  { %v3464_v22 = vmul.f32 %v3459_v21, %v3454_v18 }
0x1bfe   :  { %v8411_v29 = vadd.f32 %v3467_v51, %v3465_v20 }
0x1bff   :  { %v8413_v31 = vadd.f32 %v3466_v58, %v3464_v22 }
0x1c00   :  { %3615 = vrot.lane.b32.xlu1 %v8411_v29, %s7515_s20 }
0x1c01   :  { %3613 = vrot.lane.b32.xlu0 %v8413_v31, %s7515_s20 }
0x1c5a   :  { %v3477_v26 = vpop.permute.xlu1 %3476 }
0x1c5b   :  { %v3475_v57 = vpop.permute.xlu0 %3474 }
0x1c5c   :  { %6755 = vmatprep.mubr.msk.f32.mxu1 %vm300_vm3, %v3475_v57 }
0x1c5d   :  { %6756 = vmatmul.mubr.msk.f32.vlgmr.msra.gmra.mrb[30].mxu1 %vm300_vm3, %v3477_v26 }
0x1c5e   :  { %7006 = vmatpush3.bf16.msra.mxu1 %v8157_v23 }
0x1c5f   :  { %7008 = vmatprep.subr.bf16.mxu1 %v8152_v50 }
0x1c72   :  { %v3616_v4 = vpop.permute.xlu1 %3615 }
0x1c73   :  { %v3614_v2 = vpop.permute.xlu0 %3613 }
0x1c74   :  { %6762 = vmatprep.mubr.msk.f32.mxu1 %vm300_vm3, %v3614_v2 }
0x1c75   :  { %6763 = vmatmul.mubr.msk.f32.vlgmr.msra.gmra.mrb[32].mxu1 %vm300_vm3, %v3616_v4 }
0x1c76   :  { %7010 = vmatpush3.bf16.msra.mxu1 %v8152_v50 }
0x1c77   :  { %7012 = vmatprep.subr.bf16.mxu1 %v8157_v23 }
0x1d30   :  { %v6757_v27 = vpop.f32.mrb[30].mxu1 }
0x1d31   :  { %v3548_v44 = vpop.f32.mrb[31].mxu1  ;;  %v3554_v63 = vadd.f32 %v6757_v27, %v8241_v36 }
0x1d32   :  { %v3549_v56 = vadd.f32 %v8241_v36, %v3548_v44 }
0x1d33   :  { %v3558_v34 = vadd.f32 %v3554_v63, %v8437_v25 }
0x1d34   :  { %v3557_v35 = vadd.f32 %v3549_v56, %v8440_v12 }
0x1d35   :  { %v6294_v5 = vmul.f32 -1.442695, %v3558_v34 }
0x1d36   :  { %v6293_v28 = vmul.f32 -1.442695, %v3557_v35 }
0x1d37   :  { %7329 = vpow2.f32 %v6294_v5 }
0x1d38   :  { %7331 = vpow2.f32 %v6293_v28 }
0x1d41   :  { %v7330_v62 = vpop.eup %7329 }
0x1d42   :  { %v7332_v37 = vpop.eup %7331  ;;  %v3566_v33 = vadd.f32 1.0, %v7330_v62 }
0x1d43   :  { %v3565_v32 = vadd.f32 1.0, %v7332_v37 }
0x1d44   :  { %7333 = vrcp.f32 %v3566_v33 }
0x1d45   :  { %7335 = vrcp.f32 %v3565_v32 }
0x1d48   :  { %v6764_v40 = vpop.f32.mrb[32].mxu1 }
0x1d49   :  { %v3693_v11 = vadd.f32 %v6764_v40, %v8235_v52  ;;  %v3687_v13 = vpop.f32.mrb[33].mxu1 }
0x1d4a   :  { %v3688_v60 = vadd.f32 %v8235_v52, %v3687_v13 }
0x1d4b   :  { %3700 = vrot.lane.b32.xlu1 %v3693_v11, %s7510_s3 }
0x1d4c   :  { %3698 = vrot.lane.b32.xlu0 %v3688_v60, %s7510_s3 }
0x1d4e   :  { %v7334_v48 = vpop.eup %7333 }
0x1d4f   :  { %3575 = vrot.lane.b32.xlu1 %v3554_v63, %s7512_s2  ;;  %v7336_v54 = vpop.eup %7335  ;;  %v3594_v4 = vsub.f32 1.0, %v7334_v48  ;;  %v3606_v40 = vmul.f32 %v7334_v48, %v8401_v47 }
0x1d50   :  { %3573 = vrot.lane.b32.xlu0 %v3549_v56, %s7512_s2  ;;  %v3593_v44 = vsub.f32 1.0, %v7336_v54 }
0x1d53   :  { %3720 = vrot.lane.b32.xlu1 %v3693_v11, %s7511_s15 }
0x1d54   :  { %3718 = vrot.lane.b32.xlu0 %v3688_v60, %s7511_s15  ;;  %v3605_v60 = vmul.f32 %v7336_v54, %v8403_v0 }
0x1dbd   :  { %v3701_v49 = vpop.permute.xlu1 %3700 }
0x1dbe   :  { %v3705_v46 = vadd.f32 %v3701_v49, %v8443_v38  ;;  %v3699_v42 = vpop.permute.xlu0 %3698 }
0x1dbf   :  { %v3704_v43 = vadd.f32 %v3699_v42, %v8446_v39 }
0x1dc0   :  { %v6298_v45 = vmul.f32 -1.442695, %v3705_v46 }
0x1dc1   :  { %v6297_v61 = vmul.f32 -1.442695, %v3704_v43  ;;  %v3576_v53 = vpop.permute.xlu1 %3575 }
0x1dc2   :  { %7337 = vpow2.f32 %v6298_v45  ;;  %v3580_v55 = vmul.f32 %v7334_v48, %v3576_v53  ;;  %v3574_v24 = vpop.permute.xlu0 %3573 }
0x1dc3   :  { %7339 = vpow2.f32 %v6297_v61  ;;  %v3579_v30 = vmul.f32 %v7336_v54, %v3574_v24 }
0x1dc4   :  { %3585 = vrot.lane.b32.xlu1 %v3580_v55, %s7513_s18  ;;  %v8495_v55 = vld [vmem:[#allocation2 + $0x48] sm:$0xff] }
0x1dc5   :  { %3583 = vrot.lane.b32.xlu0 %v3579_v30, %s7513_s18  ;;  %v3721_v10 = vpop.permute.xlu1 %3720 }
0x1dc6   :  { %v3719_v6 = vpop.permute.xlu0 %3718 }
0x1dcc   :  { %v7338_v7 = vpop.eup %7337 }
0x1dcd   :  { %v7340_v8 = vpop.eup %7339  ;;  %v3713_v3 = vadd.f32 1.0, %v7338_v7  ;;  %v8498_v7 = vld [vmem:[#allocation2 + $0x40] sm:$0xff] }
0x1dce   :  { %v3712_v41 = vadd.f32 1.0, %v7340_v8 }
0x1dcf   :  { %7341 = vrcp.f32 %v3713_v3 }
0x1dd0   :  { %7343 = vrcp.f32 %v3712_v41 }
0x1dd9   :  { %v7342_v16 = vpop.eup %7341 }
0x1dda   :  { %v7344_v1 = vpop.eup %7343  ;;  %v3725_v19 = vmul.f32 %v7342_v16, %v3721_v10  ;;  %v3739_v35 = vsub.f32 1.0, %v7342_v16  ;;  %v3751_v47 = vmul.f32 %v7342_v16, %v8411_v29 }
0x1ddb   :  { %v3724_v15 = vmul.f32 %v7344_v1, %v3719_v6  ;;  %v3738_v28 = vsub.f32 1.0, %v7344_v1  ;;  %v3750_v0 = vmul.f32 %v7344_v1, %v8413_v31 }
0x1ddc   :  { %3730 = vrot.lane.b32.xlu1 %v3725_v19, %s7513_s18 }
0x1ddd   :  { %3728 = vrot.lane.b32.xlu0 %v3724_v15, %s7513_s18 }
0x1e36   :  { %v3586_v14 = vpop.permute.xlu1 %3585 }
0x1e37   :  { %v3590_v17 = vadd.f32 %v3586_v14, %v8437_v25  ;;  %v3584_v59 = vpop.permute.xlu0 %3583 }
0x1e38   :  { %v3589_v18 = vadd.f32 %v3584_v59, %v8440_v12 }
0x1e39   :  { %7345 = vtanh.f32 %v3590_v17 }
0x1e3a   :  { %7347 = vtanh.f32 %v3589_v18 }
0x1e43   :  { %v7346_v51 = vpop.eup %7345 }
0x1e44   :  { %v7348_v20 = vpop.eup %7347  ;;  %3599 = vrot.lane.b32.xlu1 %v7346_v51, %s7514_s19 }
0x1e45   :  { %3597 = vrot.lane.b32.xlu0 %v7348_v20, %s7514_s19 }
0x1e4e   :  { %v3731_v21 = vpop.permute.xlu1 %3730 }
0x1e4f   :  { %v3735_v58 = vadd.f32 %v3731_v21, %v8443_v38  ;;  %v3729_v22 = vpop.permute.xlu0 %3728  ;;  %v8507_v21 = vld [vmem:[#allocation2 + $0x38] sm:$0xff] }
0x1e50   :  { %v3734_v57 = vadd.f32 %v3729_v22, %v8446_v39  ;;  %v8510_v22 = vld [vmem:[#allocation2 + $0x30] sm:$0xff] }
0x1e51   :  { %7349 = vtanh.f32 %v3735_v58 }
0x1e52   :  { %7351 = vtanh.f32 %v3734_v57 }
0x1e5b   :  { %v7350_v26 = vpop.eup %7349 }
0x1e5c   :  { %v7352_v2 = vpop.eup %7351  ;;  %3744 = vrot.lane.b32.xlu1 %v7350_v26, %s7514_s19 }
0x1e5d   :  { %3742 = vrot.lane.b32.xlu0 %v7352_v2, %s7514_s19 }
0x1eb6   :  { %v3600_v27 = vpop.permute.xlu1 %3599 }
0x1eb7   :  { %v3604_v11 = vmul.f32 %v3600_v27, %v3594_v4  ;;  %v3598_v13 = vpop.permute.xlu0 %3597 }
0x1eb8   :  { %v3603_v63 = vmul.f32 %v3598_v13, %v3593_v44 }
0x1eb9   :  { %v8463_v56 = vadd.f32 %v3606_v40, %v3604_v11 }
0x1eba   :  { %v8465_v34 = vadd.f32 %v3605_v60, %v3603_v63 }
0x1ebb   :  { %3760 = vrot.lane.b32.xlu1 %v8463_v56, %s7514_s19 }
0x1ebc   :  { %3758 = vrot.lane.b32.xlu0 %v8465_v34, %s7514_s19 }
0x1ece   :  { %v3745_v5 = vpop.permute.xlu1 %3744 }
0x1ecf   :  { %v3749_v62 = vmul.f32 %v3745_v5, %v3739_v35  ;;  %v3743_v37 = vpop.permute.xlu0 %3742 }
0x1ed0   :  { %v3748_v33 = vmul.f32 %v3743_v37, %v3738_v28 }
0x1ed1   :  { %v8473_v32 = vadd.f32 %v3751_v47, %v3749_v62 }
0x1ed2   :  { %v8475_v49 = vadd.f32 %v3750_v0, %v3748_v33 }
0x1ed3   :  { %3899 = vrot.lane.b32.xlu1 %v8473_v32, %s7515_s20 }
0x1ed4   :  { %3897 = vrot.lane.b32.xlu0 %v8475_v49, %s7515_s20 }
0x1f2d   :  { %v3761_v42 = vpop.permute.xlu1 %3760 }
0x1f2e   :  { %v3759_v46 = vpop.permute.xlu0 %3758 }
0x1f2f   :  { %6769 = vmatprep.mubr.msk.f32.mxu1 %vm300_vm3, %v3759_v46 }
0x1f30   :  { %6770 = vmatmul.mubr.msk.f32.vlgmr.msra.gmra.mrb[34].mxu1 %vm300_vm3, %v3761_v42 }
0x1f31   :  { %7014 = vmatpush3.bf16.msra.mxu1 %v8157_v23 }
0x1f32   :  { %7016 = vmatprep.subr.bf16.mxu1 %v8152_v50 }
0x1f45   :  { %v3900_v31 = vpop.permute.xlu1 %3899 }
0x1f46   :  { %v3898_v29 = vpop.permute.xlu0 %3897 }
0x1f47   :  { %6776 = vmatprep.mubr.msk.f32.mxu1 %vm300_vm3, %v3898_v29 }
0x1f48   :  { %6777 = vmatmul.mubr.msk.f32.vlgmr.msra.gmra.mrb[36].mxu1 %vm300_vm3, %v3900_v31 }
0x1f49   :  { %7018 = vmatpush3.bf16.msra.mxu1 %v8152_v50 }
0x1f4a   :  { %7024 = vmatprep.subr.bf16.mxu1 %v8152_v50 }
0x2003   :  { %v6771_v43 = vpop.f32.mrb[34].mxu1 }
0x2004   :  { %v3832_v45 = vpop.f32.mrb[35].mxu1  ;;  %v3838_v51 = vadd.f32 %v6771_v43, %v8241_v36 }
0x2005   :  { %v3833_v20 = vadd.f32 %v8241_v36, %v3832_v45 }
0x2006   :  { %v3842_v58 = vadd.f32 %v3838_v51, %v8507_v21 }
0x2007   :  { %v3841_v57 = vadd.f32 %v3833_v20, %v8510_v22 }
0x2008   :  { %v6302_v26 = vmul.f32 -1.442695, %v3842_v58 }
0x2009   :  { %v6301_v2 = vmul.f32 -1.442695, %v3841_v57 }
0x201b   :  { %v6778_v48 = vpop.f32.mrb[36].mxu1 }
0x201c   :  { %v3977_v61 = vadd.f32 %v6778_v48, %v8235_v52  ;;  %v3971_v53 = vpop.f32.mrb[37].mxu1 }
0x201d   :  { %v3972_v54 = vadd.f32 %v8235_v52, %v3971_v53 }
0x201e   :  { %3984 = vrot.lane.b32.xlu1 %v3977_v61, %s7510_s3 }
0x201f   :  { %3982 = vrot.lane.b32.xlu0 %v3972_v54, %s7510_s3 }
0x2022   :  { %4004 = vrot.lane.b32.xlu1 %v3977_v61, %s7511_s15 }
0x2023   :  { %4002 = vrot.lane.b32.xlu0 %v3972_v54, %s7511_s15 }
0x2090   :  { %v3985_v24 = vpop.permute.xlu1 %3984 }
0x2091   :  { %v3989_v30 = vadd.f32 %v3985_v24, %v8495_v55  ;;  %v3983_v8 = vpop.permute.xlu0 %3982 }
0x2092   :  { %v3988_v3 = vadd.f32 %v3983_v8, %v8498_v7 }
0x2093   :  { %v6306_v41 = vmul.f32 -1.442695, %v3989_v30 }
0x2094   :  { %v6305_v52 = vmul.f32 -1.442695, %v3988_v3  ;;  %v4005_v15 = vpop.permute.xlu1 %4004 }
0x2095   :  { %7353 = vpow2.f32 %v6306_v41  ;;  %v4003_v59 = vpop.permute.xlu0 %4002 }
0x2096   :  { %7355 = vpow2.f32 %v6305_v52 }
0x209f   :  { %v7354_v16 = vpop.eup %7353 }
0x20a0   :  { %v7356_v10 = vpop.eup %7355  ;;  %v3997_v1 = vadd.f32 1.0, %v7354_v16 }
0x20a1   :  { %v3996_v19 = vadd.f32 1.0, %v7356_v10 }
0x20a2   :  { %7357 = vrcp.f32 %v3997_v1 }
0x20a3   :  { %7359 = vrcp.f32 %v3996_v19 }
0x20a4   :  { %7361 = vpow2.f32 %v6302_v26 }
0x20a5   :  { %7363 = vpow2.f32 %v6301_v2 }
0x20ac   :  { %v7358_v6 = vpop.eup %7357 }
0x20ad   :  { %v7360_v14 = vpop.eup %7359  ;;  %v4009_v17 = vmul.f32 %v7358_v6, %v4005_v15  ;;  %v4023_v33 = vsub.f32 1.0, %v7358_v6  ;;  %v4035_v29 = vmul.f32 %v7358_v6, %v8473_v32 }
0x20ae   :  { %v4008_v18 = vmul.f32 %v7360_v14, %v4003_v59  ;;  %v7362_v4 = vpop.eup %7361  ;;  %v4022_v42 = vsub.f32 1.0, %v7360_v14  ;;  %v4034_v45 = vmul.f32 %v7360_v14, %v8475_v49 }
0x20af   :  { %4014 = vrot.lane.b32.xlu1 %v4009_v17, %s7513_s18  ;;  %v7364_v27 = vpop.eup %7363  ;;  %v3850_v36 = vadd.f32 1.0, %v7362_v4 }
0x20b0   :  { %4012 = vrot.lane.b32.xlu0 %v4008_v18, %s7513_s18  ;;  %v3849_v13 = vadd.f32 1.0, %v7364_v27 }
0x20b3   :  { %3859 = vrot.lane.b32.xlu1 %v3838_v51, %s7512_s2 }
0x20b4   :  { %3857 = vrot.lane.b32.xlu0 %v3833_v20, %s7512_s2 }
0x2121   :  { %v4015_v44 = vpop.permute.xlu1 %4014 }
0x2122   :  { %v4019_v40 = vadd.f32 %v4015_v44, %v8495_v55  ;;  %v4013_v11 = vpop.permute.xlu0 %4012 }
0x2123   :  { %v4018_v60 = vadd.f32 %v4013_v11, %v8498_v7 }
0x2124   :  { %7365 = vtanh.f32 %v4019_v40 }
0x2125   :  { %7367 = vtanh.f32 %v4018_v60  ;;  %v3860_v35 = vpop.permute.xlu1 %3859 }
0x2126   :  { %7369 = vrcp.f32 %v3850_v36  ;;  %v3858_v28 = vpop.permute.xlu0 %3857 }
0x2127   :  { %7371 = vrcp.f32 %v3849_v13 }
0x212e   :  { %v7366_v63 = vpop.eup %7365 }
0x212f   :  { %v7368_v5 = vpop.eup %7367  ;;  %4028 = vrot.lane.b32.xlu1 %v7366_v63, %s7514_s19 }
0x2130   :  { %v7370_v47 = vpop.eup %7369  ;;  %4026 = vrot.lane.b32.xlu0 %v7368_v5, %s7514_s19 }
0x2131   :  { %v7372_v62 = vpop.eup %7371  ;;  %v3864_v37 = vmul.f32 %v7370_v47, %v3860_v35  ;;  %v3878_v52 = vsub.f32 1.0, %v7370_v47  ;;  %v3890_v1 = vmul.f32 %v7370_v47, %v8463_v56 }
0x2132   :  { %v3863_v0 = vmul.f32 %v7372_v62, %v3858_v28  ;;  %v3877_v10 = vsub.f32 1.0, %v7372_v62  ;;  %v3889_v15 = vmul.f32 %v7372_v62, %v8465_v34  ;;  %v8554_v34 = vld [vmem:[%s8883_s9 + $0x1] ss:$0 sm:$0xff] }
0x2133   :  { %3869 = vrot.lane.b32.xlu1 %v3864_v37, %s7513_s18 }
0x2134   :  { %3867 = vrot.lane.b32.xlu0 %v3863_v0, %s7513_s18 }
0x21a1   :  { %v4029_v46 = vpop.permute.xlu1 %4028 }
0x21a2   :  { %v4033_v31 = vmul.f32 %v4029_v46, %v4023_v33  ;;  %v4027_v43 = vpop.permute.xlu0 %4026  ;;  %v8569_v33 = vld [vmem:[%s8883_s9] ss:$0 sm:$0xff] }
0x21a3   :  { %v4032_v48 = vmul.f32 %v4027_v43, %v4022_v42 }
0x21a4   :  { %v8521_v61 = vadd.f32 %v4035_v29, %v4033_v31 }
0x21a5   :  { %v8523_v53 = vadd.f32 %v4034_v45, %v4032_v48  ;;  %v3870_v54 = vpop.permute.xlu1 %3869 }
0x21a6   :  { %v3874_v24 = vadd.f32 %v3870_v54, %v8507_v21  ;;  %4179 = vrot.lane.b32.xlu1 %v8521_v61, %s7515_s20  ;;  %v3868_v30 = vpop.permute.xlu0 %3867 }
0x21a7   :  { %v3873_v8 = vadd.f32 %v3868_v30, %v8510_v22  ;;  %4177 = vrot.lane.b32.xlu0 %v8523_v53, %s7515_s20 }
0x21a8   :  { %7373 = vtanh.f32 %v3874_v24 }
0x21a9   :  { %7375 = vtanh.f32 %v3873_v8 }
0x21b2   :  { %v7374_v32 = vpop.eup %7373 }
0x21b3   :  { %v7376_v49 = vpop.eup %7375  ;;  %3883 = vrot.lane.b32.xlu1 %v7374_v32, %s7514_s19 }
0x21b4   :  { %3881 = vrot.lane.b32.xlu0 %v7376_v49, %s7514_s19 }
0x2218   :  { %v4180_v41 = vpop.permute.xlu1 %4179 }
0x2219   :  { %v4178_v3 = vpop.permute.xlu0 %4177 }
0x221a   :  { %6790 = vmatprep.mubr.msk.f32.mxu0 %vm300_vm3, %v4178_v3 }
0x221b   :  { %6791 = vmatmul.mubr.msk.f32.vlgmr.msra.gmra.mrb[42].mxu0 %vm300_vm3, %v4180_v41 }
0x221c   :  { %7030 = vmatpush3.bf16.msra.mxu0 %v8157_v23 }
0x221d   :  { %7036 = vmatprep.subr.bf16.mxu0 %v8157_v23 }
0x2225   :  { %v3884_v16 = vpop.permute.xlu1 %3883 }
0x2226   :  { %v3888_v19 = vmul.f32 %v3884_v16, %v3878_v52  ;;  %v3882_v6 = vpop.permute.xlu0 %3881 }
0x2227   :  { %v3887_v14 = vmul.f32 %v3882_v6, %v3877_v10 }
0x2228   :  { %v8539_v17 = vadd.f32 %v3890_v1, %v3888_v19 }
0x2229   :  { %v8541_v59 = vadd.f32 %v3889_v15, %v3887_v14 }
0x222a   :  { %4042 = vrot.lane.b32.xlu1 %v8539_v17, %s7514_s19 }
0x222b   :  { %4040 = vrot.lane.b32.xlu0 %v8541_v59, %s7514_s19 }
0x229c   :  { %v4043_v51 = vpop.permute.xlu1 %4042 }
0x229d   :  { %v4041_v18 = vpop.permute.xlu0 %4040 }
0x229e   :  { %6783 = vmatprep.mubr.msk.f32.mxu1 %vm300_vm3, %v4041_v18 }
0x229f   :  { %6784 = vmatmul.mubr.msk.f32.vlgmr.msra.gmra.mrb[38].mxu1 %vm300_vm3, %v4043_v51 }
0x22a0   :  { %7026 = vmatpush3.bf16.msra.mxu1 %v8152_v50 }
0x22a1   :  { %7032 = vmatprep.subr.bf16.mxu1 %v8152_v50 }
0x22ee   :  { %v6792_v56 = vpop.f32.mrb[42].mxu0 }
0x22ef   :  { %v4257_v20 = vadd.f32 %v8554_v34, %v6792_v56  ;;  %v4251_v58 = vpop.f32.mrb[43].mxu0 }
0x22f0   :  { %v4252_v57 = vadd.f32 %v8554_v34, %v4251_v58 }
0x22f1   :  { %4264 = vrot.lane.b32.xlu1 %v4257_v20, %s7510_s3 }
0x22f2   :  { %4262 = vrot.lane.b32.xlu0 %v4252_v57, %s7510_s3 }
0x22f5   :  { %4284 = vrot.lane.b32.xlu1 %v4257_v20, %s7511_s15 }
0x22f6   :  { %4282 = vrot.lane.b32.xlu0 %v4252_v57, %s7511_s15 }
0x2363   :  { %v4265_v26 = vpop.permute.xlu1 %4264 }
0x2364   :  { %v4269_v2 = vadd.f32 %v4265_v26, %v8507_v21  ;;  %v4263_v4 = vpop.permute.xlu0 %4262 }
0x2365   :  { %v4268_v27 = vadd.f32 %v4263_v4, %v8510_v22 }
0x2366   :  { %v6314_v44 = vmul.f32 -1.442695, %v4269_v2 }
0x2367   :  { %v6313_v36 = vmul.f32 -1.442695, %v4268_v27  ;;  %v4285_v28 = vpop.permute.xlu1 %4284 }
0x2368   :  { %7377 = vpow2.f32 %v6314_v44  ;;  %v4283_v37 = vpop.permute.xlu0 %4282 }
0x2369   :  { %7379 = vpow2.f32 %v6313_v36 }
0x2372   :  { %v7378_v40 = vpop.eup %7377  ;;  %v6785_v11 = vpop.f32.mrb[38].mxu1 }
0x2373   :  { %v7380_v13 = vpop.eup %7379  ;;  %v4277_v60 = vadd.f32 1.0, %v7378_v40  ;;  %v4114_v63 = vpop.f32.mrb[39].mxu1  ;;  %v4120_v46 = vadd.f32 %v8569_v33, %v6785_v11 }
0x2374   :  { %v4276_v35 = vadd.f32 1.0, %v7380_v13  ;;  %v4115_v42 = vadd.f32 %v8569_v33, %v4114_v63 }
0x2375   :  { %7381 = vrcp.f32 %v4277_v60  ;;  %v4124_v29 = vadd.f32 %v4120_v46, %v8495_v55 }
0x2376   :  { %7383 = vrcp.f32 %v4276_v35  ;;  %v4123_v31 = vadd.f32 %v4115_v42, %v8498_v7 }
0x2377   :  { %v6310_v43 = vmul.f32 -1.442695, %v4124_v29 }
0x2378   :  { %v6309_v45 = vmul.f32 -1.442695, %v4123_v31 }
0x2379   :  { %7385 = vpow2.f32 %v6310_v43 }
0x237a   :  { %7387 = vpow2.f32 %v6309_v45 }
0x237f   :  { %v7382_v5 = vpop.eup %7381 }
0x2380   :  { %v7384_v47 = vpop.eup %7383  ;;  %v4289_v62 = vmul.f32 %v7382_v5, %v4285_v28  ;;  %v4315_v18 = vmul.f32 %v7382_v5, %v8521_v61 }
0x2381   :  { %v4288_v0 = vmul.f32 %v7384_v47, %v4283_v37  ;;  %v4302_v14 = vsub.f32 1.0, %v7384_v47  ;;  %v4314_v20 = vmul.f32 %v7384_v47, %v8523_v53 }
0x2382   :  { %4294 = vrot.lane.b32.xlu1 %v4289_v62, %s7513_s18 }
0x2383   :  { %4292 = vrot.lane.b32.xlu0 %v4288_v0, %s7513_s18  ;;  %v7386_v48 = vpop.eup %7385 }
0x2384   :  { %v7388_v54 = vpop.eup %7387  ;;  %v4132_v30 = vadd.f32 1.0, %v7386_v48 }
0x2385   :  { %v4131_v49 = vadd.f32 1.0, %v7388_v54 }
0x2386   :  { %4141 = vrot.lane.b32.xlu1 %v4120_v46, %s7512_s2 }
0x2387   :  { %4139 = vrot.lane.b32.xlu0 %v4115_v42, %s7512_s2 }
0x23f4   :  { %v4295_v24 = vpop.permute.xlu1 %4294 }
0x23f5   :  { %v4299_v8 = vadd.f32 %v4295_v24, %v8507_v21  ;;  %v4293_v32 = vpop.permute.xlu0 %4292 }
0x23f6   :  { %v4298_v3 = vadd.f32 %v4293_v32, %v8510_v22  ;;  %v4303_v22 = vsub.f32 1.0, %v7382_v5 }
0x23f7   :  { %7389 = vtanh.f32 %v4299_v8 }
0x23f8   :  { %7391 = vtanh.f32 %v4298_v3  ;;  %v4142_v52 = vpop.permute.xlu1 %4141 }
0x23f9   :  { %7393 = vrcp.f32 %v4132_v30  ;;  %v4140_v10 = vpop.permute.xlu0 %4139 }
0x23fa   :  { %7395 = vrcp.f32 %v4131_v49 }
0x2401   :  { %v7390_v41 = vpop.eup %7389 }
0x2402   :  { %v7392_v16 = vpop.eup %7391  ;;  %4308 = vrot.lane.b32.xlu1 %v7390_v41, %s7514_s19 }
0x2403   :  { %v7394_v1 = vpop.eup %7393  ;;  %4306 = vrot.lane.b32.xlu0 %v7392_v16, %s7514_s19 }
0x2404   :  { %v7396_v19 = vpop.eup %7395  ;;  %v4146_v6 = vmul.f32 %v7394_v1, %v4142_v52  ;;  %v4172_v13 = vmul.f32 %v7394_v1, %v8539_v17 }
0x2405   :  { %v4145_v21 = vmul.f32 %v7396_v19, %v4140_v10  ;;  %v4159_v11 = vsub.f32 1.0, %v7396_v19  ;;  %v4171_v35 = vmul.f32 %v7396_v19, %v8541_v59 }
0x2406   :  { %4151 = vrot.lane.b32.xlu1 %v4146_v6, %s7513_s18 }
0x2407   :  { %4149 = vrot.lane.b32.xlu0 %v4145_v21, %s7513_s18 }
0x2474   :  { %v4309_v15 = vpop.permute.xlu1 %4308 }
0x2475   :  { %v4313_v51 = vmul.f32 %v4309_v15, %v4303_v22  ;;  %v4307_v56 = vpop.permute.xlu0 %4306 }
0x2476   :  { %v4312_v58 = vmul.f32 %v4307_v56, %v4302_v14 }
0x2477   :  { %v8585_v57 = vadd.f32 %v4315_v18, %v4313_v51 }
0x2478   :  { %v8587_v26 = vadd.f32 %v4314_v20, %v4312_v58  ;;  %v4152_v2 = vpop.permute.xlu1 %4151 }
0x2479   :  { %v4156_v4 = vadd.f32 %v4152_v2, %v8495_v55  ;;  %4459 = vrot.lane.b32.xlu1 %v8585_v57, %s7515_s20  ;;  %v4150_v27 = vpop.permute.xlu0 %4149  ;;  %v4160_v55 = vsub.f32 1.0, %v7394_v1 }
0x247a   :  { %v4155_v44 = vadd.f32 %v4150_v27, %v8498_v7  ;;  %4457 = vrot.lane.b32.xlu0 %v8587_v26, %s7515_s20 }
0x247b   :  { %7397 = vtanh.f32 %v4156_v4 }
0x247c   :  { %7399 = vtanh.f32 %v4155_v44 }
0x2485   :  { %v7398_v61 = vpop.eup %7397 }
0x2486   :  { %v7400_v53 = vpop.eup %7399  ;;  %4165 = vrot.lane.b32.xlu1 %v7398_v61, %s7514_s19 }
0x2487   :  { %4163 = vrot.lane.b32.xlu0 %v7400_v53, %s7514_s19 }
0x24eb   :  { %v4460_v40 = vpop.permute.xlu1 %4459 }
0x24ec   :  { %v4458_v36 = vpop.permute.xlu0 %4457 }
0x24ed   :  { %6804 = vmatprep.mubr.msk.f32.mxu0 %vm300_vm3, %v4458_v36 }
0x24ee   :  { %6805 = vmatmul.mubr.msk.f32.vlgmr.msra.gmra.mrb[44].mxu0 %vm300_vm3, %v4460_v40 }
0x24ef   :  { %7038 = vmatpush3.bf16.msra.mxu0 %v8157_v23 }
0x24f0   :  { %7044 = vmatprep.subr.bf16.mxu0 %v8157_v23 }
0x24f8   :  { %v4166_v7 = vpop.permute.xlu1 %4165 }
0x24f9   :  { %v4170_v60 = vmul.f32 %v4166_v7, %v4160_v55  ;;  %v4164_v63 = vpop.permute.xlu0 %4163 }
0x24fa   :  { %v4169_v5 = vmul.f32 %v4164_v63, %v4159_v11 }
0x24fb   :  { %v8603_v28 = vadd.f32 %v4172_v13, %v4170_v60 }
0x24fc   :  { %v8605_v47 = vadd.f32 %v4171_v35, %v4169_v5 }
0x24fd   :  { %4322 = vrot.lane.b32.xlu1 %v8603_v28, %s7514_s19 }
0x24fe   :  { %4320 = vrot.lane.b32.xlu0 %v8605_v47, %s7514_s19 }
0x256f   :  { %v4323_v37 = vpop.permute.xlu1 %4322 }
0x2570   :  { %v4321_v62 = vpop.permute.xlu0 %4320 }
0x2571   :  { %6797 = vmatprep.mubr.msk.f32.mxu1 %vm300_vm3, %v4321_v62 }
0x2572   :  { %6798 = vmatmul.mubr.msk.f32.vlgmr.msra.gmra.mrb[40].mxu1 %vm300_vm3, %v4323_v37 }
0x2573   :  { %7034 = vmatpush3.bf16.msra.mxu1 %v8152_v50 }
0x2574   :  { %7040 = vmatprep.subr.bf16.mxu1 %v8152_v50 }
0x25c1   :  { %v6806_v17 = vpop.f32.mrb[44].mxu0 }
0x25c2   :  { %v4537_v59 = vadd.f32 %v8554_v34, %v6806_v17  ;;  %v4531_v0 = vpop.f32.mrb[45].mxu0 }
0x25c3   :  { %v4532_v46 = vadd.f32 %v8554_v34, %v4531_v0 }
0x25c4   :  { %4544 = vrot.lane.b32.xlu1 %v4537_v59, %s7510_s3 }
0x25c5   :  { %4542 = vrot.lane.b32.xlu0 %v4532_v46, %s7510_s3 }
0x25c8   :  { %4564 = vrot.lane.b32.xlu1 %v4537_v59, %s7511_s15 }
0x25c9   :  { %4562 = vrot.lane.b32.xlu0 %v4532_v46, %s7511_s15 }
0x2636   :  { %v4545_v42 = vpop.permute.xlu1 %4544 }
0x2637   :  { %v4549_v29 = vadd.f32 %v4545_v42, %v8437_v25  ;;  %v4543_v31 = vpop.permute.xlu0 %4542 }
0x2638   :  { %v4548_v43 = vadd.f32 %v4543_v31, %v8440_v12 }
0x2639   :  { %v6322_v45 = vmul.f32 -1.442695, %v4549_v29 }
0x263a   :  { %v6321_v48 = vmul.f32 -1.442695, %v4548_v43  ;;  %v4565_v16 = vpop.permute.xlu1 %4564 }
0x263b   :  { %7401 = vpow2.f32 %v6322_v45  ;;  %v4563_v19 = vpop.permute.xlu0 %4562 }
0x263c   :  { %7403 = vpow2.f32 %v6321_v48 }
0x2645   :  { %v7402_v54 = vpop.eup %7401  ;;  %v6799_v24 = vpop.f32.mrb[40].mxu1 }
0x2646   :  { %v7404_v30 = vpop.eup %7403  ;;  %v4557_v8 = vadd.f32 1.0, %v7402_v54  ;;  %v4400_v32 = vadd.f32 %v8569_v33, %v6799_v24  ;;  %v4394_v49 = vpop.f32.mrb[41].mxu1 }
0x2647   :  { %v4556_v3 = vadd.f32 1.0, %v7404_v30  ;;  %v4395_v41 = vadd.f32 %v8569_v33, %v4394_v49 }
0x2648   :  { %7405 = vrcp.f32 %v4557_v8  ;;  %4421 = vrot.lane.b32.xlu1 %v4400_v32, %s7512_s2  ;;  %v4404_v21 = vadd.f32 %v4400_v32, %v8443_v38 }
0x2649   :  { %7407 = vrcp.f32 %v4556_v3  ;;  %4419 = vrot.lane.b32.xlu0 %v4395_v41, %s7512_s2  ;;  %v4403_v22 = vadd.f32 %v4395_v41, %v8446_v39 }
0x264a   :  { %v6318_v15 = vmul.f32 -1.442695, %v4404_v21 }
0x264b   :  { %v6317_v14 = vmul.f32 -1.442695, %v4403_v22  ;;  %v7478_v22 = vld [vmem:[#allocation2 + $0x10] sm:$0xff] }
0x264c   :  { %7409 = vpow2.f32 %v6318_v15 }
0x264d   :  { %7411 = vpow2.f32 %v6317_v14 }
0x2652   :  { %v7406_v52 = vpop.eup %7405 }
0x2653   :  { %v7408_v10 = vpop.eup %7407  ;;  %v4569_v1 = vmul.f32 %v7406_v52, %v4565_v16  ;;  %v4595_v17 = vmul.f32 %v7406_v52, %v8585_v57 }
0x2654   :  { %v4568_v6 = vmul.f32 %v7408_v10, %v4563_v19  ;;  %v4582_v37 = vsub.f32 1.0, %v7408_v10  ;;  %v7477_v19 = vld [vmem:[#allocation2 + $0x18] sm:$0xff] }
0x2655   :  { %4574 = vrot.lane.b32.xlu1 %v4569_v1, %s7513_s18 }
0x2656   :  { %4572 = vrot.lane.b32.xlu0 %v4568_v6, %s7513_s18  ;;  %v7410_v18 = vpop.eup %7409 }
0x2657   :  { %v7412_v51 = vpop.eup %7411  ;;  %v4412_v56 = vadd.f32 1.0, %v7410_v18 }
0x2658   :  { %v4411_v20 = vadd.f32 1.0, %v7412_v51 }
0x2659   :  { %7413 = vrcp.f32 %v4412_v56 }
0x265a   :  { %7415 = vrcp.f32 %v4411_v20 }
0x2663   :  { %v7414_v58 = vpop.eup %7413 }
0x2664   :  { %v7416_v4 = vpop.eup %7415  ;;  %v4440_v29 = vsub.f32 1.0, %v7414_v58  ;;  %v4452_v57 = vmul.f32 %v7414_v58, %v8603_v28 }
0x2665   :  { %v4439_v43 = vsub.f32 1.0, %v7416_v4 }
0x26ba   :  { %v4422_v2 = vpop.permute.xlu1 %4421 }
0x26bb   :  { %v4426_v27 = vmul.f32 %v7414_v58, %v4422_v2  ;;  %v4420_v44 = vpop.permute.xlu0 %4419 }
0x26bc   :  { %v4425_v61 = vmul.f32 %v7416_v4, %v4420_v44 }
0x26bd   :  { %4431 = vrot.lane.b32.xlu1 %v4426_v27, %s7513_s18 }
0x26be   :  { %4429 = vrot.lane.b32.xlu0 %v4425_v61, %s7513_s18 }
0x26c7   :  { %v4575_v53 = vpop.permute.xlu1 %4574 }
0x26c8   :  { %v4579_v36 = vadd.f32 %v4575_v53, %v8437_v25  ;;  %v4573_v40 = vpop.permute.xlu0 %4572 }
0x26c9   :  { %v4578_v55 = vadd.f32 %v4573_v40, %v8440_v12  ;;  %v4583_v12 = vsub.f32 1.0, %v7406_v52 }
0x26ca   :  { %7417 = vtanh.f32 %v4579_v36  ;;  %v7479_v36 = vld [vmem:[#allocation2 + $0x68] sm:$0xff] }
0x26cb   :  { %7419 = vtanh.f32 %v4578_v55  ;;  %v7480_v55 = vld [vmem:[#allocation2 + $0x60] sm:$0xff] }
0x26d4   :  { %v7418_v7 = vpop.eup %7417 }
0x26d5   :  { %v7420_v11 = vpop.eup %7419  ;;  %4588 = vrot.lane.b32.xlu1 %v7418_v7, %s7514_s19 }
0x26d6   :  { %4586 = vrot.lane.b32.xlu0 %v7420_v11, %s7514_s19 }
0x272f   :  { %v4432_v13 = vpop.permute.xlu1 %4431 }
0x2730   :  { %v4436_v60 = vadd.f32 %v4432_v13, %v8443_v38  ;;  %v4430_v63 = vpop.permute.xlu0 %4429  ;;  %v4594_v38 = vmul.f32 %v7408_v10, %v8587_v26  ;;  %v4451_v26 = vmul.f32 %v7416_v4, %v8605_v47 }
0x2731   :  { %v4435_v35 = vadd.f32 %v4430_v63, %v8446_v39 }
0x2732   :  { %7421 = vtanh.f32 %v4436_v60 }
0x2733   :  { %7423 = vtanh.f32 %v4435_v35 }
0x273c   :  { %v7422_v25 = vpop.eup %7421 }
0x273d   :  { %v7424_v5 = vpop.eup %7423  ;;  %4445 = vrot.lane.b32.xlu1 %v7422_v25, %s7514_s19 }
0x273e   :  { %4443 = vrot.lane.b32.xlu0 %v7424_v5, %s7514_s19 }
0x2747   :  { %v4589_v62 = vpop.permute.xlu1 %4588 }
0x2748   :  { %v4593_v59 = vmul.f32 %v4589_v62, %v4583_v12  ;;  %v4587_v0 = vpop.permute.xlu0 %4586 }
0x2749   :  { %v4592_v46 = vmul.f32 %v4587_v0, %v4582_v37 }
0x274a   :  { %v8643_v42 = vadd.f32 %v4595_v17, %v4593_v59 }
0x274b   :  { %v8645_v39 = vadd.f32 %v4594_v38, %v4592_v46 }
0x274c   :  { %4739 = vrot.lane.b32.xlu1 %v8643_v42, %s7515_s20 }
0x274d   :  { %4737 = vrot.lane.b32.xlu0 %v8645_v39, %s7515_s20 }
0x27af   :  { %v4446_v31 = vpop.permute.xlu1 %4445 }
0x27b0   :  { %v4450_v45 = vmul.f32 %v4446_v31, %v4440_v29  ;;  %v4444_v48 = vpop.permute.xlu0 %4443 }
0x27b1   :  { %v4449_v54 = vmul.f32 %v4444_v48, %v4439_v43 }
0x27b2   :  { %v8653_v24 = vadd.f32 %v4452_v57, %v4450_v45 }
0x27b3   :  { %v8655_v30 = vadd.f32 %v4451_v26, %v4449_v54 }
0x27b4   :  { %4602 = vrot.lane.b32.xlu1 %v8653_v24, %s7514_s19 }
0x27b5   :  { %4600 = vrot.lane.b32.xlu0 %v8655_v30, %s7514_s19 }
0x27be   :  { %v4740_v32 = vpop.permute.xlu1 %4739 }
0x27bf   :  { %v4738_v8 = vpop.permute.xlu0 %4737 }
0x27c0   :  { %6818 = vmatprep.mubr.msk.f32.mxu0 %vm300_vm3, %v4738_v8 }
0x27c1   :  { %6819 = vmatmul.mubr.msk.f32.vlgmr.msra.gmra.mrb[46].mxu0 %vm300_vm3, %v4740_v32 }
0x27c2   :  { %7046 = vmatpush3.bf16.msra.mxu0 %v8157_v23 }
0x27c3   :  { %6840 = vmatprep.subr.mxu0 %v7509_v9 }
0x2826   :  { %v4603_v47 = vpop.permute.xlu1 %4602 }
0x2827   :  { %v4601_v28 = vpop.permute.xlu0 %4600 }
0x2828   :  { %6811 = vmatprep.mubr.msk.f32.mxu1 %vm300_vm3, %v4601_v28 }
0x2829   :  { %6812 = vmatmul.mubr.msk.f32.vlgmr.msra.gmra.mrb[42].mxu1 %vm300_vm3, %v4603_v47 }
0x282a   :  { %7042 = vmatpush3.bf16.msra.mxu1 %v8152_v50 }
0x282b   :  { %6835 = vmatprep.subr.mxu1 %v7509_v9 }
0x2894   :  { %v6820_v49 = vpop.f32.mrb[46].mxu0 }
0x2895   :  { %v4817_v3 = vadd.f32 %v8554_v34, %v6820_v49  ;;  %v4811_v41 = vpop.f32.mrb[47].mxu0 }
0x2896   :  { %v4812_v52 = vadd.f32 %v8554_v34, %v4811_v41 }
0x2897   :  { %4824 = vrot.lane.b32.xlu1 %v4817_v3, %s7510_s3 }
0x2898   :  { %4822 = vrot.lane.b32.xlu0 %v4812_v52, %s7510_s3 }
0x289b   :  { %4844 = vrot.lane.b32.xlu1 %v4817_v3, %s7511_s15 }
0x289c   :  { %4842 = vrot.lane.b32.xlu0 %v4812_v52, %s7511_s15 }
0x28fc   :  { %v6813_v23 = vpop.f32.mrb[42].mxu1 }
0x28fd   :  { %v4680_v16 = vadd.f32 %v8569_v33, %v6813_v23  ;;  %v4674_v50 = vpop.f32.mrb[43].mxu1 }
0x28fe   :  { %v4675_v10 = vadd.f32 %v8569_v33, %v4674_v50 }
0x28ff   :  { %4701 = vrot.lane.b32.xlu1 %v4680_v16, %s7512_s2  ;;  %v4684_v40 = vadd.f32 %v7479_v36, %v4680_v16 }
0x2900   :  { %4699 = vrot.lane.b32.xlu0 %v4675_v10, %s7512_s2  ;;  %v4683_v7 = vadd.f32 %v7480_v55, %v4675_v10 }
0x2901   :  { %v6326_v11 = vmul.f32 -1.442695, %v4684_v40 }
0x2902   :  { %v6325_v13 = vmul.f32 -1.442695, %v4683_v7 }
0x2909   :  { %v4825_v1 = vpop.permute.xlu1 %4824 }
0x290a   :  { %v4829_v6 = vadd.f32 %v7477_v19, %v4825_v1  ;;  %v4823_v21 = vpop.permute.xlu0 %4822 }
0x290b   :  { %v4828_v15 = vadd.f32 %v7478_v22, %v4823_v21 }
0x290c   :  { %v6330_v14 = vmul.f32 -1.442695, %v4829_v6 }
0x290d   :  { %v6329_v18 = vmul.f32 -1.442695, %v4828_v15  ;;  %v4845_v4 = vpop.permute.xlu1 %4844 }
0x290e   :  { %7425 = vpow2.f32 %v6330_v14  ;;  %v4843_v61 = vpop.permute.xlu0 %4842 }
0x290f   :  { %7427 = vpow2.f32 %v6329_v18 }
0x2918   :  { %v7426_v51 = vpop.eup %7425 }
0x2919   :  { %v7428_v56 = vpop.eup %7427  ;;  %v4837_v20 = vadd.f32 1.0, %v7426_v51 }
0x291a   :  { %v4836_v58 = vadd.f32 1.0, %v7428_v56 }
0x291b   :  { %7429 = vrcp.f32 %v4837_v20 }
0x291c   :  { %7431 = vrcp.f32 %v4836_v58 }
0x291d   :  { %7433 = vpow2.f32 %v6326_v11 }
0x291e   :  { %7435 = vpow2.f32 %v6325_v13 }
0x2925   :  { %v7430_v2 = vpop.eup %7429 }
0x2926   :  { %v7432_v27 = vpop.eup %7431  ;;  %v4849_v44 = vmul.f32 %v7430_v2, %v4845_v4  ;;  %v4863_v32 = vsub.f32 1.0, %v7430_v2  ;;  %v4875_v49 = vmul.f32 %v7430_v2, %v8643_v42 }
0x2927   :  { %v4848_v53 = vmul.f32 %v7432_v27, %v4843_v61  ;;  %v7434_v60 = vpop.eup %7433  ;;  %v4862_v47 = vsub.f32 1.0, %v7432_v27  ;;  %v4874_v52 = vmul.f32 %v7432_v27, %v8645_v39  ;;  %v7481_v61 = vld [vmem:[#allocation2] sm:$0xff] }
0x2928   :  { %4854 = vrot.lane.b32.xlu1 %v4849_v44, %s7513_s18  ;;  %v7436_v63 = vpop.eup %7435  ;;  %v4692_v35 = vadd.f32 1.0, %v7434_v60  ;;  %v7482_v60 = vld [vmem:[#allocation2 + $0x70] sm:$0xff] }
0x2929   :  { %4852 = vrot.lane.b32.xlu0 %v4848_v53, %s7513_s18  ;;  %v4691_v25 = vadd.f32 1.0, %v7436_v63 }
0x292a   :  { %7437 = vrcp.f32 %v4692_v35 }
0x292b   :  { %7439 = vrcp.f32 %v4691_v25 }
0x2934   :  { %v7438_v5 = vpop.eup %7437 }
0x2935   :  { %v7440_v62 = vpop.eup %7439  ;;  %v4720_v10 = vsub.f32 1.0, %v7438_v5  ;;  %v4732_v42 = vmul.f32 %v7438_v5, %v8653_v24 }
0x2936   :  { %v4731_v39 = vmul.f32 %v7440_v62, %v8655_v30 }
0x2971   :  { %v4702_v12 = vpop.permute.xlu1 %4701 }
0x2972   :  { %v4706_v37 = vmul.f32 %v7438_v5, %v4702_v12  ;;  %v4700_v17 = vpop.permute.xlu0 %4699 }
0x2973   :  { %v4705_v59 = vmul.f32 %v7440_v62, %v4700_v17 }
0x2974   :  { %4711 = vrot.lane.b32.xlu1 %v4706_v37, %s7513_s18 }
0x2975   :  { %4709 = vrot.lane.b32.xlu0 %v4705_v59, %s7513_s18 }
0x299a   :  { %v4855_v0 = vpop.permute.xlu1 %4854 }
0x299b   :  { %v4859_v38 = vadd.f32 %v7477_v19, %v4855_v0  ;;  %v4853_v46 = vpop.permute.xlu0 %4852  ;;  %v4719_v19 = vsub.f32 1.0, %v7440_v62 }
0x299c   :  { %v4858_v29 = vadd.f32 %v7478_v22, %v4853_v46 }
0x299d   :  { %7441 = vtanh.f32 %v4859_v38 }
0x299e   :  { %7443 = vtanh.f32 %v4858_v29 }
0x29a7   :  { %v7442_v31 = vpop.eup %7441 }
0x29a8   :  { %v7444_v43 = vpop.eup %7443  ;;  %4868 = vrot.lane.b32.xlu1 %v7442_v31, %s7514_s19 }
0x29a9   :  { %4866 = vrot.lane.b32.xlu0 %v7444_v43, %s7514_s19 }
0x29e6   :  { %v4712_v57 = vpop.permute.xlu1 %4711 }
0x29e7   :  { %v4716_v45 = vadd.f32 %v7479_v36, %v4712_v57  ;;  %v4710_v48 = vpop.permute.xlu0 %4709 }
0x29e8   :  { %v4715_v26 = vadd.f32 %v7480_v55, %v4710_v48 }
0x29e9   :  { %7445 = vtanh.f32 %v4716_v45 }
0x29ea   :  { %7447 = vtanh.f32 %v4715_v26 }
0x29f3   :  { %v7446_v54 = vpop.eup %7445 }
0x29f4   :  { %v7448_v8 = vpop.eup %7447  ;;  %4725 = vrot.lane.b32.xlu1 %v7446_v54, %s7514_s19 }
0x29f5   :  { %4723 = vrot.lane.b32.xlu0 %v7448_v8, %s7514_s19 }
0x2a1a   :  { %v4869_v28 = vpop.permute.xlu1 %4868 }
0x2a1b   :  { %v4873_v3 = vmul.f32 %v4869_v28, %v4863_v32  ;;  %v4867_v41 = vpop.permute.xlu0 %4866 }
0x2a1c   :  { %v4872_v23 = vmul.f32 %v4867_v41, %v4862_v47 }
0x2a1d   :  { %v8689_v16 = vadd.f32 %v4875_v49, %v4873_v3 }
0x2a1e   :  { %v8691_v50 = vadd.f32 %v4874_v52, %v4872_v23 }
0x2a1f   :  { %5019 = vrot.lane.b32.xlu1 %v8689_v16, %s7515_s20 }
0x2a20   :  { %5017 = vrot.lane.b32.xlu0 %v8691_v50, %s7515_s20 }
0x2a66   :  { %v4726_v1 = vpop.permute.xlu1 %4725 }
0x2a67   :  { %v4730_v6 = vmul.f32 %v4726_v1, %v4720_v10  ;;  %v4724_v21 = vpop.permute.xlu0 %4723 }
0x2a68   :  { %v4729_v22 = vmul.f32 %v4724_v21, %v4719_v19  ;;  %v7484_v21 = vld [vmem:[#allocation2 + $0x8] sm:$0xff] }
0x2a69   :  { %v8699_v15 = vadd.f32 %v4732_v42, %v4730_v6 }
0x2a6a   :  { %v8701_v14 = vadd.f32 %v4731_v39, %v4729_v22 }
0x2a6b   :  { %4882 = vrot.lane.b32.xlu1 %v8699_v15, %s7514_s19 }
0x2a6c   :  { %4880 = vrot.lane.b32.xlu0 %v8701_v14, %s7514_s19 }
0x2a91   :  { %v5020_v51 = vpop.permute.xlu1 %5019 }
0x2a92   :  { %v5018_v18 = vpop.permute.xlu0 %5017 }
0x2a93   :  { %6832 = vmatprep.mubr.msk.f32.mxu0 %vm300_vm3, %v5018_v18 }
0x2a94   :  { %6833 = vmatmul.mubr.msk.f32.vlgmr.msra.gmra.mrb[48].mxu0 %vm300_vm3, %v5020_v51 }
0x2a95   :  { %6842 = vmatprep.mubr.msk.f32.mxu0 %vm7517_vm6, %v7509_v9 }
0x2add   :  { %v4883_v56 = vpop.permute.xlu1 %4882 }
0x2ade   :  { %v4881_v24 = vpop.permute.xlu0 %4880 }
0x2adf   :  { %6825 = vmatprep.mubr.msk.f32.mxu1 %vm300_vm3, %v4881_v24 }
0x2ae0   :  { %6826 = vmatmul.mubr.msk.f32.vlgmr.msra.gmra.mrb[44].mxu1 %vm300_vm3, %v4883_v56 }
0x2ae1   :  { %6837 = vmatprep.mubr.msk.f32.mxu1 %vm7517_vm6, %v7509_v9 }
0x2b67   :  { %v6834_v30 = vpop.f32.mrb[48].mxu0 }
0x2b68   :  { %v5091_v20 = vpop.f32.mrb[49].mxu0  ;;  %v5097_v49 = vadd.f32 %v8554_v34, %v6834_v30 }
0x2b69   :  { %v5092_v58 = vadd.f32 %v8554_v34, %v5091_v20 }
0x2b6b   :  { %5102 = vrot.lane.b32.xlu0 %v5092_v58, %s7510_s3 }
0x2b6f   :  { %5122 = vrot.lane.b32.xlu0 %v5092_v58, %s7511_s15  ;;  %v6339_v58 = vld [vmem:[%s8884_s10 + $0x10] sm:$0xff] }
0x2bb3   :  { %v6827_v2 = vpop.f32.mrb[44].mxu1 }
0x2bb4   :  { %v4954_v4 = vpop.f32.mrb[45].mxu1  ;;  %v4960_v26 = vadd.f32 %v8569_v33, %v6827_v2  ;;  %v6340_v2 = vld [vmem:[%s8884_s10 + $0x18] sm:$0xff] }
0x2bb5   :  { %v4955_v27 = vadd.f32 %v8569_v33, %v4954_v4  ;;  %v7483_v33 = vld [vmem:[#allocation2 + $0x78] sm:$0xff]  ;;  %v5158_v4 = vld [vmem:[%s8884_s10] sm:$0xff] }
0x2bb6   :  { %v4964_v3 = vadd.f32 %v7483_v33, %v4960_v26 }
0x2bb7   :  { %4979 = vrot.lane.b32.xlu1 %v4955_v27, %s7512_s2  ;;  %v4963_v63 = vadd.f32 %v7482_v60, %v4955_v27  ;;  %v7518_v27 = vmov 0.0|0.0  }
0x2bb8   :  { %v6334_v41 = vmul.f32 -1.442695, %v4964_v3 }
0x2bb9   :  { %v6333_v35 = vmul.f32 -1.442695, %v4963_v63 }
0x2bdd   :  { %v5103_v44 = vpop.permute.xlu0 %5102 }
0x2bde   :  { %v5108_v53 = vadd.f32 %v7481_v61, %v5103_v44  ;;  %v8761_v44 = vpack.c.bf16 %v6340_v2, %v6339_v58 }
0x2be0   :  { %v6337_v36 = vmul.f32 -1.442695, %v5108_v53 }
0x2be1   :  { %v5123_v11 = vpop.permute.xlu0 %5122 }
0x2be2   :  { %7449 = vpow2.f32 %v6337_v36 }
0x2bec   :  { %v7450_v40 = vpop.eup %7449 }
0x2bed   :  { %v5116_v55 = vadd.f32 1.0, %v7450_v40  ;;  %v7519_v40 = vmov 0  }
0x2bee   :  { %7088 = vset.pattern.permute.xlu0 %v7519_v40 }
0x2bef   :  { %7451 = vrcp.f32 %v5116_v55 }
0x2bf0   :  { %7453 = vpow2.f32 %v6333_v35 }
0x2bf9   :  { %v7452_v7 = vpop.eup %7451 }
0x2bfa   :  { %v5128_v13 = vmul.f32 %v7452_v7, %v5123_v11  ;;  %v7454_v25 = vpop.eup %7453  ;;  %v5142_v31 = vsub.f32 1.0, %v7452_v7  ;;  %v5154_v57 = vmul.f32 %v7452_v7, %v8691_v50  ;;  %v5169_v50 = vld [vmem:[%s8875_s1] sm:$0xff] }
0x2bfb   :  { %v4971_v5 = vadd.f32 1.0, %v7454_v25 }
0x2bfc   :  { %5132 = vrot.lane.b32.xlu0 %v5128_v13, %s7513_s18 }
0x2bfd   :  { %7455 = vrcp.f32 %v4971_v5 }
0x2c07   :  { %v7456_v12 = vpop.eup %7455 }
0x2c08   :  { %v4999_v54 = vsub.f32 1.0, %v7456_v12  ;;  %v5011_v32 = vmul.f32 %v7456_v12, %v8701_v14 }
0x2c29   :  { %v4980_v62 = vpop.permute.xlu1 %4979 }
0x2c2a   :  { %v4985_v37 = vmul.f32 %v7456_v12, %v4980_v62  ;;  %v5163_v62 = vld [vmem:[%s8885_s11] sm:$0xff] }
0x2c2c   :  { %4989 = vrot.lane.b32.xlu1 %v4985_v37, %s7513_s18 }
0x2c6e   :  { %v5133_v17 = vpop.permute.xlu0 %5132 }
0x2c6f   :  { %v5138_v59 = vadd.f32 %v7481_v61, %v5133_v17  ;;  %v5159_v61 = vld [vmem:[%s8884_s10 + $0x8] sm:$0xff] }
0x2c70   :  { %v7051_v53 = vpack.c.bf16 %v5159_v61, %v5158_v4 }
0x2c71   :  { %7457 = vtanh.f32 %v5138_v59 }
0x2c7b   :  { %v7458_v0 = vpop.eup %7457 }
0x2c7c   :  { %5146 = vrot.lane.b32.xlu0 %v7458_v0, %s7514_s19 }
0x2c9e   :  { %v4990_v38 = vpop.permute.xlu1 %4989 }
0x2c9f   :  { %v4995_v46 = vadd.f32 %v7482_v60, %v4990_v38 }
0x2ca1   :  { %7459 = vtanh.f32 %v4995_v46 }
0x2ca2   :  { %7461 = vpow2.f32 %v6334_v41 }
0x2cab   :  { %v7460_v29 = vpop.eup %7459 }
0x2cac   :  { %5003 = vrot.lane.b32.xlu1 %v7460_v29, %s7514_s19  ;;  %v7462_v52 = vpop.eup %7461  ;;  %v6349_v29 = vld [vmem:[%s8875_s1 + $0x8] sm:$0xff] }
0x2cad   :  { %v4972_v23 = vadd.f32 1.0, %v7462_v52 }
0x2caf   :  { %7463 = vrcp.f32 %v4972_v23  ;;  %v5475_v23 = vlaneseq }
0x2cb9   :  { %v7464_v34 = vpop.eup %7463 }
0x2cba   :  { %v5000_v63 = vsub.f32 1.0, %v7464_v34  ;;  %v5012_v25 = vmul.f32 %v7464_v34, %v8699_v15 }
0x2cee   :  { %v5147_v43 = vpop.permute.xlu0 %5146 }
0x2cef   :  { %v5152_v45 = vmul.f32 %v5147_v43, %v5142_v31  ;;  %v6342_v43 = vld [vmem:[%s8886_s12 + $0x18] sm:$0xff] }
0x2cf1   :  { %v8721_v48 = vadd.f32 %v5154_v57, %v5152_v45 }
0x2cf3   :  { %5249 = vrot.lane.b32.xlu0 %v8721_v48, %s7515_s20 }
0x2cf7   :  { %4981 = vrot.lane.b32.xlu0 %v4960_v26, %s7512_s2 }
0x2d1e   :  { %v5004_v8 = vpop.permute.xlu1 %5003 }
0x2d1f   :  { %v5009_v28 = vmul.f32 %v5004_v8, %v4999_v54 }
0x2d21   :  { %v5013_v47 = vadd.f32 %v5011_v32, %v5009_v28 }
0x2d23   :  { %5171 = vrot.lane.b32.xlu1 %v5013_v47, %s7514_s19 }
0x2d27   :  { %5104 = vrot.lane.b32.xlu1 %v5097_v49, %s7510_s3 }
0x2d2b   :  { %5124 = vrot.lane.b32.xlu1 %v5097_v49, %s7511_s15 }
0x2d65   :  { %v5250_v10 = vpop.permute.xlu0 %5249 }
0x2d66   :  { %6841 = vmatpush3.msra.mxu0 %v5250_v10 }
0x2d67   :  { %6843 = vmatmul.mubr.msk.f32.vlgmr.msra.gmra.mrb[50].mxu0 %vm5174_vm7, %v5169_v50  ;;  %7050 = vmatprep.subr.bf16.mxu0 %v7518_v27 }
0x2d68   :  { %6856 = vmatprep.mubr.msk.f32.mxu0 %vm7517_vm6, %v7509_v9  ;;  %7052 = vmatpush3.bf16.msra.mxu0 %v7051_v53 }
0x2d69   :  { %v4982_v1 = vpop.permute.xlu0 %4981  ;;  %6873 = vmatprep.subr.mxu0 %v7509_v9 }
0x2d6a   :  { %v4986_v19 = vmul.f32 %v7464_v34, %v4982_v1  ;;  %v8815_v34 = vshrl.u32 %v5475_v23, 7 }
0x2d6c   :  { %4991 = vrot.lane.b32.xlu0 %v4986_v19, %s7513_s18 }
0x2d95   :  { %v8743_v42 = vpop.permute.xlu1 %5171 }
0x2d96   :  { %6836 = vmatpush3.msra.mxu1 %v8743_v42 }
0x2d97   :  { %6838 = vmatmul.mubr.msk.f32.vlgmr.msra.gmra.mrb[46].mxu1 %vm5174_vm7, %v5169_v50  ;;  %7047 = vmatprep.subr.bf16.mxu1 %v7518_v27 }
0x2d98   :  { %6849 = vmatprep.mubr.msk.f32.mxu1 %vm7517_vm6, %v7509_v9  ;;  %7049 = vmatpush3.bf16.msra.mxu1 %v8761_v44 }
0x2d99   :  { %v5105_v6 = vpop.permute.xlu1 %5104  ;;  %7053 = vmatprep.subr.bf16.mxu1 %v7518_v27 }
0x2d9a   :  { %v5109_v39 = vadd.f32 %v7484_v21, %v5105_v6 }
0x2d9c   :  { %v6338_v22 = vmul.f32 -1.442695, %v5109_v39 }
0x2d9d   :  { %v5125_v24 = vpop.permute.xlu1 %5124 }
0x2d9e   :  { %7465 = vpow2.f32 %v6338_v22 }
0x2da8   :  { %v7466_v14 = vpop.eup %7465 }
0x2da9   :  { %v5117_v18 = vadd.f32 1.0, %v7466_v14 }
0x2dab   :  { %7467 = vrcp.f32 %v5117_v18 }
0x2db5   :  { %v7468_v51 = vpop.eup %7467 }
0x2db6   :  { %v5129_v56 = vmul.f32 %v7468_v51, %v5125_v24  ;;  %v5143_v59 = vsub.f32 1.0, %v7468_v51  ;;  %v5155_v15 = vmul.f32 %v7468_v51, %v8689_v16  ;;  %v6341_v16 = vld [vmem:[%s8886_s12 + $0x10] sm:$0xff] }
0x2db7   :  { %v8803_v57 = vpack.c.bf16 %v6342_v43, %v6341_v16 }
0x2db8   :  { %5134 = vrot.lane.b32.xlu1 %v5129_v56, %s7513_s18 }
0x2dde   :  { %v4992_v30 = vpop.permute.xlu0 %4991 }
0x2ddf   :  { %v4996_v20 = vadd.f32 %v7483_v33, %v4992_v30 }
0x2de1   :  { %7469 = vtanh.f32 %v4996_v20 }
0x2deb   :  { %v7470_v36 = vpop.eup %7469 }
0x2dec   :  { %5005 = vrot.lane.b32.xlu0 %v7470_v36, %s7514_s19 }
0x2e2a   :  { %v5135_v55 = vpop.permute.xlu1 %5134 }
0x2e2b   :  { %v5139_v7 = vadd.f32 %v7484_v21, %v5135_v55 }
0x2e2d   :  { %7471 = vtanh.f32 %v5139_v7 }
0x2e37   :  { %v7472_v11 = vpop.eup %7471 }
0x2e38   :  { %5148 = vrot.lane.b32.xlu1 %v7472_v11, %s7514_s19 }
0x2e3a   :  { %v5318_v13 = vpop.f32.mrb[50].mxu0 }
0x2e3b   :  { %6850 = vmatmul.mubr.msk.f32.vlgmr.msra.gmra.mrb[48].mxu1 %vm300_vm3, %v5318_v13  ;;  %v6844_v60 = vpop.f32.mrb[51].mxu0 }
0x2e3c   :  { %6863 = vmatprep.mubr.msk.f32.mxu1 %vm7517_vm6, %v7509_v9  ;;  %7055 = vmatpush3.bf16.msra.mxu1 %v8803_v57  ;;  %v5164_v60 = vld [vmem:[%s8886_s12] sm:$0xff] }
0x2e3d   :  { %7056 = vmatprep.subr.bf16.mxu1 %v7518_v27 }
0x2e5e   :  { %v5006_v35 = vpop.permute.xlu0 %5005 }
0x2e5f   :  { %v5010_v5 = vmul.f32 %v5006_v35, %v5000_v63  ;;  %v5165_v63 = vld [vmem:[%s8886_s12 + $0x8] sm:$0xff]  ;;  %s7520_s12 = smov 1  }
0x2e61   :  { %v5014_v12 = vadd.f32 %v5012_v25, %v5010_v5  ;;  %v8831_v25 = vpack.c.bf16 %v5165_v63, %v5164_v60 }
0x2e63   :  { %5667 = vrot.lane.b32.xlu0 %v5014_v12, %s7514_s19 }
0x2e67   :  { %5470 = vperm.xlu0 %7088, %v5163_v62  }
0x2e6a   :  { %v5244_v37 = vpop.f32.mrb[46].mxu1 }
0x2e6b   :  { %6857 = vmatmul.mubr.msk.f32.vlgmr.msra.gmra.mrb[52].mxu0 %vm300_vm3, %v5244_v37  ;;  %v6839_v17 = vpop.f32.mrb[47].mxu1 }
0x2e6c   :  { %6875 = vmatprep.mubr.msk.f32.mxu0 %vm7517_vm6, %v7509_v9 }
0x2eaa   :  { %v5149_v0 = vpop.permute.xlu1 %5148 }
0x2eab   :  { %v5153_v38 = vmul.f32 %v5149_v0, %v5143_v59 }
0x2ead   :  { %v5157_v46 = vadd.f32 %v5155_v15, %v5153_v38 }
0x2eaf   :  { %5744 = vrot.lane.b32.xlu1 %v5157_v46, %s7515_s20  ;;  %5993 = vrot.lane.b32.xlu0 %v5157_v46, %s7516_s8 }
0x2eb3   :  { %5505 = vrot.lane.b32.xlu1 %v8721_v48, %s7516_s8 }
0x2ed5   :  { %v8790_v31 = vpop.permute.xlu0 %5667 }
0x2ed6   :  { %6874 = vmatpush3.msra.mxu0 %v8790_v31 }
0x2ed7   :  { %6876 = vmatmul.mubr.msk.f32.vlgmr.msra.gmra.mrb[54].mxu0 %vm5174_vm7, %v6349_v29  ;;  %6878 = vmatprep.subr.mxu0 %v7509_v9 }
0x2ed8   :  { %6880 = vmatprep.mubr.msk.f32.mxu0 %vm7517_vm6, %v7509_v9 }
0x2ee6   :  { %v8811_v28 = vpop.permute.xlu0 %5470 }
0x2f0e   :  { %v5391_v45 = vpop.f32.mrb[48].mxu1 }
0x2f0f   :  { %v6851_v48 = vpop.f32.mrb[49].mxu1 }
0x2f21   :  { %v5745_v26 = vpop.permute.xlu1 %5744  ;;  %v5994_v23 = vpop.permute.xlu0 %5993 }
0x2f22   :  { %6879 = vmatpush3.msra.mxu0 %v5745_v26 }
0x2f23   :  { %6881 = vmatmul.mubr.msk.f32.vlgmr.msra.gmra.mrb[56].mxu0 %vm5174_vm7, %v6349_v29  ;;  %7062 = vmatprep.subr.bf16.mxu0 %v7518_v27 }
0x2f24   :  { %7064 = vmatpush3.bf16.msra.mxu0 %v7051_v53  ;;  %6894 = vmatprep.mubr.msk.f32.mxu0 %vm7517_vm6, %v7509_v9 }
0x2f25   :  { %v5506_v24 = vpop.permute.xlu1 %5505 }
0x2f3e   :  { %v5464_v54 = vpop.f32.mrb[52].mxu0 }
0x2f3f   :  { %v5465_v8 = vadd.f32 %v5464_v54, %v5391_v45  ;;  %v6858_v32 = vpop.f32.mrb[53].mxu0 }
0x2f41   :  { %v5473_v47 = vadd.f32 %v8811_v28, %v5465_v8 }
0x2f43   :  { %v5474_v49 = vmax.f32 %v5473_v47, 0.0 }
0x2f45   :  { %v5477_v33 = vsel %vm2692_vm5, %v5474_v49, -inf }
0x2f46   :  { %v5478_v3 = vrot.slane %v5477_v33, 4 }
0x2f48   :  { %v5479_v41 = vmax.f32 %v5477_v33, %v5478_v3 }
0x2f4a   :  { %v5480_v52 = vrot.slane %v5479_v41, 2 }
0x2f4c   :  { %v5481_v50 = vmax.f32 %v5479_v41, %v5480_v52 }
0x2f4e   :  { %v5482_v10 = vrot.slane %v5481_v50, 1 }
0x2f50   :  { %v5483_v1 = vmax.f32 %v5481_v50, %v5482_v10 }
0x2f52   :  { %vm5484_vm8 = vcmp.eq.f32.partialorder %v5474_v49, %v5483_v1 }
0x2f53   :  { %v5485_v19 = vsel %vm5484_vm8, %v8815_v34, 8 }
0x2f54   :  { %v5486_v6 = vsel %vm2692_vm5, %v5485_v19, 2147483647 }
0x2f55   :  { %v5487_v21 = vrot.slane %v5486_v6, 4 }
0x2f57   :  { %vm5488_vm9 = vcmp.lt.s32.totalorder %v5486_v6, %v5487_v21 }
0x2f58   :  { %v5489_v39 = vsel %vm5488_vm9, %v5486_v6, %v5487_v21 }
0x2f59   :  { %v5490_v22 = vrot.slane %v5489_v39, 2 }
0x2f5b   :  { %vm5491_vm10 = vcmp.lt.s32.totalorder %v5489_v39, %v5490_v22 }
0x2f5c   :  { %v5492_v14 = vsel %vm5491_vm10, %v5489_v39, %v5490_v22 }
0x2f5d   :  { %v5493_v18 = vrot.slane %v5492_v14, 1 }
0x2f5f   :  { %vm5494_vm11 = vcmp.lt.s32.totalorder %v5492_v14, %v5493_v18 }
0x2f60   :  { %v5495_v51 = vsel %vm5494_vm11, %v5492_v14, %v5493_v18 }
0x2f61   :  { %vm5496_vm12 = vcmp.eq.s32.totalorder %v8815_v34, %v5495_v51 }
0x2f62   :  { %v5508_v56 = vsel %vm5496_vm12, %v5506_v24, 0.0  ;;  %v5497_v55 = vsel %vm5496_vm12, %v8743_v42, 0.0 }
0x2f63   :  { %v5509_v30 = vsel %vm590_vm4, %v5508_v56, 0.0  ;;  %v5498_v7 = vsel %vm300_vm3, %v5497_v55, 0.0 }
0x2f64   :  { %v5510_v20 = vrot.slane %v5509_v30, 4  ;;  %v5499_v11 = vrot.slane %v5498_v7, 4 }
0x2f66   :  { %v5511_v58 = vadd.f32 %v5510_v20, %v5509_v30  ;;  %v5500_v13 = vadd.f32 %v5499_v11, %v5498_v7 }
0x2f68   :  { %v5512_v2 = vrot.slane %v5511_v58, 2  ;;  %v5501_v35 = vrot.slane %v5500_v13, 2 }
0x2f6a   :  { %v5513_v4 = vadd.f32 %v5512_v2, %v5511_v58  ;;  %v5502_v5 = vadd.f32 %v5501_v35, %v5500_v13 }
0x2f6c   :  { %v5514_v61 = vrot.slane %v5513_v4, 1  ;;  %v5503_v42 = vrot.slane %v5502_v5, 1 }
0x2f6e   :  { %v5515_v53 = vadd.f32 %v5514_v61, %v5513_v4  ;;  %v5504_v62 = vadd.f32 %v5503_v42, %v5502_v5 }
0x2f70   :  { %5517 = vrot.lane.b32.xlu1 %v5515_v53, %s7514_s19 }
0x2faa   :  { %v5739_v36 = vpop.f32.mrb[54].mxu0 }
0x2fab   :  { %v6877_v40 = vpop.f32.mrb[55].mxu0  ;;  %6895 = vmatmul.mubr.msk.f32.vlgmr.msra.gmra.mrb[58].mxu0 %vm300_vm3, %v5739_v36 }
0x2fe2   :  { %v5518_v12 = vpop.permute.xlu1 %5517 }
0x2fe3   :  { %6864 = vmatmul.mubr.msk.f32.vlgmr.msra.gmra.mrb[50].mxu1 %vm300_vm3, %v5518_v12 }
0x2fe4   :  { %7058 = vmatpush3.bf16.msra.mxu1 %v8831_v25  ;;  %6870 = vmatprep.mubr.msk.f32.mxu1 %vm7517_vm6, %v7509_v9 }
0x2fe5   :  { %7059 = vmatprep.subr.bf16.mxu1 %v7518_v27 }
0x2feb   :  { %6871 = vmatmul.mubr.msk.f32.vlgmr.msra.gmra.mrb[50].mxu1 %vm300_vm3, %v5504_v62 }
0x2fec   :  { %7061 = vmatpush3.bf16.msra.mxu1 %v8761_v44  ;;  %6887 = vmatprep.mubr.msk.f32.mxu1 %vm7517_vm6, %v7509_v9 }
0x2fed   :  { %7065 = vmatprep.subr.bf16.mxu1 %v7518_v27 }
0x2ff6   :  { %v5813_v37 = vpop.f32.mrb[56].mxu0 }
0x2ff7   :  { %6888 = vmatmul.mubr.msk.f32.vlgmr.msra.gmra.mrb[52].mxu1 %vm300_vm3, %v5813_v37  ;;  %v6882_v17 = vpop.f32.mrb[57].mxu0 }
0x2ff8   :  { %7067 = vmatpush3.bf16.msra.mxu1 %v8803_v57  ;;  %6901 = vmatprep.mubr.msk.f32.mxu1 %vm7517_vm6, %v7509_v9 }
0x2ff9   :  { %7068 = vmatprep.subr.bf16.mxu1 %v7518_v27 }
0x307e   :  { %v5959_v59 = vpop.f32.mrb[58].mxu0 }
0x307f   :  { %v6896_v0 = vpop.f32.mrb[59].mxu0 }
0x30be   :  { %v5660_v15 = vpop.f32.mrb[50].mxu1 }
0x30bf   :  { %v6872_v44 = vpop.f32.mrb[51].mxu1 }
0x30ca   :  { %v5886_v38 = vpop.f32.mrb[52].mxu1 }
0x30cb   :  { %v5960_v46 = vadd.f32 %v5959_v59, %v5886_v38  ;;  %v6889_v29 = vpop.f32.mrb[53].mxu1 }
0x30cd   :  { %v5963_v16 = vadd.f32 %v5960_v46, %v8811_v28 }
0x30cf   :  { %v5964_v43 = vmax.f32 %v5963_v16, 0.0 }
0x30d1   :  { %v5965_v45 = vsel %vm2692_vm5, %v5964_v43, -inf }
0x30d2   :  { %v5966_v48 = vrot.slane %v5965_v45, 4 }
0x30d4   :  { %v5967_v26 = vmax.f32 %v5965_v45, %v5966_v48 }
0x30d6   :  { %v5968_v57 = vrot.slane %v5967_v26, 2 }
0x30d8   :  { %v5969_v54 = vmax.f32 %v5967_v26, %v5968_v57 }
0x30da   :  { %v5970_v8 = vrot.slane %v5969_v54, 1 }
0x30dc   :  { %v5971_v32 = vmax.f32 %v5969_v54, %v5970_v8 }
0x30de   :  { %vm5972_vm13 = vcmp.eq.f32.partialorder %v5964_v43, %v5971_v32 }
0x30df   :  { %v5973_v27 = vsel %vm5972_vm13, %v8815_v34, 8 }
0x30e0   :  { %v5974_v47 = vsel %vm2692_vm5, %v5973_v27, 2147483647 }
0x30e1   :  { %v5975_v49 = vrot.slane %v5974_v47, 4 }
0x30e3   :  { %vm5976_vm14 = vcmp.lt.s32.totalorder %v5974_v47, %v5975_v49 }
0x30e4   :  { %v5977_v33 = vsel %vm5976_vm14, %v5974_v47, %v5975_v49 }
0x30e5   :  { %v5978_v3 = vrot.slane %v5977_v33, 2 }
0x30e7   :  { %vm5979_vm15 = vcmp.lt.s32.totalorder %v5977_v33, %v5978_v3 }
0x30e8   :  { %v5980_v28 = vsel %vm5979_vm15, %v5977_v33, %v5978_v3 }
0x30e9   :  { %v5981_v41 = vrot.slane %v5980_v28, 1 }
0x30eb   :  { %vm5982_vm0 = vcmp.lt.s32.totalorder %v5980_v28, %v5981_v41 }
0x30ec   :  { %v5983_v52 = vsel %vm5982_vm0, %v5980_v28, %v5981_v41 }
0x30ed   :  { %vm5984_vm1 = vcmp.eq.s32.totalorder %v8815_v34, %v5983_v52 }
0x30ee   :  { %v5996_v50 = vsel %vm5984_vm1, %v5994_v23, 0.0  ;;  %v5985_v14 = vsel %vm5984_vm1, %v8790_v31, 0.0 }
0x30ef   :  { %v5997_v10 = vsel %vm590_vm4, %v5996_v50, 0.0  ;;  %v5986_v18 = vsel %vm300_vm3, %v5985_v14, 0.0  ;;  %vm6158_vm4 = vcmask 8192  }
0x30f0   :  { %v5998_v1 = vrot.slane %v5997_v10, 4  ;;  %v5987_v51 = vrot.slane %v5986_v18, 4 }
0x30f2   :  { %v5999_v19 = vadd.f32 %v5998_v1, %v5997_v10  ;;  %v5988_v24 = vadd.f32 %v5987_v51, %v5986_v18 }
0x30f4   :  { %v6000_v6 = vrot.slane %v5999_v19, 2  ;;  %v5989_v56 = vrot.slane %v5988_v24, 2 }
0x30f6   :  { %v6001_v21 = vadd.f32 %v6000_v6, %v5999_v19  ;;  %v5990_v30 = vadd.f32 %v5989_v56, %v5988_v24 }
0x30f8   :  { %v6002_v39 = vrot.slane %v6001_v21, 1  ;;  %v5991_v20 = vrot.slane %v5990_v30, 1 }
0x30fa   :  { %v6003_v22 = vadd.f32 %v6002_v39, %v6001_v21  ;;  %v5992_v58 = vadd.f32 %v5991_v20, %v5990_v30 }
0x30fc   :  { %6005 = vrot.lane.b32.xlu1 %v6003_v22, %s7514_s19  ;;  %s7521_s19 = smov [#allocation4]  }
0x30fd   :  { %s6166_s26 = sshll.u32 %s7521_s19, 4  ;;  %s6167_s26 = int_to_ptr.vmem [resolvable:$true] %s6166_s26 }
0x30fe   :  { %s7485_s27 = scalar_lea.vmem %s6167_s26, 16  ;;  %s7489_s7 = scalar_lea.vmem %s6167_s26, 32 }
0x30ff   :  { %p7486_p0 = scmp.ne.s32.totalorder %s6167_s26, %s7485_s27  ;;  %p7490_p1 = scmp.lt.s32.totalorder %s6167_s26, %s6167_s26 }
0x3100   :  { %p7491_p2 = scmp.lt.s32.totalorder %s7489_s7, %s7485_s27 }
0x3102   :  { %p7492_p3 = por %p7491_p2, %p7490_p1 }
0x3104   :  { %p7493_p4 = pnand %p7492_p3, %p7486_p0 }
0x316e   :  { %v6006_v34 = vpop.permute.xlu1 %6005 }
0x316f   :  { %6902 = vmatmul.mubr.msk.f32.vlgmr.msra.gmra.mrb[54].mxu1 %vm300_vm3, %v6006_v34 }
0x3170   :  { %7070 = vmatpush3.bf16.msra.mxu1 %v8831_v25  ;;  %6908 = vmatprep.mubr.msk.f32.mxu1 %vm7517_vm6, %v7509_v9 }
0x3177   :  { %6909 = vmatmul.mubr.msk.f32.vlgmr.msra.gmra.mrb[54].mxu1 %vm300_vm3, %v5992_v58 }
0x324a   :  { %v6148_v2 = vpop.f32.mrb[54].mxu1 }
0x324b   :  { %6153 = vrot.lane.b32.xlu0 %v6148_v2, %s7520_s12  ;;  %v6910_v31 = vpop.f32.mrb[55].mxu1 }
0x32bd   :  { %v6154_v4 = vpop.permute.xlu0 %6153 }
0x32be   :  { %v6157_v61 = vsel %vm6156_vm2, %v5660_v15, %v6154_v4 }
0x32bf   :  { %6159 = vst.msk [vmem:[#allocation4] sm:$0x1] %vm6158_vm4, %v6157_v61 }
0x32c0   :  { %7496 = shalt.err (!%p7493_p4)
}
0x32c1   :  { %s7497_s30 = scalar_lea.hbm %s8887_s13, 16 }
0x32c2   :  { %p7498_p5 = scmp.ne.s32.totalorder %s8887_s13, %s7497_s30  ;;  %p7501_p6 = scmp.lt.u32.totalorder %s7497_s30, %s8887_s13 }
0x32c4   :  { %p7503_p7 = pnand %p7501_p6, %p7498_p5 }
0x32c6   :  { %7506 = shalt.err (!%p7503_p7)
}
0x32c7   :  { %6169 = dma.vmem_to_hbm [thread:$0]  %s6167_s26, 16, %s8887_s13, [#allocation5]  }
0x32c8   :  { %7507 = dma.done.wait [#allocation5], 16  }
0x32c9   :  { %7508 = vsyncadd [#allocation5], 4294967280 }
0x32ca   :  { %6173 = vsyncpa [#allocation5], 1 }

</bundles_post_ra>
